<compile_context>
chip_gen: v6e
topology: v6e:2x2x1
jax: 0.10.0
libtpu: 0.0.40
codegen_flags: <defaults>
</compile_context>

<pallas_src>
import functools

import jax
import jax.numpy as jnp
from jax.experimental import pallas as pl
from jax.experimental.pallas import tpu as pltpu

LANE = 128
SUBLANE_BF16 = 16


def _round_up(v, m):
    return ((v + m - 1) // m) * m


def _vmem():
    return pl.BlockSpec(memory_space=pltpu.MemorySpace.VMEM)


def _silu(v):
    return v * jax.nn.sigmoid(v)


def _softsign(v):
    # Exact softsign (correctness-concern fix; approx reciprocal removed).
    return v / (1.0 + jnp.abs(v))


# ----------------------------- fused kernel ----------------------------------

def legnn_fused_kernel(oh_rowcol_b_ref, oh_rowcol_f_ref, sc_row_b_ref, sc_row_f_ref,
                       inv_deg_ref, h0_ref, x0_ref, edge_bias_ref,
                       w_in_ref, b_in_ref, w_out_ref, b_out_ref,
                       we1_st_ref, we1_r_ref, we2_ref, be2_ref,
                       wf1_ref, bf1_ref, wf2_ref, bf2_ref,
                       wc1_ref, bc1_ref, wc2_ref,
                       wl_top_ref, wl_bot_ref,
                       h_out_ref, x_out_ref,
                       *, n_layers):
    f32 = jnp.float32
    bf16 = jnp.bfloat16

    # Static graph structure, loaded once (pre-cast on the host; no dup casts).
    oh_rowcol_b = oh_rowcol_b_ref[...]     # (E, 2N) bf16  feature gather
    oh_rowcol_f = oh_rowcol_f_ref[...]     # (E, 2N) f32   coordinate gather
    sc_row_b = sc_row_b_ref[...]           # (N, E) bf16   message scatter-add
    sc_row_f = sc_row_f_ref[...]           # (N, E) f32    coordinate scatter-add
    inv_deg = inv_deg_ref[...]             # (N, 1) f32    1 / max(deg, 1)

    # ---- feature_in (kept in f32 for input-projection fidelity) ----
    h = jnp.dot(h0_ref[...], w_in_ref[...], preferred_element_type=f32) + b_in_ref[...]
    x = x0_ref[...]                                                     # (N, 4) f32

    for li in range(n_layers):
        hb = h.astype(bf16)

        # ---- fused project-then-gather for the edge-MLP feature term ----
        # hst = h @ [we1_s | we1_t]  -> split -> vstack -> single gather matmul.
        hst = jnp.dot(hb, we1_st_ref[li], preferred_element_type=f32)   # (N, 2M)
        mhalf = hst.shape[1] // 2
        hst_stk = jnp.concatenate([hst[:, :mhalf], hst[:, mhalf:]], axis=0)  # (2N, M)
        z = jnp.dot(oh_rowcol_b, hst_stk.astype(bf16),
                    preferred_element_type=f32)                          # (E, M)

        # ---- fused coordinate gather: diff (radial) + linear combination ----
        # rhs rows 0:N  = [ x | x @ wl_r]   (picked by oh_row columns)
        # rhs rows N:2N = [-x | x @ wl_c]   (picked by oh_col columns)
        rhs = jnp.concatenate(
            [jnp.dot(x, wl_top_ref[li], preferred_element_type=f32),
             jnp.dot(x, wl_bot_ref[li], preferred_element_type=f32)],
            axis=0)                                                      # (2N, 8)
        coord = jnp.dot(oh_rowcol_f, rhs, preferred_element_type=f32)    # (E, 8)
        diff = coord[:, 0:4]            # x[row] - x[col]
        lin_comb = coord[:, 4:8]        # x[row] @ wl_r + x[col] @ wl_c

        # Minkowski radial (signature -,+,+,+): sum(d^2) - 2*d0^2.
        sq = diff * diff
        radial = jnp.sum(sq, axis=1, keepdims=True) - 2.0 * sq[:, 0:1]   # (E, 1)

        # ---- edge MLP (edge_attr term + be1 hoisted to host as edge_bias) ----
        z = z + radial * we1_r_ref[li] + edge_bias_ref[li]
        z = _silu(z)
        messages = _softsign(jnp.dot(z.astype(bf16), we2_ref[li],
                                     preferred_element_type=f32) + be2_ref[li])
        msg_b = messages.astype(bf16)

        # ---- coordinate update (f32 path) ----
        c = _silu(jnp.dot(msg_b, wc1_ref[li], preferred_element_type=f32)
                  + bc1_ref[li])
        coord_scalar = jnp.sum(c * wc2_ref[li], axis=1, keepdims=True)   # (E, 1)
        weighted = lin_comb * coord_scalar                                # (E, 4)
        sums = jnp.dot(sc_row_f, weighted, preferred_element_type=f32)    # (N, 4)
        x = x + sums * inv_deg          # unsorted_segment_mean over `row`

        # ---- feature update (fused concat @ vstack([wf1_h, wf1_m])) ----
        msg_agg = jnp.dot(sc_row_b, msg_b, preferred_element_type=f32)    # (N, M)
        fin = jnp.concatenate([hb, msg_agg.astype(bf16)], axis=1)         # (N, 2M)
        f = _silu(jnp.dot(fin, wf1_ref[li], preferred_element_type=f32)
                  + bf1_ref[li])
        h = _softsign(jnp.dot(f.astype(bf16), wf2_ref[li],
                              preferred_element_type=f32) + bf2_ref[li])

    # ---- feature_out (lane-dense: out_dim zero-padded to 128 at pack time) ----
    h_out_ref[...] = (jnp.dot(h.astype(bf16), w_out_ref[...],
                              preferred_element_type=f32) + b_out_ref[...])
    x_out_ref[...] = jnp.concatenate(
        [x, jnp.zeros((x.shape[0], x_out_ref.shape[1] - x.shape[1]), f32)], axis=1)


# ----------------------------- wrapper ----------------------------------------

def legnn_forward(packed, graph, h0, x0, *, n_layers, out_dim):
    n = h0.shape[0]
    outp = packed['w_out'].shape[1]

    ins = (graph['oh_rowcol_b'], graph['oh_rowcol_f'],
           graph['sc_row_b'], graph['sc_row_f'], graph['inv_deg'],
           h0, x0, packed['edge_bias'],
           packed['w_in'], packed['b_in'], packed['w_out'], packed['b_out'],
           packed['we1_st'], packed['we1_r'], packed['we2'], packed['be2'],
           packed['wf1'], packed['bf1'], packed['wf2'], packed['bf2'],
           packed['wc1'], packed['bc1'], packed['wc2'],
           packed['wl_top'], packed['wl_bot'])

    kernel = functools.partial(legnn_fused_kernel, n_layers=n_layers)
    h_pad, x_pad = pl.pallas_call(
        kernel,
        out_shape=(jax.ShapeDtypeStruct((n, outp), jnp.float32),
                   jax.ShapeDtypeStruct((n, LANE), jnp.float32)),
        in_specs=[_vmem() for _ in ins],
        out_specs=(_vmem(), _vmem()),
        compiler_params=pltpu.CompilerParams(
            vmem_limit_bytes=32 * 1024 * 1024),
    )(*ins)
    return h_pad[:, :out_dim], x_pad[:, :4]


# ----------------------------- graph constants ---------------------------------

def build_graph_constants(row, col, n_nodes, n_edges_padded):
    """One-hot gather/scatter matrices, edge-padded to a sublane-dense E."""
    e = row.shape[0]
    node_ids = jnp.arange(n_nodes, dtype=jnp.int32)[None, :]
    oh_row = (row[:, None] == node_ids).astype(jnp.float32)   # (E, N)
    oh_col = (col[:, None] == node_ids).astype(jnp.float32)   # (E, N)
    pad = n_edges_padded - e
    oh_row = jnp.pad(oh_row, ((0, pad), (0, 0)))              # zero rows: inert
    oh_col = jnp.pad(oh_col, ((0, pad), (0, 0)))
    deg = jnp.sum(oh_row, axis=0)[:, None]                    # (N, 1)
    inv_deg = 1.0 / jnp.maximum(deg, 1.0)
    oh_rowcol = jnp.concatenate([oh_row, oh_col], axis=1)     # (EP, 2N)
    sc_row = oh_row.T                                          # (N, EP)
    return {
        'oh_rowcol_b': oh_rowcol.astype(jnp.bfloat16),
        'oh_rowcol_f': oh_rowcol,
        'sc_row_b': sc_row.astype(jnp.bfloat16),
        'sc_row_f': sc_row,
        'inv_deg': inv_deg,
    }


# ----------------------------- parameter init ----------------------------------

def _init_linear(key, in_dim, out_dim, bias=True):
    kw, kb = jax.random.split(key)
    bound = 1.0 / (in_dim ** 0.5)
    w = jax.random.uniform(kw, (in_dim, out_dim), jnp.float32, -bound, bound)
    if bias:
        b = jax.random.uniform(kb, (1, out_dim), jnp.float32, -bound, bound)
        return w, b
    return w


def init_lgcl_params(key, feat_dim, msg_dim, out_dim, edge_dim):
    keys = jax.random.split(key, 8)
    # edge_mlp layer 1 : Linear(2*F + 1 + A, M)
    we1, be1 = _init_linear(keys[0], 2 * feat_dim + 1 + edge_dim, msg_dim)
    we2, be2 = _init_linear(keys[1], msg_dim, msg_dim)
    # feature_mlp : Linear(F + M, M) -> Linear(M, out)
    wf1, bf1 = _init_linear(keys[2], feat_dim + msg_dim, msg_dim)
    wf2, bf2 = _init_linear(keys[3], msg_dim, out_dim)
    # coordinate_mlp : Linear(M, M) -> Linear(M, 1, bias=False, xavier*0.001)
    wc1, bc1 = _init_linear(keys[4], msg_dim, msg_dim)
    xav = 0.001 * (6.0 / (msg_dim + 1)) ** 0.5
    wc2 = jax.random.uniform(keys[5], (msg_dim, 1), jnp.float32, -xav, xav)
    # coordinate_linear_combination_mlp : Linear(8, 4, bias=False)
    wl = _init_linear(keys[6], 8, 4, bias=False)
    return {
        'we1_s': we1[:feat_dim, :],
        'we1_t': we1[feat_dim:2 * feat_dim, :],
        'we1_r': we1[2 * feat_dim:2 * feat_dim + 1, :],
        'we1_a': we1[2 * feat_dim + 1:, :],
        'be1': be1,
        'we2': we2, 'be2': be2,
        'wf1_h': wf1[:feat_dim, :],
        'wf1_m': wf1[feat_dim:, :],
        'bf1': bf1,
        'wf2': wf2, 'bf2': bf2,
        'wc1': wc1, 'bc1': bc1,
        'wc2_row': wc2.T,          # (1, M) so kernel does a row-reduce
        'wl_r': wl[:4, :],
        'wl_c': wl[4:, :],
    }


def init_legnn_params(key, input_dim, msg_dim, output_dim, edge_dim, n_layers):
    keys = jax.random.split(key, n_layers + 2)
    w_in, b_in = _init_linear(keys[0], input_dim, msg_dim)
    w_out, b_out = _init_linear(keys[1], msg_dim, output_dim)
    layers = [init_lgcl_params(keys[2 + i], msg_dim, msg_dim, msg_dim, edge_dim)
              for i in range(n_layers)]
    return {'w_in': w_in, 'b_in': b_in, 'w_out': w_out, 'b_out': b_out,
            'layers': layers}


def _pad2d(a, rows=None, cols=None):
    r = (rows - a.shape[0]) if rows is not None else 0
    c = (cols - a.shape[1]) if cols is not None else 0
    if r == 0 and c == 0:
        return a
    return jnp.pad(a, ((0, r), (0, c)))


def pack_legnn_params(params, msg_dim, edge_attr, n_edges_padded):
    """Pad the message dim to lane-dense 128, fuse paired weight matrices,
    stack per-layer weights along a leading axis, cast MXU operands to bf16,
    and hoist the loop-invariant edge_attr term out of the layer loop.
    Zero padding keeps the math exact (SiLU(0)=Softsign(0)=0)."""
    mp = _round_up(msg_dim, LANE)
    outp = _round_up(params['w_out'].shape[1], LANE)
    bf16 = jnp.bfloat16
    layers = params['layers']

    ep = n_edges_padded
    e = edge_attr.shape[0]
    ea_pad = jnp.pad(edge_attr, ((0, ep - e), (0, 0)))
    eye4 = jnp.eye(4, dtype=jnp.float32)

    def stack(fn, dtype=jnp.float32):
        return jnp.stack([fn(lp) for lp in layers]).astype(dtype)

    return {
        'w_in': _pad2d(params['w_in'], None, mp),                     # f32 (fidelity)
        'b_in': _pad2d(params['b_in'], None, mp),
        'w_out': _pad2d(params['w_out'], mp, outp).astype(bf16),      # lane-dense out
        'b_out': _pad2d(params['b_out'], None, outp),
        # fused edge-MLP feature weights  h @ [we1_s | we1_t]
        'we1_st': stack(lambda lp: jnp.concatenate(
            [_pad2d(lp['we1_s'], mp, mp), _pad2d(lp['we1_t'], mp, mp)], axis=1), bf16),
        'we1_r': stack(lambda lp: _pad2d(lp['we1_r'], None, mp)),
        'we2': stack(lambda lp: _pad2d(lp['we2'], mp, mp), bf16),
        'be2': stack(lambda lp: _pad2d(lp['be2'], None, mp)),
        # fused feature-MLP first layer  [h | msg_agg] @ vstack([wf1_h, wf1_m])
        'wf1': stack(lambda lp: jnp.concatenate(
            [_pad2d(lp['wf1_h'], mp, mp), _pad2d(lp['wf1_m'], mp, mp)], axis=0), bf16),
        'bf1': stack(lambda lp: _pad2d(lp['bf1'], None, mp)),
        'wf2': stack(lambda lp: _pad2d(lp['wf2'], mp, mp), bf16),
        'bf2': stack(lambda lp: _pad2d(lp['bf2'], None, mp)),
        'wc1': stack(lambda lp: _pad2d(lp['wc1'], mp, mp), bf16),
        'bc1': stack(lambda lp: _pad2d(lp['bc1'], None, mp)),
        'wc2': stack(lambda lp: _pad2d(lp['wc2_row'], None, mp)),
        # fused coordinate read weights: x @ [I | wl_r]  and  x @ [-I | wl_c]
        'wl_top': stack(lambda lp: jnp.concatenate([eye4, lp['wl_r']], axis=1)),
        'wl_bot': stack(lambda lp: jnp.concatenate([-eye4, lp['wl_c']], axis=1)),
        # loop-invariant edge term, precomputed once per layer
        'edge_bias': stack(lambda lp: _pad2d(
            ea_pad @ lp['we1_a'] + lp['be1'], None, mp)),
    }


# ----------------------------- pure-JAX reference ------------------------------

def _ref_forward(params, h, x, row, col, edge_attr):
    def silu(v):
        return v * jax.nn.sigmoid(v)

    def softsign(v):
        return v / (1.0 + jnp.abs(v))

    n = h.shape[0]
    h = h @ params['w_in'] + params['b_in']
    for lp in params['layers']:
        h_row, h_col = h[row], h[col]
        x_row, x_col = x[row], x[col]
        diff = x_row - x_col
        sq = diff * diff
        radial = jnp.sum(sq, axis=1, keepdims=True) - 2.0 * sq[:, 0:1]
        z = (h_row @ lp['we1_s'] + h_col @ lp['we1_t'] + radial * lp['we1_r']
             + edge_attr @ lp['we1_a'] + lp['be1'])
        messages = softsign(silu(z) @ lp['we2'] + lp['be2'])
        lin_comb = x_row @ lp['wl_r'] + x_col @ lp['wl_c']
        c = silu(messages @ lp['wc1'] + lp['bc1'])
        coord_scalar = jnp.sum(c * lp['wc2_row'], axis=1, keepdims=True)
        weighted = lin_comb * coord_scalar
        sums = jax.ops.segment_sum(weighted, row, num_segments=n)
        counts = jax.ops.segment_sum(jnp.ones_like(weighted), row, num_segments=n)
        x = x + sums / jnp.maximum(counts, 1.0)
        msg_agg = jax.ops.segment_sum(messages, row, num_segments=n)
        f = silu(h @ lp['wf1_h'] + msg_agg @ lp['wf1_m'] + lp['bf1'])
        h = softsign(f @ lp['wf2'] + lp['bf2'])
    h = h @ params['w_out'] + params['b_out']
    return h, x


# ----------------------------- main --------------------------------------------

if __name__ == "__main__":
    N_NODES = 8
    INPUT_FEATURE_DIM = 4
    MESSAGE_DIM = 32
    OUTPUT_FEATURE_DIM = 16
    EDGE_FEATURE_DIM = 4
    N_LAYERS = 4

    key = jax.random.PRNGKey(0)
    k_h, k_x, k_e, k_p = jax.random.split(key, 4)

    # Fully-connected graph without self-loops.
    rows, cols = [], []
    for i in range(N_NODES):
        for j in range(N_NODES):
            if i != j:
                rows.append(i)
                cols.append(j)
    row = jnp.asarray(rows, dtype=jnp.int32)   # (E,)
    col = jnp.asarray(cols, dtype=jnp.int32)   # (E,)
    E = row.shape[0]
    EP = _round_up(E, SUBLANE_BF16)            # edge padding: 56 -> 64

    h0 = jax.random.normal(k_h, (N_NODES, INPUT_FEATURE_DIM), jnp.float32)
    x0 = jax.random.normal(k_x, (N_NODES, 4), jnp.float32)
    edge_attr = jax.random.normal(k_e, (E, EDGE_FEATURE_DIM), jnp.float32)

    params = init_legnn_params(k_p, INPUT_FEATURE_DIM, MESSAGE_DIM,
                               OUTPUT_FEATURE_DIM, EDGE_FEATURE_DIM, N_LAYERS)
    packed = pack_legnn_params(params, MESSAGE_DIM, edge_attr, EP)
    graph = build_graph_constants(row, col, N_NODES, EP)

    # TODO(synk): for real throughput, batch many graphs (block-diagonal one-hot)
    # so matmul row dims reach the 128/256 MXU tile; single tiny graph is latency-bound.
    fwd = jax.jit(functools.partial(legnn_forward, n_layers=N_LAYERS,
                                    out_dim=OUTPUT_FEATURE_DIM))
    h_out, x_out = fwd(packed, graph, h0, x0)
    jax.block_until_ready((h_out, x_out))

    assert h_out.shape == (N_NODES, OUTPUT_FEATURE_DIM)
    assert x_out.shape == (N_NODES, 4)
    assert bool(jnp.all(jnp.isfinite(h_out))) and bool(jnp.all(jnp.isfinite(x_out)))

    # Check vs. an all-f32 pure-JAX reference (kernel uses bf16 MXU operands
    # for the feature path, so a loose tolerance is kept).
    h_ref, x_ref = _ref_forward(params, h0, x0, row, col, edge_attr)
    assert bool(jnp.allclose(h_out, h_ref, atol=1e-1, rtol=1e-1))
    assert bool(jnp.allclose(x_out, x_ref, atol=1e-1, rtol=1e-1))

    print("KERNEL_OK")
</pallas_src>

<mosaic_0001>
module attributes {stable_mosaic.version = 11 : i64} {
  func.func @legnn_fused_kernel(%arg0: memref<64x16xbf16, #tpu.memory_space<vmem>>, %arg1: memref<64x16xf32, #tpu.memory_space<vmem>>, %arg2: memref<8x64xbf16, #tpu.memory_space<vmem>>, %arg3: memref<8x64xf32, #tpu.memory_space<vmem>>, %arg4: memref<8x1xf32, #tpu.memory_space<vmem>>, %arg5: memref<8x4xf32, #tpu.memory_space<vmem>>, %arg6: memref<8x4xf32, #tpu.memory_space<vmem>>, %arg7: memref<4x64x128xf32, #tpu.memory_space<vmem>>, %arg8: memref<4x128xf32, #tpu.memory_space<vmem>>, %arg9: memref<1x128xf32, #tpu.memory_space<vmem>>, %arg10: memref<128x128xbf16, #tpu.memory_space<vmem>>, %arg11: memref<1x128xf32, #tpu.memory_space<vmem>>, %arg12: memref<4x128x256xbf16, #tpu.memory_space<vmem>>, %arg13: memref<4x1x128xf32, #tpu.memory_space<vmem>>, %arg14: memref<4x128x128xbf16, #tpu.memory_space<vmem>>, %arg15: memref<4x1x128xf32, #tpu.memory_space<vmem>>, %arg16: memref<4x256x128xbf16, #tpu.memory_space<vmem>>, %arg17: memref<4x1x128xf32, #tpu.memory_space<vmem>>, %arg18: memref<4x128x128xbf16, #tpu.memory_space<vmem>>, %arg19: memref<4x1x128xf32, #tpu.memory_space<vmem>>, %arg20: memref<4x128x128xbf16, #tpu.memory_space<vmem>>, %arg21: memref<4x1x128xf32, #tpu.memory_space<vmem>>, %arg22: memref<4x1x128xf32, #tpu.memory_space<vmem>>, %arg23: memref<4x4x8xf32, #tpu.memory_space<vmem>>, %arg24: memref<4x4x8xf32, #tpu.memory_space<vmem>>, %arg25: memref<8x128xf32, #tpu.memory_space<vmem>>, %arg26: memref<8x128xf32, #tpu.memory_space<vmem>>) attributes {dimension_semantics = [], scalar_prefetch = 0 : i64, scratch_operands = 0 : i64, tpu.core_type = #tpu.core_type<tc>} {
    %c0 = arith.constant 0 : index
    %c0_0 = arith.constant 0 : index
    %0 = vector.load %arg0[%c0, %c0_0] : memref<64x16xbf16, #tpu.memory_space<vmem>>, vector<64x16xbf16>
    %c0_1 = arith.constant 0 : index
    %c0_2 = arith.constant 0 : index
    %1 = vector.load %arg1[%c0_1, %c0_2] : memref<64x16xf32, #tpu.memory_space<vmem>>, vector<64x16xf32>
    %c0_3 = arith.constant 0 : index
    %c0_4 = arith.constant 0 : index
    %2 = vector.load %arg2[%c0_3, %c0_4] : memref<8x64xbf16, #tpu.memory_space<vmem>>, vector<8x64xbf16>
    %c0_5 = arith.constant 0 : index
    %c0_6 = arith.constant 0 : index
    %3 = vector.load %arg3[%c0_5, %c0_6] : memref<8x64xf32, #tpu.memory_space<vmem>>, vector<8x64xf32>
    %c0_7 = arith.constant 0 : index
    %c0_8 = arith.constant 0 : index
    %4 = vector.load %arg4[%c0_7, %c0_8] : memref<8x1xf32, #tpu.memory_space<vmem>>, vector<8x1xf32>
    %c0_9 = arith.constant 0 : index
    %c0_10 = arith.constant 0 : index
    %5 = vector.load %arg5[%c0_9, %c0_10] : memref<8x4xf32, #tpu.memory_space<vmem>>, vector<8x4xf32>
    %c0_11 = arith.constant 0 : index
    %c0_12 = arith.constant 0 : index
    %6 = vector.load %arg8[%c0_11, %c0_12] : memref<4x128xf32, #tpu.memory_space<vmem>>, vector<4x128xf32>
    %cst = arith.constant dense<0.000000e+00> : vector<8x128xf32>
    %7 = tpu.matmul %5, %6, %cst {dimension_numbers = #tpu.dot_dimension_numbers<[1], [0], [0], [1], [0, 0, 1, 1], [], []>} : vector<8x4xf32>, vector<4x128xf32>, vector<8x128xf32> -> vector<8x128xf32>
    %c0_13 = arith.constant 0 : index
    %c0_14 = arith.constant 0 : index
    %8 = vector.load %arg9[%c0_13, %c0_14] : memref<1x128xf32, #tpu.memory_space<vmem>>, vector<1x128xf32>
    %9 = vector.broadcast %8 : vector<1x128xf32> to vector<8x128xf32>
    %10 = arith.addf %7, %9 : vector<8x128xf32>
    %c0_15 = arith.constant 0 : index
    %c0_16 = arith.constant 0 : index
    %11 = vector.load %arg6[%c0_15, %c0_16] : memref<8x4xf32, #tpu.memory_space<vmem>>, vector<8x4xf32>
    %12 = arith.truncf %10 : vector<8x128xf32> to vector<8x128xbf16>
    %c0_17 = arith.constant 0 : index
    %c0_18 = arith.constant 0 : index
    %c0_19 = arith.constant 0 : index
    %13 = vector.load %arg12[%c0_17, %c0_18, %c0_19] : memref<4x128x256xbf16, #tpu.memory_space<vmem>>, vector<1x128x256xbf16>
    %14 = vector.shape_cast %13 : vector<1x128x256xbf16> to vector<128x256xbf16>
    %cst_20 = arith.constant dense<0.000000e+00> : vector<8x256xf32>
    %15 = tpu.matmul %12, %14, %cst_20 {dimension_numbers = #tpu.dot_dimension_numbers<[1], [0], [0], [1], [0, 0, 1, 1], [], []>} : vector<8x128xbf16>, vector<128x256xbf16>, vector<8x256xf32> -> vector<8x256xf32>
    %16 = vector.extract_strided_slice %15 {offsets = [0, 0], sizes = [8, 128], strides = [1, 1]} : vector<8x256xf32> to vector<8x128xf32>
    %17 = vector.extract_strided_slice %15 {offsets = [0, 128], sizes = [8, 128], strides = [1, 1]} : vector<8x256xf32> to vector<8x128xf32>
    %18 = tpu.concatenate %16, %17 in 0 : vector<8x128xf32>, vector<8x128xf32> -> vector<16x128xf32>
    %19 = arith.truncf %18 : vector<16x128xf32> to vector<16x128xbf16>
    %cst_21 = arith.constant dense<0.000000e+00> : vector<64x128xf32>
    %20 = tpu.matmul %0, %19, %cst_21 {dimension_numbers = #tpu.dot_dimension_numbers<[1], [0], [0], [1], [0, 0, 1, 1], [], []>} : vector<64x16xbf16>, vector<16x128xbf16>, vector<64x128xf32> -> vector<64x128xf32>
    %c0_22 = arith.constant 0 : index
    %c0_23 = arith.constant 0 : index
    %c0_24 = arith.constant 0 : index
    %21 = vector.load %arg23[%c0_22, %c0_23, %c0_24] : memref<4x4x8xf32, #tpu.memory_space<vmem>>, vector<1x4x8xf32>
    %22 = vector.shape_cast %21 : vector<1x4x8xf32> to vector<4x8xf32>
    %cst_25 = arith.constant dense<0.000000e+00> : vector<8x8xf32>
    %23 = tpu.matmul %11, %22, %cst_25 {dimension_numbers = #tpu.dot_dimension_numbers<[1], [0], [0], [1], [0, 0, 1, 1], [], []>} : vector<8x4xf32>, vector<4x8xf32>, vector<8x8xf32> -> vector<8x8xf32>
    %c0_26 = arith.constant 0 : index
    %c0_27 = arith.constant 0 : index
    %c0_28 = arith.constant 0 : index
    %24 = vector.load %arg24[%c0_26, %c0_27, %c0_28] : memref<4x4x8xf32, #tpu.memory_space<vmem>>, vector<1x4x8xf32>
    %25 = vector.shape_cast %24 : vector<1x4x8xf32> to vector<4x8xf32>
    %cst_29 = arith.constant dense<0.000000e+00> : vector<8x8xf32>
    %26 = tpu.matmul %11, %25, %cst_29 {dimension_numbers = #tpu.dot_dimension_numbers<[1], [0], [0], [1], [0, 0, 1, 1], [], []>} : vector<8x4xf32>, vector<4x8xf32>, vector<8x8xf32> -> vector<8x8xf32>
    %27 = tpu.concatenate %23, %26 in 0 : vector<8x8xf32>, vector<8x8xf32> -> vector<16x8xf32>
    %cst_30 = arith.constant dense<0.000000e+00> : vector<64x8xf32>
    %28 = tpu.matmul %1, %27, %cst_30 {dimension_numbers = #tpu.dot_dimension_numbers<[1], [0], [0], [1], [0, 0, 1, 1], [], []>} : vector<64x16xf32>, vector<16x8xf32>, vector<64x8xf32> -> vector<64x8xf32>
    %29 = vector.extract_strided_slice %28 {offsets = [0, 0], sizes = [64, 4], strides = [1, 1]} : vector<64x8xf32> to vector<64x4xf32>
    %30 = vector.extract_strided_slice %28 {offsets = [0, 4], sizes = [64, 4], strides = [1, 1]} : vector<64x8xf32> to vector<64x4xf32>
    %31 = arith.mulf %29, %29 : vector<64x4xf32>
    %cst_31 = arith.constant dense<0.000000e+00> : vector<64xf32>
    %32 = vector.multi_reduction <add>, %31, %cst_31 [1] : vector<64x4xf32> to vector<64xf32>
    %33 = vector.shape_cast %32 : vector<64xf32> to vector<64x1xf32>
    %34 = vector.extract_strided_slice %31 {offsets = [0, 0], sizes = [64, 1], strides = [1, 1]} : vector<64x4xf32> to vector<64x1xf32>
    %cst_32 = arith.constant 2.000000e+00 : f32
    %35 = vector.broadcast %cst_32 : f32 to vector<64x1xf32>
    %36 = arith.mulf %35, %34 : vector<64x1xf32>
    %37 = arith.subf %33, %36 : vector<64x1xf32>
    %c0_33 = arith.constant 0 : index
    %c0_34 = arith.constant 0 : index
    %c0_35 = arith.constant 0 : index
    %38 = vector.load %arg13[%c0_33, %c0_34, %c0_35] : memref<4x1x128xf32, #tpu.memory_space<vmem>>, vector<1x1x128xf32>
    %39 = vector.shape_cast %38 : vector<1x1x128xf32> to vector<1x128xf32>
    %40 = vector.broadcast %37 : vector<64x1xf32> to vector<64x128xf32>
    %41 = vector.broadcast %39 : vector<1x128xf32> to vector<64x128xf32>
    %42 = arith.mulf %40, %41 : vector<64x128xf32>
    %43 = arith.addf %20, %42 : vector<64x128xf32>
    %c0_36 = arith.constant 0 : index
    %c0_37 = arith.constant 0 : index
    %c0_38 = arith.constant 0 : index
    %44 = vector.load %arg7[%c0_36, %c0_37, %c0_38] : memref<4x64x128xf32, #tpu.memory_space<vmem>>, vector<1x64x128xf32>
    %45 = vector.shape_cast %44 : vector<1x64x128xf32> to vector<64x128xf32>
    %46 = arith.addf %43, %45 : vector<64x128xf32>
    %47 = arith.negf %46 : vector<64x128xf32>
    %48 = math.exp %47 : vector<64x128xf32>
    %cst_39 = arith.constant 1.000000e+00 : f32
    %49 = vector.broadcast %cst_39 : f32 to vector<64x128xf32>
    %50 = arith.addf %49, %48 : vector<64x128xf32>
    %51 = arith.divf %49, %50 : vector<64x128xf32>
    %52 = arith.mulf %46, %51 : vector<64x128xf32>
    %53 = arith.truncf %52 : vector<64x128xf32> to vector<64x128xbf16>
    %c0_40 = arith.constant 0 : index
    %c0_41 = arith.constant 0 : index
    %c0_42 = arith.constant 0 : index
    %54 = vector.load %arg14[%c0_40, %c0_41, %c0_42] : memref<4x128x128xbf16, #tpu.memory_space<vmem>>, vector<1x128x128xbf16>
    %55 = vector.shape_cast %54 : vector<1x128x128xbf16> to vector<128x128xbf16>
    %cst_43 = arith.constant dense<0.000000e+00> : vector<64x128xf32>
    %56 = tpu.matmul %53, %55, %cst_43 {dimension_numbers = #tpu.dot_dimension_numbers<[1], [0], [0], [1], [0, 0, 1, 1], [], []>} : vector<64x128xbf16>, vector<128x128xbf16>, vector<64x128xf32> -> vector<64x128xf32>
    %c0_44 = arith.constant 0 : index
    %c0_45 = arith.constant 0 : index
    %c0_46 = arith.constant 0 : index
    %57 = vector.load %arg15[%c0_44, %c0_45, %c0_46] : memref<4x1x128xf32, #tpu.memory_space<vmem>>, vector<1x1x128xf32>
    %58 = vector.shape_cast %57 : vector<1x1x128xf32> to vector<1x128xf32>
    %59 = vector.broadcast %58 : vector<1x128xf32> to vector<64x128xf32>
    %60 = arith.addf %56, %59 : vector<64x128xf32>
    %61 = math.absf %60 : vector<64x128xf32>
    %cst_47 = arith.constant 1.000000e+00 : f32
    %62 = vector.broadcast %cst_47 : f32 to vector<64x128xf32>
    %63 = arith.addf %62, %61 : vector<64x128xf32>
    %64 = arith.divf %60, %63 : vector<64x128xf32>
    %65 = arith.truncf %64 : vector<64x128xf32> to vector<64x128xbf16>
    %c0_48 = arith.constant 0 : index
    %c0_49 = arith.constant 0 : index
    %c0_50 = arith.constant 0 : index
    %66 = vector.load %arg20[%c0_48, %c0_49, %c0_50] : memref<4x128x128xbf16, #tpu.memory_space<vmem>>, vector<1x128x128xbf16>
    %67 = vector.shape_cast %66 : vector<1x128x128xbf16> to vector<128x128xbf16>
    %cst_51 = arith.constant dense<0.000000e+00> : vector<64x128xf32>
    %68 = tpu.matmul %65, %67, %cst_51 {dimension_numbers = #tpu.dot_dimension_numbers<[1], [0], [0], [1], [0, 0, 1, 1], [], []>} : vector<64x128xbf16>, vector<128x128xbf16>, vector<64x128xf32> -> vector<64x128xf32>
    %c0_52 = arith.constant 0 : index
    %c0_53 = arith.constant 0 : index
    %c0_54 = arith.constant 0 : index
    %69 = vector.load %arg21[%c0_52, %c0_53, %c0_54] : memref<4x1x128xf32, #tpu.memory_space<vmem>>, vector<1x1x128xf32>
    %70 = vector.shape_cast %69 : vector<1x1x128xf32> to vector<1x128xf32>
    %71 = vector.broadcast %70 : vector<1x128xf32> to vector<64x128xf32>
    %72 = arith.addf %68, %71 : vector<64x128xf32>
    %73 = arith.negf %72 : vector<64x128xf32>
    %74 = math.exp %73 : vector<64x128xf32>
    %cst_55 = arith.constant 1.000000e+00 : f32
    %75 = vector.broadcast %cst_55 : f32 to vector<64x128xf32>
    %76 = arith.addf %75, %74 : vector<64x128xf32>
    %77 = arith.divf %75, %76 : vector<64x128xf32>
    %78 = arith.mulf %72, %77 : vector<64x128xf32>
    %c0_56 = arith.constant 0 : index
    %c0_57 = arith.constant 0 : index
    %c0_58 = arith.constant 0 : index
    %79 = vector.load %arg22[%c0_56, %c0_57, %c0_58] : memref<4x1x128xf32, #tpu.memory_space<vmem>>, vector<1x1x128xf32>
    %80 = vector.shape_cast %79 : vector<1x1x128xf32> to vector<1x128xf32>
    %81 = vector.broadcast %80 : vector<1x128xf32> to vector<64x128xf32>
    %82 = arith.mulf %78, %81 : vector<64x128xf32>
    %cst_59 = arith.constant dense<0.000000e+00> : vector<64xf32>
    %83 = vector.multi_reduction <add>, %82, %cst_59 [1] : vector<64x128xf32> to vector<64xf32>
    %84 = vector.shape_cast %83 : vector<64xf32> to vector<64x1xf32>
    %85 = vector.broadcast %84 : vector<64x1xf32> to vector<64x4xf32>
    %86 = arith.mulf %30, %85 : vector<64x4xf32>
    %cst_60 = arith.constant dense<0.000000e+00> : vector<8x4xf32>
    %87 = tpu.matmul %3, %86, %cst_60 {dimension_numbers = #tpu.dot_dimension_numbers<[1], [0], [0], [1], [0, 0, 1, 1], [], []>} : vector<8x64xf32>, vector<64x4xf32>, vector<8x4xf32> -> vector<8x4xf32>
    %88 = vector.broadcast %4 : vector<8x1xf32> to vector<8x4xf32>
    %89 = arith.mulf %87, %88 : vector<8x4xf32>
    %90 = arith.addf %11, %89 : vector<8x4xf32>
    %cst_61 = arith.constant dense<0.000000e+00> : vector<8x128xf32>
    %91 = tpu.matmul %2, %65, %cst_61 {dimension_numbers = #tpu.dot_dimension_numbers<[1], [0], [0], [1], [0, 0, 1, 1], [], []>} : vector<8x64xbf16>, vector<64x128xbf16>, vector<8x128xf32> -> vector<8x128xf32>
    %92 = arith.truncf %91 : vector<8x128xf32> to vector<8x128xbf16>
    %93 = tpu.concatenate %12, %92 in 1 : vector<8x128xbf16>, vector<8x128xbf16> -> vector<8x256xbf16>
    %c0_62 = arith.constant 0 : index
    %c0_63 = arith.constant 0 : index
    %c0_64 = arith.constant 0 : index
    %94 = vector.load %arg16[%c0_62, %c0_63, %c0_64] : memref<4x256x128xbf16, #tpu.memory_space<vmem>>, vector<1x256x128xbf16>
    %95 = vector.shape_cast %94 : vector<1x256x128xbf16> to vector<256x128xbf16>
    %cst_65 = arith.constant dense<0.000000e+00> : vector<8x128xf32>
    %96 = tpu.matmul %93, %95, %cst_65 {dimension_numbers = #tpu.dot_dimension_numbers<[1], [0], [0], [1], [0, 0, 1, 1], [], []>} : vector<8x256xbf16>, vector<256x128xbf16>, vector<8x128xf32> -> vector<8x128xf32>
    %c0_66 = arith.constant 0 : index
    %c0_67 = arith.constant 0 : index
    %c0_68 = arith.constant 0 : index
    %97 = vector.load %arg17[%c0_66, %c0_67, %c0_68] : memref<4x1x128xf32, #tpu.memory_space<vmem>>, vector<1x1x128xf32>
    %98 = vector.shape_cast %97 : vector<1x1x128xf32> to vector<1x128xf32>
    %99 = vector.broadcast %98 : vector<1x128xf32> to vector<8x128xf32>
    %100 = arith.addf %96, %99 : vector<8x128xf32>
    %101 = arith.negf %100 : vector<8x128xf32>
    %102 = math.exp %101 : vector<8x128xf32>
    %cst_69 = arith.constant 1.000000e+00 : f32
    %103 = vector.broadcast %cst_69 : f32 to vector<8x128xf32>
    %104 = arith.addf %103, %102 : vector<8x128xf32>
    %105 = arith.divf %103, %104 : vector<8x128xf32>
    %106 = arith.mulf %100, %105 : vector<8x128xf32>
    %107 = arith.truncf %106 : vector<8x128xf32> to vector<8x128xbf16>
    %c0_70 = arith.constant 0 : index
    %c0_71 = arith.constant 0 : index
    %c0_72 = arith.constant 0 : index
    %108 = vector.load %arg18[%c0_70, %c0_71, %c0_72] : memref<4x128x128xbf16, #tpu.memory_space<vmem>>, vector<1x128x128xbf16>
    %109 = vector.shape_cast %108 : vector<1x128x128xbf16> to vector<128x128xbf16>
    %cst_73 = arith.constant dense<0.000000e+00> : vector<8x128xf32>
    %110 = tpu.matmul %107, %109, %cst_73 {dimension_numbers = #tpu.dot_dimension_numbers<[1], [0], [0], [1], [0, 0, 1, 1], [], []>} : vector<8x128xbf16>, vector<128x128xbf16>, vector<8x128xf32> -> vector<8x128xf32>
    %c0_74 = arith.constant 0 : index
    %c0_75 = arith.constant 0 : index
    %c0_76 = arith.constant 0 : index
    %111 = vector.load %arg19[%c0_74, %c0_75, %c0_76] : memref<4x1x128xf32, #tpu.memory_space<vmem>>, vector<1x1x128xf32>
    %112 = vector.shape_cast %111 : vector<1x1x128xf32> to vector<1x128xf32>
    %113 = vector.broadcast %112 : vector<1x128xf32> to vector<8x128xf32>
    %114 = arith.addf %110, %113 : vector<8x128xf32>
    %115 = math.absf %114 : vector<8x128xf32>
    %cst_77 = arith.constant 1.000000e+00 : f32
    %116 = vector.broadcast %cst_77 : f32 to vector<8x128xf32>
    %117 = arith.addf %116, %115 : vector<8x128xf32>
    %118 = arith.divf %114, %117 : vector<8x128xf32>
    %119 = arith.truncf %118 : vector<8x128xf32> to vector<8x128xbf16>
    %c1 = arith.constant 1 : index
    %c0_78 = arith.constant 0 : index
    %c0_79 = arith.constant 0 : index
    %120 = vector.load %arg12[%c1, %c0_78, %c0_79] : memref<4x128x256xbf16, #tpu.memory_space<vmem>>, vector<1x128x256xbf16>
    %121 = vector.shape_cast %120 : vector<1x128x256xbf16> to vector<128x256xbf16>
    %cst_80 = arith.constant dense<0.000000e+00> : vector<8x256xf32>
    %122 = tpu.matmul %119, %121, %cst_80 {dimension_numbers = #tpu.dot_dimension_numbers<[1], [0], [0], [1], [0, 0, 1, 1], [], []>} : vector<8x128xbf16>, vector<128x256xbf16>, vector<8x256xf32> -> vector<8x256xf32>
    %123 = vector.extract_strided_slice %122 {offsets = [0, 0], sizes = [8, 128], strides = [1, 1]} : vector<8x256xf32> to vector<8x128xf32>
    %124 = vector.extract_strided_slice %122 {offsets = [0, 128], sizes = [8, 128], strides = [1, 1]} : vector<8x256xf32> to vector<8x128xf32>
    %125 = tpu.concatenate %123, %124 in 0 : vector<8x128xf32>, vector<8x128xf32> -> vector<16x128xf32>
    %126 = arith.truncf %125 : vector<16x128xf32> to vector<16x128xbf16>
    %cst_81 = arith.constant dense<0.000000e+00> : vector<64x128xf32>
    %127 = tpu.matmul %0, %126, %cst_81 {dimension_numbers = #tpu.dot_dimension_numbers<[1], [0], [0], [1], [0, 0, 1, 1], [], []>} : vector<64x16xbf16>, vector<16x128xbf16>, vector<64x128xf32> -> vector<64x128xf32>
    %c1_82 = arith.constant 1 : index
    %c0_83 = arith.constant 0 : index
    %c0_84 = arith.constant 0 : index
    %128 = vector.load %arg23[%c1_82, %c0_83, %c0_84] : memref<4x4x8xf32, #tpu.memory_space<vmem>>, vector<1x4x8xf32>
    %129 = vector.shape_cast %128 : vector<1x4x8xf32> to vector<4x8xf32>
    %cst_85 = arith.constant dense<0.000000e+00> : vector<8x8xf32>
    %130 = tpu.matmul %90, %129, %cst_85 {dimension_numbers = #tpu.dot_dimension_numbers<[1], [0], [0], [1], [0, 0, 1, 1], [], []>} : vector<8x4xf32>, vector<4x8xf32>, vector<8x8xf32> -> vector<8x8xf32>
    %c1_86 = arith.constant 1 : index
    %c0_87 = arith.constant 0 : index
    %c0_88 = arith.constant 0 : index
    %131 = vector.load %arg24[%c1_86, %c0_87, %c0_88] : memref<4x4x8xf32, #tpu.memory_space<vmem>>, vector<1x4x8xf32>
    %132 = vector.shape_cast %131 : vector<1x4x8xf32> to vector<4x8xf32>
    %cst_89 = arith.constant dense<0.000000e+00> : vector<8x8xf32>
    %133 = tpu.matmul %90, %132, %cst_89 {dimension_numbers = #tpu.dot_dimension_numbers<[1], [0], [0], [1], [0, 0, 1, 1], [], []>} : vector<8x4xf32>, vector<4x8xf32>, vector<8x8xf32> -> vector<8x8xf32>
    %134 = tpu.concatenate %130, %133 in 0 : vector<8x8xf32>, vector<8x8xf32> -> vector<16x8xf32>
    %cst_90 = arith.constant dense<0.000000e+00> : vector<64x8xf32>
    %135 = tpu.matmul %1, %134, %cst_90 {dimension_numbers = #tpu.dot_dimension_numbers<[1], [0], [0], [1], [0, 0, 1, 1], [], []>} : vector<64x16xf32>, vector<16x8xf32>, vector<64x8xf32> -> vector<64x8xf32>
    %136 = vector.extract_strided_slice %135 {offsets = [0, 0], sizes = [64, 4], strides = [1, 1]} : vector<64x8xf32> to vector<64x4xf32>
    %137 = vector.extract_strided_slice %135 {offsets = [0, 4], sizes = [64, 4], strides = [1, 1]} : vector<64x8xf32> to vector<64x4xf32>
    %138 = arith.mulf %136, %136 : vector<64x4xf32>
    %cst_91 = arith.constant dense<0.000000e+00> : vector<64xf32>
    %139 = vector.multi_reduction <add>, %138, %cst_91 [1] : vector<64x4xf32> to vector<64xf32>
    %140 = vector.shape_cast %139 : vector<64xf32> to vector<64x1xf32>
    %141 = vector.extract_strided_slice %138 {offsets = [0, 0], sizes = [64, 1], strides = [1, 1]} : vector<64x4xf32> to vector<64x1xf32>
    %cst_92 = arith.constant 2.000000e+00 : f32
    %142 = vector.broadcast %cst_92 : f32 to vector<64x1xf32>
    %143 = arith.mulf %142, %141 : vector<64x1xf32>
    %144 = arith.subf %140, %143 : vector<64x1xf32>
    %c1_93 = arith.constant 1 : index
    %c0_94 = arith.constant 0 : index
    %c0_95 = arith.constant 0 : index
    %145 = vector.load %arg13[%c1_93, %c0_94, %c0_95] : memref<4x1x128xf32, #tpu.memory_space<vmem>>, vector<1x1x128xf32>
    %146 = vector.shape_cast %145 : vector<1x1x128xf32> to vector<1x128xf32>
    %147 = vector.broadcast %144 : vector<64x1xf32> to vector<64x128xf32>
    %148 = vector.broadcast %146 : vector<1x128xf32> to vector<64x128xf32>
    %149 = arith.mulf %147, %148 : vector<64x128xf32>
    %150 = arith.addf %127, %149 : vector<64x128xf32>
    %c1_96 = arith.constant 1 : index
    %c0_97 = arith.constant 0 : index
    %c0_98 = arith.constant 0 : index
    %151 = vector.load %arg7[%c1_96, %c0_97, %c0_98] : memref<4x64x128xf32, #tpu.memory_space<vmem>>, vector<1x64x128xf32>
    %152 = vector.shape_cast %151 : vector<1x64x128xf32> to vector<64x128xf32>
    %153 = arith.addf %150, %152 : vector<64x128xf32>
    %154 = arith.negf %153 : vector<64x128xf32>
    %155 = math.exp %154 : vector<64x128xf32>
    %cst_99 = arith.constant 1.000000e+00 : f32
    %156 = vector.broadcast %cst_99 : f32 to vector<64x128xf32>
    %157 = arith.addf %156, %155 : vector<64x128xf32>
    %158 = arith.divf %156, %157 : vector<64x128xf32>
    %159 = arith.mulf %153, %158 : vector<64x128xf32>
    %160 = arith.truncf %159 : vector<64x128xf32> to vector<64x128xbf16>
    %c1_100 = arith.constant 1 : index
    %c0_101 = arith.constant 0 : index
    %c0_102 = arith.constant 0 : index
    %161 = vector.load %arg14[%c1_100, %c0_101, %c0_102] : memref<4x128x128xbf16, #tpu.memory_space<vmem>>, vector<1x128x128xbf16>
    %162 = vector.shape_cast %161 : vector<1x128x128xbf16> to vector<128x128xbf16>
    %cst_103 = arith.constant dense<0.000000e+00> : vector<64x128xf32>
    %163 = tpu.matmul %160, %162, %cst_103 {dimension_numbers = #tpu.dot_dimension_numbers<[1], [0], [0], [1], [0, 0, 1, 1], [], []>} : vector<64x128xbf16>, vector<128x128xbf16>, vector<64x128xf32> -> vector<64x128xf32>
    %c1_104 = arith.constant 1 : index
    %c0_105 = arith.constant 0 : index
    %c0_106 = arith.constant 0 : index
    %164 = vector.load %arg15[%c1_104, %c0_105, %c0_106] : memref<4x1x128xf32, #tpu.memory_space<vmem>>, vector<1x1x128xf32>
    %165 = vector.shape_cast %164 : vector<1x1x128xf32> to vector<1x128xf32>
    %166 = vector.broadcast %165 : vector<1x128xf32> to vector<64x128xf32>
    %167 = arith.addf %163, %166 : vector<64x128xf32>
    %168 = math.absf %167 : vector<64x128xf32>
    %cst_107 = arith.constant 1.000000e+00 : f32
    %169 = vector.broadcast %cst_107 : f32 to vector<64x128xf32>
    %170 = arith.addf %169, %168 : vector<64x128xf32>
    %171 = arith.divf %167, %170 : vector<64x128xf32>
    %172 = arith.truncf %171 : vector<64x128xf32> to vector<64x128xbf16>
    %c1_108 = arith.constant 1 : index
    %c0_109 = arith.constant 0 : index
    %c0_110 = arith.constant 0 : index
    %173 = vector.load %arg20[%c1_108, %c0_109, %c0_110] : memref<4x128x128xbf16, #tpu.memory_space<vmem>>, vector<1x128x128xbf16>
    %174 = vector.shape_cast %173 : vector<1x128x128xbf16> to vector<128x128xbf16>
    %cst_111 = arith.constant dense<0.000000e+00> : vector<64x128xf32>
    %175 = tpu.matmul %172, %174, %cst_111 {dimension_numbers = #tpu.dot_dimension_numbers<[1], [0], [0], [1], [0, 0, 1, 1], [], []>} : vector<64x128xbf16>, vector<128x128xbf16>, vector<64x128xf32> -> vector<64x128xf32>
    %c1_112 = arith.constant 1 : index
    %c0_113 = arith.constant 0 : index
    %c0_114 = arith.constant 0 : index
    %176 = vector.load %arg21[%c1_112, %c0_113, %c0_114] : memref<4x1x128xf32, #tpu.memory_space<vmem>>, vector<1x1x128xf32>
    %177 = vector.shape_cast %176 : vector<1x1x128xf32> to vector<1x128xf32>
    %178 = vector.broadcast %177 : vector<1x128xf32> to vector<64x128xf32>
    %179 = arith.addf %175, %178 : vector<64x128xf32>
    %180 = arith.negf %179 : vector<64x128xf32>
    %181 = math.exp %180 : vector<64x128xf32>
    %cst_115 = arith.constant 1.000000e+00 : f32
    %182 = vector.broadcast %cst_115 : f32 to vector<64x128xf32>
    %183 = arith.addf %182, %181 : vector<64x128xf32>
    %184 = arith.divf %182, %183 : vector<64x128xf32>
    %185 = arith.mulf %179, %184 : vector<64x128xf32>
    %c1_116 = arith.constant 1 : index
    %c0_117 = arith.constant 0 : index
    %c0_118 = arith.constant 0 : index
    %186 = vector.load %arg22[%c1_116, %c0_117, %c0_118] : memref<4x1x128xf32, #tpu.memory_space<vmem>>, vector<1x1x128xf32>
    %187 = vector.shape_cast %186 : vector<1x1x128xf32> to vector<1x128xf32>
    %188 = vector.broadcast %187 : vector<1x128xf32> to vector<64x128xf32>
    %189 = arith.mulf %185, %188 : vector<64x128xf32>
    %cst_119 = arith.constant dense<0.000000e+00> : vector<64xf32>
    %190 = vector.multi_reduction <add>, %189, %cst_119 [1] : vector<64x128xf32> to vector<64xf32>
    %191 = vector.shape_cast %190 : vector<64xf32> to vector<64x1xf32>
    %192 = vector.broadcast %191 : vector<64x1xf32> to vector<64x4xf32>
    %193 = arith.mulf %137, %192 : vector<64x4xf32>
    %cst_120 = arith.constant dense<0.000000e+00> : vector<8x4xf32>
    %194 = tpu.matmul %3, %193, %cst_120 {dimension_numbers = #tpu.dot_dimension_numbers<[1], [0], [0], [1], [0, 0, 1, 1], [], []>} : vector<8x64xf32>, vector<64x4xf32>, vector<8x4xf32> -> vector<8x4xf32>
    %195 = vector.broadcast %4 : vector<8x1xf32> to vector<8x4xf32>
    %196 = arith.mulf %194, %195 : vector<8x4xf32>
    %197 = arith.addf %90, %196 : vector<8x4xf32>
    %cst_121 = arith.constant dense<0.000000e+00> : vector<8x128xf32>
    %198 = tpu.matmul %2, %172, %cst_121 {dimension_numbers = #tpu.dot_dimension_numbers<[1], [0], [0], [1], [0, 0, 1, 1], [], []>} : vector<8x64xbf16>, vector<64x128xbf16>, vector<8x128xf32> -> vector<8x128xf32>
    %199 = arith.truncf %198 : vector<8x128xf32> to vector<8x128xbf16>
    %200 = tpu.concatenate %119, %199 in 1 : vector<8x128xbf16>, vector<8x128xbf16> -> vector<8x256xbf16>
    %c1_122 = arith.constant 1 : index
    %c0_123 = arith.constant 0 : index
    %c0_124 = arith.constant 0 : index
    %201 = vector.load %arg16[%c1_122, %c0_123, %c0_124] : memref<4x256x128xbf16, #tpu.memory_space<vmem>>, vector<1x256x128xbf16>
    %202 = vector.shape_cast %201 : vector<1x256x128xbf16> to vector<256x128xbf16>
    %cst_125 = arith.constant dense<0.000000e+00> : vector<8x128xf32>
    %203 = tpu.matmul %200, %202, %cst_125 {dimension_numbers = #tpu.dot_dimension_numbers<[1], [0], [0], [1], [0, 0, 1, 1], [], []>} : vector<8x256xbf16>, vector<256x128xbf16>, vector<8x128xf32> -> vector<8x128xf32>
    %c1_126 = arith.constant 1 : index
    %c0_127 = arith.constant 0 : index
    %c0_128 = arith.constant 0 : index
    %204 = vector.load %arg17[%c1_126, %c0_127, %c0_128] : memref<4x1x128xf32, #tpu.memory_space<vmem>>, vector<1x1x128xf32>
    %205 = vector.shape_cast %204 : vector<1x1x128xf32> to vector<1x128xf32>
    %206 = vector.broadcast %205 : vector<1x128xf32> to vector<8x128xf32>
    %207 = arith.addf %203, %206 : vector<8x128xf32>
    %208 = arith.negf %207 : vector<8x128xf32>
    %209 = math.exp %208 : vector<8x128xf32>
    %cst_129 = arith.constant 1.000000e+00 : f32
    %210 = vector.broadcast %cst_129 : f32 to vector<8x128xf32>
    %211 = arith.addf %210, %209 : vector<8x128xf32>
    %212 = arith.divf %210, %211 : vector<8x128xf32>
    %213 = arith.mulf %207, %212 : vector<8x128xf32>
    %214 = arith.truncf %213 : vector<8x128xf32> to vector<8x128xbf16>
    %c1_130 = arith.constant 1 : index
    %c0_131 = arith.constant 0 : index
    %c0_132 = arith.constant 0 : index
    %215 = vector.load %arg18[%c1_130, %c0_131, %c0_132] : memref<4x128x128xbf16, #tpu.memory_space<vmem>>, vector<1x128x128xbf16>
    %216 = vector.shape_cast %215 : vector<1x128x128xbf16> to vector<128x128xbf16>
    %cst_133 = arith.constant dense<0.000000e+00> : vector<8x128xf32>
    %217 = tpu.matmul %214, %216, %cst_133 {dimension_numbers = #tpu.dot_dimension_numbers<[1], [0], [0], [1], [0, 0, 1, 1], [], []>} : vector<8x128xbf16>, vector<128x128xbf16>, vector<8x128xf32> -> vector<8x128xf32>
    %c1_134 = arith.constant 1 : index
    %c0_135 = arith.constant 0 : index
    %c0_136 = arith.constant 0 : index
    %218 = vector.load %arg19[%c1_134, %c0_135, %c0_136] : memref<4x1x128xf32, #tpu.memory_space<vmem>>, vector<1x1x128xf32>
    %219 = vector.shape_cast %218 : vector<1x1x128xf32> to vector<1x128xf32>
    %220 = vector.broadcast %219 : vector<1x128xf32> to vector<8x128xf32>
    %221 = arith.addf %217, %220 : vector<8x128xf32>
    %222 = math.absf %221 : vector<8x128xf32>
    %cst_137 = arith.constant 1.000000e+00 : f32
    %223 = vector.broadcast %cst_137 : f32 to vector<8x128xf32>
    %224 = arith.addf %223, %222 : vector<8x128xf32>
    %225 = arith.divf %221, %224 : vector<8x128xf32>
    %226 = arith.truncf %225 : vector<8x128xf32> to vector<8x128xbf16>
    %c2 = arith.constant 2 : index
    %c0_138 = arith.constant 0 : index
    %c0_139 = arith.constant 0 : index
    %227 = vector.load %arg12[%c2, %c0_138, %c0_139] : memref<4x128x256xbf16, #tpu.memory_space<vmem>>, vector<1x128x256xbf16>
    %228 = vector.shape_cast %227 : vector<1x128x256xbf16> to vector<128x256xbf16>
    %cst_140 = arith.constant dense<0.000000e+00> : vector<8x256xf32>
    %229 = tpu.matmul %226, %228, %cst_140 {dimension_numbers = #tpu.dot_dimension_numbers<[1], [0], [0], [1], [0, 0, 1, 1], [], []>} : vector<8x128xbf16>, vector<128x256xbf16>, vector<8x256xf32> -> vector<8x256xf32>
    %230 = vector.extract_strided_slice %229 {offsets = [0, 0], sizes = [8, 128], strides = [1, 1]} : vector<8x256xf32> to vector<8x128xf32>
    %231 = vector.extract_strided_slice %229 {offsets = [0, 128], sizes = [8, 128], strides = [1, 1]} : vector<8x256xf32> to vector<8x128xf32>
    %232 = tpu.concatenate %230, %231 in 0 : vector<8x128xf32>, vector<8x128xf32> -> vector<16x128xf32>
    %233 = arith.truncf %232 : vector<16x128xf32> to vector<16x128xbf16>
    %cst_141 = arith.constant dense<0.000000e+00> : vector<64x128xf32>
    %234 = tpu.matmul %0, %233, %cst_141 {dimension_numbers = #tpu.dot_dimension_numbers<[1], [0], [0], [1], [0, 0, 1, 1], [], []>} : vector<64x16xbf16>, vector<16x128xbf16>, vector<64x128xf32> -> vector<64x128xf32>
    %c2_142 = arith.constant 2 : index
    %c0_143 = arith.constant 0 : index
    %c0_144 = arith.constant 0 : index
    %235 = vector.load %arg23[%c2_142, %c0_143, %c0_144] : memref<4x4x8xf32, #tpu.memory_space<vmem>>, vector<1x4x8xf32>
    %236 = vector.shape_cast %235 : vector<1x4x8xf32> to vector<4x8xf32>
    %cst_145 = arith.constant dense<0.000000e+00> : vector<8x8xf32>
    %237 = tpu.matmul %197, %236, %cst_145 {dimension_numbers = #tpu.dot_dimension_numbers<[1], [0], [0], [1], [0, 0, 1, 1], [], []>} : vector<8x4xf32>, vector<4x8xf32>, vector<8x8xf32> -> vector<8x8xf32>
    %c2_146 = arith.constant 2 : index
    %c0_147 = arith.constant 0 : index
    %c0_148 = arith.constant 0 : index
    %238 = vector.load %arg24[%c2_146, %c0_147, %c0_148] : memref<4x4x8xf32, #tpu.memory_space<vmem>>, vector<1x4x8xf32>
    %239 = vector.shape_cast %238 : vector<1x4x8xf32> to vector<4x8xf32>
    %cst_149 = arith.constant dense<0.000000e+00> : vector<8x8xf32>
    %240 = tpu.matmul %197, %239, %cst_149 {dimension_numbers = #tpu.dot_dimension_numbers<[1], [0], [0], [1], [0, 0, 1, 1], [], []>} : vector<8x4xf32>, vector<4x8xf32>, vector<8x8xf32> -> vector<8x8xf32>
    %241 = tpu.concatenate %237, %240 in 0 : vector<8x8xf32>, vector<8x8xf32> -> vector<16x8xf32>
    %cst_150 = arith.constant dense<0.000000e+00> : vector<64x8xf32>
    %242 = tpu.matmul %1, %241, %cst_150 {dimension_numbers = #tpu.dot_dimension_numbers<[1], [0], [0], [1], [0, 0, 1, 1], [], []>} : vector<64x16xf32>, vector<16x8xf32>, vector<64x8xf32> -> vector<64x8xf32>
    %243 = vector.extract_strided_slice %242 {offsets = [0, 0], sizes = [64, 4], strides = [1, 1]} : vector<64x8xf32> to vector<64x4xf32>
    %244 = vector.extract_strided_slice %242 {offsets = [0, 4], sizes = [64, 4], strides = [1, 1]} : vector<64x8xf32> to vector<64x4xf32>
    %245 = arith.mulf %243, %243 : vector<64x4xf32>
    %cst_151 = arith.constant dense<0.000000e+00> : vector<64xf32>
    %246 = vector.multi_reduction <add>, %245, %cst_151 [1] : vector<64x4xf32> to vector<64xf32>
    %247 = vector.shape_cast %246 : vector<64xf32> to vector<64x1xf32>
    %248 = vector.extract_strided_slice %245 {offsets = [0, 0], sizes = [64, 1], strides = [1, 1]} : vector<64x4xf32> to vector<64x1xf32>
    %cst_152 = arith.constant 2.000000e+00 : f32
    %249 = vector.broadcast %cst_152 : f32 to vector<64x1xf32>
    %250 = arith.mulf %249, %248 : vector<64x1xf32>
    %251 = arith.subf %247, %250 : vector<64x1xf32>
    %c2_153 = arith.constant 2 : index
    %c0_154 = arith.constant 0 : index
    %c0_155 = arith.constant 0 : index
    %252 = vector.load %arg13[%c2_153, %c0_154, %c0_155] : memref<4x1x128xf32, #tpu.memory_space<vmem>>, vector<1x1x128xf32>
    %253 = vector.shape_cast %252 : vector<1x1x128xf32> to vector<1x128xf32>
    %254 = vector.broadcast %251 : vector<64x1xf32> to vector<64x128xf32>
    %255 = vector.broadcast %253 : vector<1x128xf32> to vector<64x128xf32>
    %256 = arith.mulf %254, %255 : vector<64x128xf32>
    %257 = arith.addf %234, %256 : vector<64x128xf32>
    %c2_156 = arith.constant 2 : index
    %c0_157 = arith.constant 0 : index
    %c0_158 = arith.constant 0 : index
    %258 = vector.load %arg7[%c2_156, %c0_157, %c0_158] : memref<4x64x128xf32, #tpu.memory_space<vmem>>, vector<1x64x128xf32>
    %259 = vector.shape_cast %258 : vector<1x64x128xf32> to vector<64x128xf32>
    %260 = arith.addf %257, %259 : vector<64x128xf32>
    %261 = arith.negf %260 : vector<64x128xf32>
    %262 = math.exp %261 : vector<64x128xf32>
    %cst_159 = arith.constant 1.000000e+00 : f32
    %263 = vector.broadcast %cst_159 : f32 to vector<64x128xf32>
    %264 = arith.addf %263, %262 : vector<64x128xf32>
    %265 = arith.divf %263, %264 : vector<64x128xf32>
    %266 = arith.mulf %260, %265 : vector<64x128xf32>
    %267 = arith.truncf %266 : vector<64x128xf32> to vector<64x128xbf16>
    %c2_160 = arith.constant 2 : index
    %c0_161 = arith.constant 0 : index
    %c0_162 = arith.constant 0 : index
    %268 = vector.load %arg14[%c2_160, %c0_161, %c0_162] : memref<4x128x128xbf16, #tpu.memory_space<vmem>>, vector<1x128x128xbf16>
    %269 = vector.shape_cast %268 : vector<1x128x128xbf16> to vector<128x128xbf16>
    %cst_163 = arith.constant dense<0.000000e+00> : vector<64x128xf32>
    %270 = tpu.matmul %267, %269, %cst_163 {dimension_numbers = #tpu.dot_dimension_numbers<[1], [0], [0], [1], [0, 0, 1, 1], [], []>} : vector<64x128xbf16>, vector<128x128xbf16>, vector<64x128xf32> -> vector<64x128xf32>
    %c2_164 = arith.constant 2 : index
    %c0_165 = arith.constant 0 : index
    %c0_166 = arith.constant 0 : index
    %271 = vector.load %arg15[%c2_164, %c0_165, %c0_166] : memref<4x1x128xf32, #tpu.memory_space<vmem>>, vector<1x1x128xf32>
    %272 = vector.shape_cast %271 : vector<1x1x128xf32> to vector<1x128xf32>
    %273 = vector.broadcast %272 : vector<1x128xf32> to vector<64x128xf32>
    %274 = arith.addf %270, %273 : vector<64x128xf32>
    %275 = math.absf %274 : vector<64x128xf32>
    %cst_167 = arith.constant 1.000000e+00 : f32
    %276 = vector.broadcast %cst_167 : f32 to vector<64x128xf32>
    %277 = arith.addf %276, %275 : vector<64x128xf32>
    %278 = arith.divf %274, %277 : vector<64x128xf32>
    %279 = arith.truncf %278 : vector<64x128xf32> to vector<64x128xbf16>
    %c2_168 = arith.constant 2 : index
    %c0_169 = arith.constant 0 : index
    %c0_170 = arith.constant 0 : index
    %280 = vector.load %arg20[%c2_168, %c0_169, %c0_170] : memref<4x128x128xbf16, #tpu.memory_space<vmem>>, vector<1x128x128xbf16>
    %281 = vector.shape_cast %280 : vector<1x128x128xbf16> to vector<128x128xbf16>
    %cst_171 = arith.constant dense<0.000000e+00> : vector<64x128xf32>
    %282 = tpu.matmul %279, %281, %cst_171 {dimension_numbers = #tpu.dot_dimension_numbers<[1], [0], [0], [1], [0, 0, 1, 1], [], []>} : vector<64x128xbf16>, vector<128x128xbf16>, vector<64x128xf32> -> vector<64x128xf32>
    %c2_172 = arith.constant 2 : index
    %c0_173 = arith.constant 0 : index
    %c0_174 = arith.constant 0 : index
    %283 = vector.load %arg21[%c2_172, %c0_173, %c0_174] : memref<4x1x128xf32, #tpu.memory_space<vmem>>, vector<1x1x128xf32>
    %284 = vector.shape_cast %283 : vector<1x1x128xf32> to vector<1x128xf32>
    %285 = vector.broadcast %284 : vector<1x128xf32> to vector<64x128xf32>
    %286 = arith.addf %282, %285 : vector<64x128xf32>
    %287 = arith.negf %286 : vector<64x128xf32>
    %288 = math.exp %287 : vector<64x128xf32>
    %cst_175 = arith.constant 1.000000e+00 : f32
    %289 = vector.broadcast %cst_175 : f32 to vector<64x128xf32>
    %290 = arith.addf %289, %288 : vector<64x128xf32>
    %291 = arith.divf %289, %290 : vector<64x128xf32>
    %292 = arith.mulf %286, %291 : vector<64x128xf32>
    %c2_176 = arith.constant 2 : index
    %c0_177 = arith.constant 0 : index
    %c0_178 = arith.constant 0 : index
    %293 = vector.load %arg22[%c2_176, %c0_177, %c0_178] : memref<4x1x128xf32, #tpu.memory_space<vmem>>, vector<1x1x128xf32>
    %294 = vector.shape_cast %293 : vector<1x1x128xf32> to vector<1x128xf32>
    %295 = vector.broadcast %294 : vector<1x128xf32> to vector<64x128xf32>
    %296 = arith.mulf %292, %295 : vector<64x128xf32>
    %cst_179 = arith.constant dense<0.000000e+00> : vector<64xf32>
    %297 = vector.multi_reduction <add>, %296, %cst_179 [1] : vector<64x128xf32> to vector<64xf32>
    %298 = vector.shape_cast %297 : vector<64xf32> to vector<64x1xf32>
    %299 = vector.broadcast %298 : vector<64x1xf32> to vector<64x4xf32>
    %300 = arith.mulf %244, %299 : vector<64x4xf32>
    %cst_180 = arith.constant dense<0.000000e+00> : vector<8x4xf32>
    %301 = tpu.matmul %3, %300, %cst_180 {dimension_numbers = #tpu.dot_dimension_numbers<[1], [0], [0], [1], [0, 0, 1, 1], [], []>} : vector<8x64xf32>, vector<64x4xf32>, vector<8x4xf32> -> vector<8x4xf32>
    %302 = vector.broadcast %4 : vector<8x1xf32> to vector<8x4xf32>
    %303 = arith.mulf %301, %302 : vector<8x4xf32>
    %304 = arith.addf %197, %303 : vector<8x4xf32>
    %cst_181 = arith.constant dense<0.000000e+00> : vector<8x128xf32>
    %305 = tpu.matmul %2, %279, %cst_181 {dimension_numbers = #tpu.dot_dimension_numbers<[1], [0], [0], [1], [0, 0, 1, 1], [], []>} : vector<8x64xbf16>, vector<64x128xbf16>, vector<8x128xf32> -> vector<8x128xf32>
    %306 = arith.truncf %305 : vector<8x128xf32> to vector<8x128xbf16>
    %307 = tpu.concatenate %226, %306 in 1 : vector<8x128xbf16>, vector<8x128xbf16> -> vector<8x256xbf16>
    %c2_182 = arith.constant 2 : index
    %c0_183 = arith.constant 0 : index
    %c0_184 = arith.constant 0 : index
    %308 = vector.load %arg16[%c2_182, %c0_183, %c0_184] : memref<4x256x128xbf16, #tpu.memory_space<vmem>>, vector<1x256x128xbf16>
    %309 = vector.shape_cast %308 : vector<1x256x128xbf16> to vector<256x128xbf16>
    %cst_185 = arith.constant dense<0.000000e+00> : vector<8x128xf32>
    %310 = tpu.matmul %307, %309, %cst_185 {dimension_numbers = #tpu.dot_dimension_numbers<[1], [0], [0], [1], [0, 0, 1, 1], [], []>} : vector<8x256xbf16>, vector<256x128xbf16>, vector<8x128xf32> -> vector<8x128xf32>
    %c2_186 = arith.constant 2 : index
    %c0_187 = arith.constant 0 : index
    %c0_188 = arith.constant 0 : index
    %311 = vector.load %arg17[%c2_186, %c0_187, %c0_188] : memref<4x1x128xf32, #tpu.memory_space<vmem>>, vector<1x1x128xf32>
    %312 = vector.shape_cast %311 : vector<1x1x128xf32> to vector<1x128xf32>
    %313 = vector.broadcast %312 : vector<1x128xf32> to vector<8x128xf32>
    %314 = arith.addf %310, %313 : vector<8x128xf32>
    %315 = arith.negf %314 : vector<8x128xf32>
    %316 = math.exp %315 : vector<8x128xf32>
    %cst_189 = arith.constant 1.000000e+00 : f32
    %317 = vector.broadcast %cst_189 : f32 to vector<8x128xf32>
    %318 = arith.addf %317, %316 : vector<8x128xf32>
    %319 = arith.divf %317, %318 : vector<8x128xf32>
    %320 = arith.mulf %314, %319 : vector<8x128xf32>
    %321 = arith.truncf %320 : vector<8x128xf32> to vector<8x128xbf16>
    %c2_190 = arith.constant 2 : index
    %c0_191 = arith.constant 0 : index
    %c0_192 = arith.constant 0 : index
    %322 = vector.load %arg18[%c2_190, %c0_191, %c0_192] : memref<4x128x128xbf16, #tpu.memory_space<vmem>>, vector<1x128x128xbf16>
    %323 = vector.shape_cast %322 : vector<1x128x128xbf16> to vector<128x128xbf16>
    %cst_193 = arith.constant dense<0.000000e+00> : vector<8x128xf32>
    %324 = tpu.matmul %321, %323, %cst_193 {dimension_numbers = #tpu.dot_dimension_numbers<[1], [0], [0], [1], [0, 0, 1, 1], [], []>} : vector<8x128xbf16>, vector<128x128xbf16>, vector<8x128xf32> -> vector<8x128xf32>
    %c2_194 = arith.constant 2 : index
    %c0_195 = arith.constant 0 : index
    %c0_196 = arith.constant 0 : index
    %325 = vector.load %arg19[%c2_194, %c0_195, %c0_196] : memref<4x1x128xf32, #tpu.memory_space<vmem>>, vector<1x1x128xf32>
    %326 = vector.shape_cast %325 : vector<1x1x128xf32> to vector<1x128xf32>
    %327 = vector.broadcast %326 : vector<1x128xf32> to vector<8x128xf32>
    %328 = arith.addf %324, %327 : vector<8x128xf32>
    %329 = math.absf %328 : vector<8x128xf32>
    %cst_197 = arith.constant 1.000000e+00 : f32
    %330 = vector.broadcast %cst_197 : f32 to vector<8x128xf32>
    %331 = arith.addf %330, %329 : vector<8x128xf32>
    %332 = arith.divf %328, %331 : vector<8x128xf32>
    %333 = arith.truncf %332 : vector<8x128xf32> to vector<8x128xbf16>
    %c3 = arith.constant 3 : index
    %c0_198 = arith.constant 0 : index
    %c0_199 = arith.constant 0 : index
    %334 = vector.load %arg12[%c3, %c0_198, %c0_199] : memref<4x128x256xbf16, #tpu.memory_space<vmem>>, vector<1x128x256xbf16>
    %335 = vector.shape_cast %334 : vector<1x128x256xbf16> to vector<128x256xbf16>
    %cst_200 = arith.constant dense<0.000000e+00> : vector<8x256xf32>
    %336 = tpu.matmul %333, %335, %cst_200 {dimension_numbers = #tpu.dot_dimension_numbers<[1], [0], [0], [1], [0, 0, 1, 1], [], []>} : vector<8x128xbf16>, vector<128x256xbf16>, vector<8x256xf32> -> vector<8x256xf32>
    %337 = vector.extract_strided_slice %336 {offsets = [0, 0], sizes = [8, 128], strides = [1, 1]} : vector<8x256xf32> to vector<8x128xf32>
    %338 = vector.extract_strided_slice %336 {offsets = [0, 128], sizes = [8, 128], strides = [1, 1]} : vector<8x256xf32> to vector<8x128xf32>
    %339 = tpu.concatenate %337, %338 in 0 : vector<8x128xf32>, vector<8x128xf32> -> vector<16x128xf32>
    %340 = arith.truncf %339 : vector<16x128xf32> to vector<16x128xbf16>
    %cst_201 = arith.constant dense<0.000000e+00> : vector<64x128xf32>
    %341 = tpu.matmul %0, %340, %cst_201 {dimension_numbers = #tpu.dot_dimension_numbers<[1], [0], [0], [1], [0, 0, 1, 1], [], []>} : vector<64x16xbf16>, vector<16x128xbf16>, vector<64x128xf32> -> vector<64x128xf32>
    %c3_202 = arith.constant 3 : index
    %c0_203 = arith.constant 0 : index
    %c0_204 = arith.constant 0 : index
    %342 = vector.load %arg23[%c3_202, %c0_203, %c0_204] : memref<4x4x8xf32, #tpu.memory_space<vmem>>, vector<1x4x8xf32>
    %343 = vector.shape_cast %342 : vector<1x4x8xf32> to vector<4x8xf32>
    %cst_205 = arith.constant dense<0.000000e+00> : vector<8x8xf32>
    %344 = tpu.matmul %304, %343, %cst_205 {dimension_numbers = #tpu.dot_dimension_numbers<[1], [0], [0], [1], [0, 0, 1, 1], [], []>} : vector<8x4xf32>, vector<4x8xf32>, vector<8x8xf32> -> vector<8x8xf32>
    %c3_206 = arith.constant 3 : index
    %c0_207 = arith.constant 0 : index
    %c0_208 = arith.constant 0 : index
    %345 = vector.load %arg24[%c3_206, %c0_207, %c0_208] : memref<4x4x8xf32, #tpu.memory_space<vmem>>, vector<1x4x8xf32>
    %346 = vector.shape_cast %345 : vector<1x4x8xf32> to vector<4x8xf32>
    %cst_209 = arith.constant dense<0.000000e+00> : vector<8x8xf32>
    %347 = tpu.matmul %304, %346, %cst_209 {dimension_numbers = #tpu.dot_dimension_numbers<[1], [0], [0], [1], [0, 0, 1, 1], [], []>} : vector<8x4xf32>, vector<4x8xf32>, vector<8x8xf32> -> vector<8x8xf32>
    %348 = tpu.concatenate %344, %347 in 0 : vector<8x8xf32>, vector<8x8xf32> -> vector<16x8xf32>
    %cst_210 = arith.constant dense<0.000000e+00> : vector<64x8xf32>
    %349 = tpu.matmul %1, %348, %cst_210 {dimension_numbers = #tpu.dot_dimension_numbers<[1], [0], [0], [1], [0, 0, 1, 1], [], []>} : vector<64x16xf32>, vector<16x8xf32>, vector<64x8xf32> -> vector<64x8xf32>
    %350 = vector.extract_strided_slice %349 {offsets = [0, 0], sizes = [64, 4], strides = [1, 1]} : vector<64x8xf32> to vector<64x4xf32>
    %351 = vector.extract_strided_slice %349 {offsets = [0, 4], sizes = [64, 4], strides = [1, 1]} : vector<64x8xf32> to vector<64x4xf32>
    %352 = arith.mulf %350, %350 : vector<64x4xf32>
    %cst_211 = arith.constant dense<0.000000e+00> : vector<64xf32>
    %353 = vector.multi_reduction <add>, %352, %cst_211 [1] : vector<64x4xf32> to vector<64xf32>
    %354 = vector.shape_cast %353 : vector<64xf32> to vector<64x1xf32>
    %355 = vector.extract_strided_slice %352 {offsets = [0, 0], sizes = [64, 1], strides = [1, 1]} : vector<64x4xf32> to vector<64x1xf32>
    %cst_212 = arith.constant 2.000000e+00 : f32
    %356 = vector.broadcast %cst_212 : f32 to vector<64x1xf32>
    %357 = arith.mulf %356, %355 : vector<64x1xf32>
    %358 = arith.subf %354, %357 : vector<64x1xf32>
    %c3_213 = arith.constant 3 : index
    %c0_214 = arith.constant 0 : index
    %c0_215 = arith.constant 0 : index
    %359 = vector.load %arg13[%c3_213, %c0_214, %c0_215] : memref<4x1x128xf32, #tpu.memory_space<vmem>>, vector<1x1x128xf32>
    %360 = vector.shape_cast %359 : vector<1x1x128xf32> to vector<1x128xf32>
    %361 = vector.broadcast %358 : vector<64x1xf32> to vector<64x128xf32>
    %362 = vector.broadcast %360 : vector<1x128xf32> to vector<64x128xf32>
    %363 = arith.mulf %361, %362 : vector<64x128xf32>
    %364 = arith.addf %341, %363 : vector<64x128xf32>
    %c3_216 = arith.constant 3 : index
    %c0_217 = arith.constant 0 : index
    %c0_218 = arith.constant 0 : index
    %365 = vector.load %arg7[%c3_216, %c0_217, %c0_218] : memref<4x64x128xf32, #tpu.memory_space<vmem>>, vector<1x64x128xf32>
    %366 = vector.shape_cast %365 : vector<1x64x128xf32> to vector<64x128xf32>
    %367 = arith.addf %364, %366 : vector<64x128xf32>
    %368 = arith.negf %367 : vector<64x128xf32>
    %369 = math.exp %368 : vector<64x128xf32>
    %cst_219 = arith.constant 1.000000e+00 : f32
    %370 = vector.broadcast %cst_219 : f32 to vector<64x128xf32>
    %371 = arith.addf %370, %369 : vector<64x128xf32>
    %372 = arith.divf %370, %371 : vector<64x128xf32>
    %373 = arith.mulf %367, %372 : vector<64x128xf32>
    %374 = arith.truncf %373 : vector<64x128xf32> to vector<64x128xbf16>
    %c3_220 = arith.constant 3 : index
    %c0_221 = arith.constant 0 : index
    %c0_222 = arith.constant 0 : index
    %375 = vector.load %arg14[%c3_220, %c0_221, %c0_222] : memref<4x128x128xbf16, #tpu.memory_space<vmem>>, vector<1x128x128xbf16>
    %376 = vector.shape_cast %375 : vector<1x128x128xbf16> to vector<128x128xbf16>
    %cst_223 = arith.constant dense<0.000000e+00> : vector<64x128xf32>
    %377 = tpu.matmul %374, %376, %cst_223 {dimension_numbers = #tpu.dot_dimension_numbers<[1], [0], [0], [1], [0, 0, 1, 1], [], []>} : vector<64x128xbf16>, vector<128x128xbf16>, vector<64x128xf32> -> vector<64x128xf32>
    %c3_224 = arith.constant 3 : index
    %c0_225 = arith.constant 0 : index
    %c0_226 = arith.constant 0 : index
    %378 = vector.load %arg15[%c3_224, %c0_225, %c0_226] : memref<4x1x128xf32, #tpu.memory_space<vmem>>, vector<1x1x128xf32>
    %379 = vector.shape_cast %378 : vector<1x1x128xf32> to vector<1x128xf32>
    %380 = vector.broadcast %379 : vector<1x128xf32> to vector<64x128xf32>
    %381 = arith.addf %377, %380 : vector<64x128xf32>
    %382 = math.absf %381 : vector<64x128xf32>
    %cst_227 = arith.constant 1.000000e+00 : f32
    %383 = vector.broadcast %cst_227 : f32 to vector<64x128xf32>
    %384 = arith.addf %383, %382 : vector<64x128xf32>
    %385 = arith.divf %381, %384 : vector<64x128xf32>
    %386 = arith.truncf %385 : vector<64x128xf32> to vector<64x128xbf16>
    %c3_228 = arith.constant 3 : index
    %c0_229 = arith.constant 0 : index
    %c0_230 = arith.constant 0 : index
    %387 = vector.load %arg20[%c3_228, %c0_229, %c0_230] : memref<4x128x128xbf16, #tpu.memory_space<vmem>>, vector<1x128x128xbf16>
    %388 = vector.shape_cast %387 : vector<1x128x128xbf16> to vector<128x128xbf16>
    %cst_231 = arith.constant dense<0.000000e+00> : vector<64x128xf32>
    %389 = tpu.matmul %386, %388, %cst_231 {dimension_numbers = #tpu.dot_dimension_numbers<[1], [0], [0], [1], [0, 0, 1, 1], [], []>} : vector<64x128xbf16>, vector<128x128xbf16>, vector<64x128xf32> -> vector<64x128xf32>
    %c3_232 = arith.constant 3 : index
    %c0_233 = arith.constant 0 : index
    %c0_234 = arith.constant 0 : index
    %390 = vector.load %arg21[%c3_232, %c0_233, %c0_234] : memref<4x1x128xf32, #tpu.memory_space<vmem>>, vector<1x1x128xf32>
    %391 = vector.shape_cast %390 : vector<1x1x128xf32> to vector<1x128xf32>
    %392 = vector.broadcast %391 : vector<1x128xf32> to vector<64x128xf32>
    %393 = arith.addf %389, %392 : vector<64x128xf32>
    %394 = arith.negf %393 : vector<64x128xf32>
    %395 = math.exp %394 : vector<64x128xf32>
    %cst_235 = arith.constant 1.000000e+00 : f32
    %396 = vector.broadcast %cst_235 : f32 to vector<64x128xf32>
    %397 = arith.addf %396, %395 : vector<64x128xf32>
    %398 = arith.divf %396, %397 : vector<64x128xf32>
    %399 = arith.mulf %393, %398 : vector<64x128xf32>
    %c3_236 = arith.constant 3 : index
    %c0_237 = arith.constant 0 : index
    %c0_238 = arith.constant 0 : index
    %400 = vector.load %arg22[%c3_236, %c0_237, %c0_238] : memref<4x1x128xf32, #tpu.memory_space<vmem>>, vector<1x1x128xf32>
    %401 = vector.shape_cast %400 : vector<1x1x128xf32> to vector<1x128xf32>
    %402 = vector.broadcast %401 : vector<1x128xf32> to vector<64x128xf32>
    %403 = arith.mulf %399, %402 : vector<64x128xf32>
    %cst_239 = arith.constant dense<0.000000e+00> : vector<64xf32>
    %404 = vector.multi_reduction <add>, %403, %cst_239 [1] : vector<64x128xf32> to vector<64xf32>
    %405 = vector.shape_cast %404 : vector<64xf32> to vector<64x1xf32>
    %406 = vector.broadcast %405 : vector<64x1xf32> to vector<64x4xf32>
    %407 = arith.mulf %351, %406 : vector<64x4xf32>
    %cst_240 = arith.constant dense<0.000000e+00> : vector<8x4xf32>
    %408 = tpu.matmul %3, %407, %cst_240 {dimension_numbers = #tpu.dot_dimension_numbers<[1], [0], [0], [1], [0, 0, 1, 1], [], []>} : vector<8x64xf32>, vector<64x4xf32>, vector<8x4xf32> -> vector<8x4xf32>
    %409 = vector.broadcast %4 : vector<8x1xf32> to vector<8x4xf32>
    %410 = arith.mulf %408, %409 : vector<8x4xf32>
    %411 = arith.addf %304, %410 : vector<8x4xf32>
    %cst_241 = arith.constant dense<0.000000e+00> : vector<8x128xf32>
    %412 = tpu.matmul %2, %386, %cst_241 {dimension_numbers = #tpu.dot_dimension_numbers<[1], [0], [0], [1], [0, 0, 1, 1], [], []>} : vector<8x64xbf16>, vector<64x128xbf16>, vector<8x128xf32> -> vector<8x128xf32>
    %413 = arith.truncf %412 : vector<8x128xf32> to vector<8x128xbf16>
    %414 = tpu.concatenate %333, %413 in 1 : vector<8x128xbf16>, vector<8x128xbf16> -> vector<8x256xbf16>
    %c3_242 = arith.constant 3 : index
    %c0_243 = arith.constant 0 : index
    %c0_244 = arith.constant 0 : index
    %415 = vector.load %arg16[%c3_242, %c0_243, %c0_244] : memref<4x256x128xbf16, #tpu.memory_space<vmem>>, vector<1x256x128xbf16>
    %416 = vector.shape_cast %415 : vector<1x256x128xbf16> to vector<256x128xbf16>
    %cst_245 = arith.constant dense<0.000000e+00> : vector<8x128xf32>
    %417 = tpu.matmul %414, %416, %cst_245 {dimension_numbers = #tpu.dot_dimension_numbers<[1], [0], [0], [1], [0, 0, 1, 1], [], []>} : vector<8x256xbf16>, vector<256x128xbf16>, vector<8x128xf32> -> vector<8x128xf32>
    %c3_246 = arith.constant 3 : index
    %c0_247 = arith.constant 0 : index
    %c0_248 = arith.constant 0 : index
    %418 = vector.load %arg17[%c3_246, %c0_247, %c0_248] : memref<4x1x128xf32, #tpu.memory_space<vmem>>, vector<1x1x128xf32>
    %419 = vector.shape_cast %418 : vector<1x1x128xf32> to vector<1x128xf32>
    %420 = vector.broadcast %419 : vector<1x128xf32> to vector<8x128xf32>
    %421 = arith.addf %417, %420 : vector<8x128xf32>
    %422 = arith.negf %421 : vector<8x128xf32>
    %423 = math.exp %422 : vector<8x128xf32>
    %cst_249 = arith.constant 1.000000e+00 : f32
    %424 = vector.broadcast %cst_249 : f32 to vector<8x128xf32>
    %425 = arith.addf %424, %423 : vector<8x128xf32>
    %426 = arith.divf %424, %425 : vector<8x128xf32>
    %427 = arith.mulf %421, %426 : vector<8x128xf32>
    %428 = arith.truncf %427 : vector<8x128xf32> to vector<8x128xbf16>
    %c3_250 = arith.constant 3 : index
    %c0_251 = arith.constant 0 : index
    %c0_252 = arith.constant 0 : index
    %429 = vector.load %arg18[%c3_250, %c0_251, %c0_252] : memref<4x128x128xbf16, #tpu.memory_space<vmem>>, vector<1x128x128xbf16>
    %430 = vector.shape_cast %429 : vector<1x128x128xbf16> to vector<128x128xbf16>
    %cst_253 = arith.constant dense<0.000000e+00> : vector<8x128xf32>
    %431 = tpu.matmul %428, %430, %cst_253 {dimension_numbers = #tpu.dot_dimension_numbers<[1], [0], [0], [1], [0, 0, 1, 1], [], []>} : vector<8x128xbf16>, vector<128x128xbf16>, vector<8x128xf32> -> vector<8x128xf32>
    %c3_254 = arith.constant 3 : index
    %c0_255 = arith.constant 0 : index
    %c0_256 = arith.constant 0 : index
    %432 = vector.load %arg19[%c3_254, %c0_255, %c0_256] : memref<4x1x128xf32, #tpu.memory_space<vmem>>, vector<1x1x128xf32>
    %433 = vector.shape_cast %432 : vector<1x1x128xf32> to vector<1x128xf32>
    %434 = vector.broadcast %433 : vector<1x128xf32> to vector<8x128xf32>
    %435 = arith.addf %431, %434 : vector<8x128xf32>
    %436 = math.absf %435 : vector<8x128xf32>
    %cst_257 = arith.constant 1.000000e+00 : f32
    %437 = vector.broadcast %cst_257 : f32 to vector<8x128xf32>
    %438 = arith.addf %437, %436 : vector<8x128xf32>
    %439 = arith.divf %435, %438 : vector<8x128xf32>
    %440 = arith.truncf %439 : vector<8x128xf32> to vector<8x128xbf16>
    %c0_258 = arith.constant 0 : index
    %c0_259 = arith.constant 0 : index
    %441 = vector.load %arg10[%c0_258, %c0_259] : memref<128x128xbf16, #tpu.memory_space<vmem>>, vector<128x128xbf16>
    %cst_260 = arith.constant dense<0.000000e+00> : vector<8x128xf32>
    %442 = tpu.matmul %440, %441, %cst_260 {dimension_numbers = #tpu.dot_dimension_numbers<[1], [0], [0], [1], [0, 0, 1, 1], [], []>} : vector<8x128xbf16>, vector<128x128xbf16>, vector<8x128xf32> -> vector<8x128xf32>
    %c0_261 = arith.constant 0 : index
    %c0_262 = arith.constant 0 : index
    %443 = vector.load %arg11[%c0_261, %c0_262] : memref<1x128xf32, #tpu.memory_space<vmem>>, vector<1x128xf32>
    %444 = vector.broadcast %443 : vector<1x128xf32> to vector<8x128xf32>
    %445 = arith.addf %442, %444 : vector<8x128xf32>
    %c0_263 = arith.constant 0 : index
    %c0_264 = arith.constant 0 : index
    %446 = vector.load %arg25[%c0_263, %c0_264] : memref<8x128xf32, #tpu.memory_space<vmem>>, vector<8x128xf32>
    tpu.vector_store %arg25[%c0_263, %c0_264], %445 {strides = array<i32>} : memref<8x128xf32, #tpu.memory_space<vmem>>, vector<8x128xf32>,
    %cst_265 = arith.constant 0.000000e+00 : f32
    %447 = vector.broadcast %cst_265 : f32 to vector<8x124xf32>
    %448 = tpu.concatenate %411, %447 in 1 : vector<8x4xf32>, vector<8x124xf32> -> vector<8x128xf32>
    %c0_266 = arith.constant 0 : index
    %c0_267 = arith.constant 0 : index
    %449 = vector.load %arg26[%c0_266, %c0_267] : memref<8x128xf32, #tpu.memory_space<vmem>>, vector<8x128xf32>
    tpu.vector_store %arg26[%c0_266, %c0_267], %448 {strides = array<i32>} : memref<8x128xf32, #tpu.memory_space<vmem>>, vector<8x128xf32>,
    return
  }
}

</mosaic_0001>

<bundles_post_ra>
// kernel: legnn_forward.1
= control target key start
LH: loop header
LB: loop body
LE: loop exit
PB: predicated region body
PF: predicated region fallthrough
CT: control target
= control target key end

     0   :  { %s9763_s0 = inlined_call_operand.vmem [shape: bf16[64,16], index: 0, kind: input, shape index: {}]   ;;  %s9764_s1 = inlined_call_operand.vmem [shape: f32[64,16], index: 1, kind: input, shape index: {}]   ;;  %s9765_s2 = inlined_call_operand.vmem [shape: bf16[8,64], index: 2, kind: input, shape index: {}]   ;;  %s9766_s3 = inlined_call_operand.vmem [shape: f32[8,64], index: 3, kind: input, shape index: {}]   ;;  %s9767_s4 = inlined_call_operand.vmem [shape: f32[8,1], index: 4, kind: input, shape index: {}]   ;;  %s9768_s5 = inlined_call_operand.vmem [shape: f32[8,4], index: 5, kind: input, shape index: {}]   ;;  %s9769_s6 = inlined_call_operand.vmem [shape: f32[8,4], index: 6, kind: input, shape index: {}]   ;;  %s9770_s7 = inlined_call_operand.hbm [shape: f32[4,64,128], index: 7, kind: input, shape index: {}]   ;;  %s9771_s8 = inlined_call_operand.vmem [shape: f32[4,128], index: 8, kind: input, shape index: {}]   ;;  %s9772_s9 = inlined_call_operand.hbm [shape: f32[1,128], index: 9, kind: input, shape index: {}]   ;;  %s9773_s10 = inlined_call_operand.vmem [shape: bf16[128,128], index: 10, kind: input, shape index: {}]   ;;  %s9774_s11 = inlined_call_operand.hbm [shape: f32[1,128], index: 11, kind: input, shape index: {}]   ;;  %s9775_s12 = inlined_call_operand.hbm [shape: bf16[4,128,256], index: 12, kind: input, shape index: {}]   ;;  %s9776_s13 = inlined_call_operand.vmem [shape: f32[4,1,128], index: 13, kind: input, shape index: {}]   ;;  %s9777_s14 = inlined_call_operand.hbm [shape: bf16[4,128,128], index: 14, kind: input, shape index: {}]   ;;  %s9778_s15 = inlined_call_operand.vmem [shape: f32[4,1,128], index: 15, kind: input, shape index: {}]   ;;  %s9779_s16 = inlined_call_operand.hbm [shape: bf16[4,256,128], index: 16, kind: input, shape index: {}]   ;;  %s9780_s17 = inlined_call_operand.vmem [shape: f32[4,1,128], index: 17, kind: input, shape index: {}]   ;;  %s9781_s18 = inlined_call_operand.hbm [shape: bf16[4,128,128], index: 18, kind: input, shape index: {}]   ;;  %s9782_s19 = inlined_call_operand.vmem [shape: f32[4,1,128], index: 19, kind: input, shape index: {}]   ;;  %s9783_s20 = inlined_call_operand.hbm [shape: bf16[4,128,128], index: 20, kind: input, shape index: {}]   ;;  %s9784_s21 = inlined_call_operand.vmem [shape: f32[4,1,128], index: 21, kind: input, shape index: {}]   ;;  %s9785_s22 = inlined_call_operand.vmem [shape: f32[4,1,128], index: 22, kind: input, shape index: {}]   ;;  %s9786_s23 = inlined_call_operand.vmem [shape: f32[4,4,8], index: 23, kind: input, shape index: {}]   ;;  %s9787_s24 = inlined_call_operand.vmem [shape: f32[4,4,8], index: 24, kind: input, shape index: {}]   ;;  %s9788_s25 = inlined_call_operand.hbm [shape: f32[8,128], index: 25, kind: output, shape index: {0}]   ;;  %s9789_s26 = inlined_call_operand.vmem [shape: f32[8,128], index: 26, kind: output, shape index: {1}]  }
   0x1   :  { %9796 = sst [smem:[#allocation23_spill]] %s9763_s0 }
   0x2   :  { %9797 = sst [smem:[#allocation24_spill]] %s9764_s1 }
   0x3   :  { %9798 = sst [smem:[#allocation25_spill]] %s9765_s2 }
   0x4   :  { %9799 = sst [smem:[#allocation26_spill]] %s9766_s3 }
   0x5   :  { %9800 = sst [smem:[#allocation27_spill]] %s9767_s4 }
   0x6   :  { %9801 = sst [smem:[#allocation28_spill]] %s9768_s5 }
   0x7   :  { %9802 = sst [smem:[#allocation29_spill]] %s9769_s6 }
   0x8   :  { %9803 = sst [smem:[#allocation30_spill]] %s9770_s7 }
   0x9   :  { %9804 = sst [smem:[#allocation31_spill]] %s9771_s8 }
   0xa   :  { %9805 = sst [smem:[#allocation32_spill]] %s9772_s9 }
   0xb   :  { %9806 = sst [smem:[#allocation33_spill]] %s9773_s10 }
   0xc   :  { %9807 = sst [smem:[#allocation34_spill]] %s9788_s25 }
   0xd   :  { %32 = vsyncpa [#allocation3], 0 }
   0xe   :  { %33 = vsyncpa [#allocation6], 0 }
   0xf   :  { %34 = vsyncpa [#allocation9], 0 }
  0x10   :  { %35 = vsyncpa [#allocation12], 0 }
  0x11   :  { %36 = vsyncpa [#allocation15], 0 }
  0x12   :  { %37 = vsyncpa [#allocation4], 0  ;;  %s8707_s27 = smov [#allocation5]  }
  0x13   :  { %s72_s3 = sshll.u32 %s8707_s27, 4  ;;  %s73_s3 = int_to_ptr.vmem [resolvable:$true] %s72_s3 }
  0x14   :  { %s8523_s7 = scalar_lea.vmem %s73_s3, 16  ;;  %s8527_s28 = scalar_lea.vmem %s73_s3, 32 }
  0x15   :  { %p8524_p0 = scmp.ne.s32.totalorder %s73_s3, %s8523_s7  ;;  %p8528_p1 = scmp.lt.s32.totalorder %s73_s3, %s73_s3 }
  0x16   :  { %p8529_p2 = scmp.lt.s32.totalorder %s8527_s28, %s8523_s7 }
  0x18   :  { %p8530_p3 = por %p8529_p2, %p8528_p1 }
  0x1a   :  { %p8531_p4 = pnand %p8530_p3, %p8524_p0 }
  0x1c   :  { %8534 = shalt.err (!%p8531_p4)
}
  0x1d   :  { %s9808_s29 = sld [smem:[#allocation32_spill]]  ;;  %s8708_s0 = smov [#allocation8]  }
  0x1e   :  { %s93_s9 = sshll.u32 %s8708_s0, 4  ;;  %s94_s9 = int_to_ptr.vmem [resolvable:$true] %s93_s9 }
  0x1f   :  { %s8543_s30 = scalar_lea.vmem %s94_s9, 8192  ;;  %p8548_p6 = scmp.lt.s32.totalorder %s94_s9, %s94_s9 }
  0x20   :  { %p8544_p5 = scmp.ne.s32.totalorder %s94_s9, %s8543_s30  ;;  %p8549_p7 = scmp.lt.s32.totalorder %s8543_s30, %s8543_s30 }
  0x22   :  { %p8550_p8 = por %p8549_p7, %p8548_p6 }
  0x23   :  { %75 = dma.hbm_to_vmem [thread:$0]  %s9808_s29, 16, %s73_s3, [#allocation6]  }
  0x24   :  { %p8551_p9 = pnand %p8550_p8, %p8544_p5 }
  0x26   :  { %8554 = shalt.err (!%p8551_p9)
}
  0x27   :  { %s8709_s2 = smov 128   ;;  %s8710_s5 = smov 8  }
  0x28   :  { %99 = dma.hbm_to_vmem [thread:$0]  %s9775_s12, 8192, %s94_s9, [#allocation9], %s8709_s2, %s8709_s2, %s8710_s5  }
  0x29   :  { %s8711_s1 = smov [#allocation11]   ;;  %s8712_s7 = smov [#allocation2]  }
  0x2a   :  { %s121_s27 = sshll.u32 %s8711_s1, 4  ;;  %s57_s3 = sshll.u32 %s8712_s7, 4  ;;  %s122_s27 = int_to_ptr.vmem [resolvable:$true] %s121_s27  ;;  %s58_s3 = int_to_ptr.vmem [resolvable:$true] %s57_s3 }
  0x2b   :  { %s8563_s28 = scalar_lea.vmem %s122_s27, 8192  ;;  %p8568_p11 = scmp.lt.s32.totalorder %s122_s27, %s122_s27 }
  0x2c   :  { %p8564_p10 = scmp.ne.s32.totalorder %s122_s27, %s8563_s28  ;;  %p8569_p12 = scmp.lt.s32.totalorder %s8563_s28, %s8563_s28 }
  0x2e   :  { %p8570_p13 = por %p8569_p12, %p8568_p11 }
  0x30   :  { %p8571_p0 = pnand %p8570_p13, %p8564_p10 }
  0x32   :  { %8574 = shalt.err (!%p8571_p0)
}
  0x33   :  { %s8713_s8 = smov 64   ;;  %s8714_s4 = smov 4  }
  0x34   :  { %127 = dma.hbm_to_vmem [thread:$0]  %s9779_s16, 8192, %s122_s27, [#allocation12], %s8713_s8, %s8713_s8, %s8714_s4  }
  0x35   :  { %s8583_s0 = scalar_lea.vmem %s58_s3, 4096  ;;  %p8588_p2 = scmp.lt.s32.totalorder %s58_s3, %s58_s3 }
  0x36   :  { %p8584_p1 = scmp.ne.s32.totalorder %s58_s3, %s8583_s0  ;;  %p8589_p3 = scmp.lt.s32.totalorder %s8583_s0, %s8583_s0 }
  0x38   :  { %p8590_p4 = por %p8589_p3, %p8588_p2 }
  0x3a   :  { %p8591_p5 = pnand %p8590_p4, %p8584_p1 }
  0x3c   :  { %8594 = shalt.err (!%p8591_p5)
}
  0x3d   :  { %s9809_s10 = sld [smem:[#allocation30_spill]]  ;;  %s8715_s6 = smov [#allocation7]  }
  0x3e   :  { %s84_s1 = sshll.u32 %s8715_s6, 4  ;;  %s8716_s7 = smov [#allocation10]   ;;  %s85_s1 = int_to_ptr.vmem [resolvable:$true] %s84_s1 }
  0x3f   :  { %s107_s28 = sshll.u32 %s8716_s7, 4  ;;  %s8603_s25 = scalar_lea.vmem %s85_s1, 16  ;;  %s108_s28 = int_to_ptr.vmem [resolvable:$true] %s107_s28 }
  0x40   :  { %p8604_p6 = scmp.ne.s32.totalorder %s85_s1, %s8603_s25  ;;  %s8607_s16 = scalar_lea.vmem %s85_s1, 32 }
  0x41   :  { %p8608_p7 = scmp.lt.s32.totalorder %s85_s1, %s85_s1  ;;  %p8609_p8 = scmp.lt.s32.totalorder %s8607_s16, %s8603_s25 }
  0x43   :  { %63 = dma.hbm_to_vmem [thread:$0]  %s9809_s10, 4096, %s58_s3, [#allocation3], %s8709_s2, %s8709_s2, %s8710_s5  }
  0x44   :  { %p8610_p9 = por %p8609_p8, %p8608_p7 }
  0x46   :  { %p8611_p10 = pnand %p8610_p9, %p8604_p6 }
  0x48   :  { %8614 = shalt.err (!%p8611_p10)
}
  0x49   :  { %87 = dma.hbm_to_vmem [thread:$0]  %s9774_s11, 16, %s85_s1, [#allocation6]  }
  0x4a   :  { %s8623_s12 = scalar_lea.vmem %s108_s28, 4096  ;;  %p8628_p12 = scmp.lt.s32.totalorder %s108_s28, %s108_s28 }
  0x4b   :  { %p8624_p11 = scmp.ne.s32.totalorder %s108_s28, %s8623_s12  ;;  %p8629_p13 = scmp.lt.s32.totalorder %s8623_s12, %s8623_s12 }
  0x4d   :  { %p8630_p0 = por %p8629_p13, %p8628_p12 }
  0x4f   :  { %p8631_p1 = pnand %p8630_p0, %p8624_p11 }
  0x51   :  { %8634 = shalt.err (!%p8631_p1)
}
  0x52   :  { %113 = dma.hbm_to_vmem [thread:$0]  %s9777_s14, 4096, %s108_s28, [#allocation9], %s8713_s8, %s8713_s8, %s8714_s4  }
  0x53   :  { %s8717_s25 = smov [#allocation13]   ;;  %s8718_s0 = smov [#allocation14]  }
  0x54   :  { %s135_s3 = sshll.u32 %s8717_s25, 4  ;;  %s149_s9 = sshll.u32 %s8718_s0, 4  ;;  %s136_s3 = int_to_ptr.vmem [resolvable:$true] %s135_s3  ;;  %s150_s9 = int_to_ptr.vmem [resolvable:$true] %s149_s9 }
  0x55   :  { %s8643_s11 = scalar_lea.vmem %s136_s3, 4096  ;;  %p8648_p3 = scmp.lt.s32.totalorder %s136_s3, %s136_s3 }
  0x56   :  { %p8644_p2 = scmp.ne.s32.totalorder %s136_s3, %s8643_s11  ;;  %p8649_p4 = scmp.lt.s32.totalorder %s8643_s11, %s8643_s11 }
  0x58   :  { %p8650_p5 = por %p8649_p4, %p8648_p3 }
  0x5a   :  { %p8651_p6 = pnand %p8650_p5, %p8644_p2 }
  0x5c   :  { %8654 = shalt.err (!%p8651_p6)
}
  0x5d   :  { %141 = dma.hbm_to_vmem [thread:$0]  %s9781_s18, 4096, %s136_s3, [#allocation12], %s8713_s8, %s8713_s8, %s8714_s4  }
  0x5e   :  { %s8663_s14 = scalar_lea.vmem %s150_s9, 4096  ;;  %p8668_p8 = scmp.lt.s32.totalorder %s150_s9, %s150_s9 }
  0x5f   :  { %p8664_p7 = scmp.ne.s32.totalorder %s150_s9, %s8663_s14  ;;  %p8669_p9 = scmp.lt.s32.totalorder %s8663_s14, %s8663_s14 }
  0x61   :  { %p8670_p10 = por %p8669_p9, %p8668_p8 }
  0x63   :  { %p8671_p11 = pnand %p8670_p10, %p8664_p7 }
  0x65   :  { %8674 = shalt.err (!%p8671_p11)
}
  0x66   :  { %155 = dma.hbm_to_vmem [thread:$0]  %s9783_s20, 4096, %s150_s9, [#allocation15], %s8713_s8, %s8713_s8, %s8714_s4  }
  0x67   :  { %8695 = dma.done.wait [#allocation3], 4096  }
  0x68   :  { %8696 = vsyncadd [#allocation3], 4294963200 }
  0x69   :  { %8697 = dma.done.wait [#allocation6], 32  }
  0x6a   :  { %8698 = vsyncadd [#allocation6], 4294967264 }
  0x6b   :  { %8699 = dma.done.wait [#allocation9], 12288  }
  0x6c   :  { %8700 = vsyncadd [#allocation9], 4294955008 }
  0x6d   :  { %8701 = dma.done.wait [#allocation12], 12288  }
  0x6e   :  { %8702 = vsyncadd [#allocation12], 4294955008 }
  0x6f   :  { %8703 = dma.done.wait [#allocation15], 4096  }
  0x70   :  { %8704 = vsyncadd [#allocation15], 4294963200  ;;  %v8719_v0 = vmov 0.0   ;;  %vm8720_vm0 = vmmov 0   ;;  %vm221_vm1 = vcmask 1043456   ;;  %vm217_vm2 = vcmask 31744  }
  0x71   :  { %7276 = vmatprep.subr.mxu1 %v8719_v0  ;;  %7281 = vmatprep.subr.mxu0 %v8719_v0  ;;  %s9810_s8 = sld [smem:[#allocation31_spill]]  ;;  %v435_v2 = vld [vmem:[%s9786_s23] sm:$0xf]  ;;  %v7860_v6 = vld [vmem:[#allocation8 + $0x70] ss:$8 sps:$4 sm:$0xff]   ;;  %v8721_v22 = vmov 0  }
  0x72   :  { %7278 = vmatprep.mubr.msk.f32.mxu1 %vm8720_vm0, %v8719_v0  ;;  %7283 = vmatprep.mubr.msk.f32.mxu0 %vm8720_vm0, %v8719_v0  ;;  %s9811_s27 = sld [smem:[#allocation28_spill]]  ;;  %v512_v5 = vld [vmem:[%s9787_s24] sm:$0xf]  ;;  %v7865_v8 = vld [vmem:[#allocation8 + $0x64] ss:$8 sps:$4 sm:$0xff]   ;;  %vm586_vm3 = vcmask 130048  }
  0x73   :  { %7282 = vmatpush3.msk.msra.mxu0 %vm221_vm1, %v435_v2  ;;  %s9812_s2 = sld [smem:[#allocation29_spill]]  ;;  %v7862_v7 = vld [vmem:[#allocation8 + $0x74] ss:$8 sps:$4 sm:$0xff]   ;;  %v7863_v9 = vld [vmem:[#allocation8 + $0x60] ss:$8 sps:$4 sm:$0xff]   ;;  %7858 = vset.pattern.permute.xlu0 %v8721_v22  ;;  %vm1427_vm4 = vcmask 523264  }
  0x74   :  { %7286 = vmatprep.subr.mxu0 %v8719_v0  ;;  %v7868_v10 = vld [vmem:[#allocation8 + $0x54] ss:$8 sps:$4 sm:$0xff]   ;;  %v7866_v11 = vld [vmem:[#allocation8 + $0x50] ss:$8 sps:$4 sm:$0xff]   ;;  %v7871_v12 = vld [vmem:[#allocation8 + $0x44] ss:$8 sps:$4 sm:$0xff]   ;;  %7859 = vset.pattern.permute.xlu1 %v8721_v22 }
  0x75   :  { %v7869_v13 = vld [vmem:[#allocation8 + $0x40] ss:$8 sps:$4 sm:$0xff]   ;;  %v7874_v14 = vld [vmem:[#allocation8 + $0x34] ss:$8 sps:$4 sm:$0xff]   ;;  %v7872_v15 = vld [vmem:[#allocation8 + $0x30] ss:$8 sps:$4 sm:$0xff]  }
  0x76   :  { %v7877_v16 = vld [vmem:[#allocation8 + $0x24] ss:$8 sps:$4 sm:$0xff]   ;;  %v7875_v17 = vld [vmem:[#allocation8 + $0x20] ss:$8 sps:$4 sm:$0xff]   ;;  %v7880_v18 = vld [vmem:[#allocation8 + $0x14] ss:$8 sps:$4 sm:$0xff]  }
  0x77   :  { %v209_v1 = vld [vmem:[%s9810_s8] sm:$0xf]  ;;  %v7878_v19 = vld [vmem:[#allocation8 + $0x10] ss:$8 sps:$4 sm:$0xff]   ;;  %v7883_v20 = vld [vmem:[#allocation8 + $0x4] ss:$8 sps:$4 sm:$0xff]  }
  0x78   :  { %v208_v3 = vld [vmem:[%s9811_s27] sm:$0xff]  ;;  %7277 = vmatpush3.msk.msra.mxu1 %vm221_vm1, %v209_v1  ;;  %s9813_s9 = sld [smem:[#allocation24_spill]]  ;;  %s8722_s29 = smov 124  }
  0x79   :  { %v295_v4 = vld [vmem:[%s9812_s2] sm:$0xff]  ;;  %7279 = vmatmul.mubr.msk.f32.vlgmr.msra.gmra.mxu1 %vm217_vm2, %v208_v3  ;;  %393 = vmatprep.subr.bf16.mxu1 %v7862_v7  ;;  %s9814_s5 = sld [smem:[#allocation23_spill]]  ;;  %s8723_s10 = smov [#allocation16]  }
  0x7a   :  { %7284 = vmatmul.mubr.msk.f32.vlgmr.msra.gmra.mxu0 %vm217_vm2, %v295_v4  ;;  %394 = vmatpush1.bf16.msra.mxu1 %v7860_v6  ;;  %v7881_v21 = vld [vmem:[#allocation8] ss:$8 sps:$4 sm:$0xff]   ;;  %v6485_v23 = vld [vmem:[#allocation5] ss:$0 sm:$0xff]  ;;  %s9815_s4 = sld [smem:[#allocation25_spill]]  ;;  %s6468_s14 = sshll.u32 %s8723_s10, 4  ;;  %s6469_s14 = int_to_ptr.vmem [resolvable:$true] %s6468_s14 }
  0x7b   :  { %7288 = vmatprep.mubr.msk.f32.mxu0 %vm8720_vm0, %v8719_v0  ;;  %7287 = vmatpush3.msk.msra.mxu0 %vm221_vm1, %v512_v5  ;;  %s9816_s3 = sld [smem:[#allocation27_spill]]  ;;  %p8680_p13 = scmp.lt.s32.totalorder %s6469_s14, %s6469_s14 }
  0x7c   :  { %395 = vmatprep.subr.bf16.mxu1 %v7865_v8  ;;  %425 = vmatprep.mubr.bf16.mxu1 %v8721_v22  ;;  %s9817_s30 = sld [smem:[#allocation26_spill]] }
  0x7d   :  { %s9818_s18 = sld [smem:[#allocation33_spill]] }
  0x7e   :  { %7289 = vmatmul.mubr.msk.f32.vlgmr.msra.gmra.mxu0 %vm217_vm2, %v295_v4  ;;  %396 = vmatpush1.bf16.msra.mxu1 %v7863_v9  ;;  %v197_v30 = vld [vmem:[%s9813_s9] sm:$0xff]  ;;  %v198_v33 = vld [vmem:[%s9813_s9 + $0x8] sm:$0xff]  ;;  %v199_v34 = vld [vmem:[%s9813_s9 + $0x10] sm:$0xff] }
  0x7f   :  { %397 = vmatprep.subr.bf16.mxu1 %v7868_v10  ;;  %v200_v35 = vld [vmem:[%s9813_s9 + $0x18] sm:$0xff]  ;;  %v201_v36 = vld [vmem:[%s9813_s9 + $0x20] sm:$0xff]  ;;  %v202_v37 = vld [vmem:[%s9813_s9 + $0x28] sm:$0xff] }
  0x80   :  { %v203_v38 = vld [vmem:[%s9813_s9 + $0x30] sm:$0xff]  ;;  %v204_v39 = vld [vmem:[%s9813_s9 + $0x38] sm:$0xff]  ;;  %v7884_v40 = vld [vmem:[%s9814_s5] sm:$0xff]  }
  0x81   :  { %7309 = vmatprep.mubr.msk.bf16.mxu0 %vm586_vm3, %v7884_v40  ;;  %v7885_v45 = vld [vmem:[%s9814_s5 + $0x8] sm:$0xff]   ;;  %v7886_v47 = vld [vmem:[%s9814_s5 + $0x10] sm:$0xff]   ;;  %v7887_v55 = vld [vmem:[%s9814_s5 + $0x18] sm:$0xff]  }
  0x82   :  { %398 = vmatpush1.bf16.msra.mxu1 %v7866_v11  ;;  %v7892_v40 = vld [vmem:[#allocation10 + $0x18] sm:$0xff]  }
  0x83   :  { %399 = vmatprep.subr.bf16.mxu1 %v7871_v12 }
  0x86   :  { %400 = vmatpush1.bf16.msra.mxu1 %v7869_v13 }
  0x87   :  { %401 = vmatprep.subr.bf16.mxu1 %v7874_v14 }
  0x8a   :  { %402 = vmatpush1.bf16.msra.mxu1 %v7872_v15 }
  0x8b   :  { %403 = vmatprep.subr.bf16.mxu1 %v7877_v16 }
  0x8e   :  { %404 = vmatpush1.bf16.msra.mxu1 %v7875_v17 }
  0x8f   :  { %405 = vmatprep.subr.bf16.mxu1 %v7880_v18 }
  0x92   :  { %406 = vmatpush1.bf16.msra.mxu1 %v7878_v19 }
  0x93   :  { %407 = vmatprep.subr.bf16.mxu1 %v7883_v20 }
  0x96   :  { %408 = vmatpush1.bf16.msra.mxu1 %v7881_v21 }
 0x139   :  { %v291_v24 = vpop.f32.mrf.mxu1 }
 0x13a   :  { %v508_v25 = vpop.f32.mrf.mxu0  ;;  %v292_v26 = vadd.f32 %v6485_v23, %v291_v24 }
 0x13b   :  { %v7280_v27 = vpop.f32.mrf.mxu1 }
 0x13c   :  { %v7285_v28 = vpop.f32.mrf.mxu0  ;;  %v8928_v29 = vpack.c.bf16 %v292_v26, %v292_v26 }
 0x13d   :  { %v7888_v28 = vld [vmem:[#allocation10 + $0x38] sm:$0xff]  }
 0x13e   :  { %v582_v31 = vpop.f32.mrf.mxu0  ;;  %426 = vmatmul.mubr.bf16.vlgmr.msra.gmra.mxu1 %v8928_v29 }
 0x13f   :  { %7291 = vmatprep.subr.mxu1 %v582_v31  ;;  %7295 = vmatprep.mubr.msk.f32.mxu1 %vm586_vm3, %v197_v30 }
 0x140   :  { %v7290_v32 = vpop.f32.mrf.mxu0  ;;  %7292 = vmatpush3.msra.mxu1 %v582_v31 }
 0x141   :  { %7293 = vmatprep.subr.mxu1 %v508_v25 }
 0x142   :  { %7294 = vmatpush3.msra.mxu1 %v508_v25 }
 0x146   :  { %7296 = vmatmul.mubr.msk.f32.vlgmr.msra.gmra.mxu1 %vm586_vm3, %v198_v33  ;;  %v7889_v33 = vld [vmem:[#allocation10 + $0x30] sm:$0xff]  }
 0x147   :  { %7298 = vmatprep.mubr.msk.f32.mxu1 %vm586_vm3, %v199_v34 }
 0x14a   :  { %7299 = vmatmul.mubr.msk.f32.gmra.mxu1 %vm586_vm3, %v200_v35 }
 0x14b   :  { %7301 = vmatprep.mubr.msk.f32.mxu1 %vm586_vm3, %v201_v36 }
 0x14e   :  { %7302 = vmatmul.mubr.msk.f32.gmra.mxu1 %vm586_vm3, %v202_v37  ;;  %v7890_v37 = vld [vmem:[#allocation10 + $0x28] sm:$0xff]  }
 0x14f   :  { %7304 = vmatprep.mubr.msk.f32.mxu1 %vm586_vm3, %v203_v38 }
 0x152   :  { %7305 = vmatmul.mubr.msk.f32.gmra.mxu1 %vm586_vm3, %v204_v39  ;;  %v7891_v39 = vld [vmem:[#allocation10 + $0x20] sm:$0xff]  }
 0x1fe   :  { %v427_v41 = vpop.f32.mrf.mxu1 }
 0x200   :  { %v429_v42 = vpop.f32.mrf.mxu1 }
 0x201   :  { %v434_v43 = vpack.c.bf16 %v429_v42, %v427_v41  ;;  %v7893_v41 = vld [vmem:[#allocation10 + $0x10] sm:$0xff]   ;;  %v7894_v42 = vld [vmem:[#allocation10 + $0x8] sm:$0xff]  }
 0x202   :  { %v431_v44 = vpop.f32.mrf.mxu1 }
 0x203   :  { %7307 = vmatprep.subr.bf16.mxu0 %v434_v43 }
 0x204   :  { %v432_v46 = vpop.f32.mrf.mxu1  ;;  %7308 = vmatpush3.bf16.msra.mxu0 %v434_v43  ;;  %v7895_v43 = vld [vmem:[#allocation10] sm:$0xff]  }
 0x205   :  { %7317 = vmatprep.subr.bf16.mxu0 %v7888_v28  ;;  %v6516_v46 = vld [vmem:[%s9776_s13] ss:$0 sm:$0xff] }
 0x206   :  { %v8973_v48 = vpop.f32.mrf.mxu1 }
 0x207   :  { %7310 = vmatmul.mubr.msk.bf16.vlgmr.msra.gmra.mxu0 %vm586_vm3, %v7885_v45  ;;  %v717_v52 = vmul.f32 %v8973_v48, %v8973_v48 }
 0x208   :  { %v8976_v49 = vpop.f32.mrf.mxu1  ;;  %7313 = vmatprep.mubr.msk.bf16.mxu0 %vm586_vm3, %v7886_v47  ;;  %7318 = vmatpush3.bf16.msra.mxu0 %v7888_v28 }
 0x209   :  { %v716_v50 = vmul.f32 %v8976_v49, %v8976_v49  ;;  %v727_v61 = vsel %vm217_vm2, %v717_v52, 0.0  ;;  %v749_v14 = vmul.f32 2.0, %v717_v52  ;;  %7319 = vmatprep.subr.bf16.mxu0 %v7889_v33 }
 0x20a   :  { %v8981_v51 = vpop.f32.mrf.mxu1 }
 0x20b   :  { %v724_v53 = vsel %vm217_vm2, %v716_v50, 0.0  ;;  %v719_v54 = vmul.f32 %v8981_v51, %v8981_v51  ;;  %v748_v10 = vmul.f32 2.0, %v716_v50 }
 0x20c   :  { %725 = vadd.xlane.f32.xlu0 %v724_v53  ;;  %v8991_v56 = vpop.f32.mrf.mxu1  ;;  %7320 = vmatpush3.bf16.msra.mxu0 %v7889_v33  ;;  %v916_v53 = vld [vmem:[#allocation2] sm:$0xff] }
 0x20d   :  { %v733_v57 = vsel %vm217_vm2, %v719_v54, 0.0  ;;  %v718_v58 = vmul.f32 %v8991_v56, %v8991_v56  ;;  %v751_v17 = vmul.f32 2.0, %v719_v54  ;;  %7321 = vmatprep.subr.bf16.mxu0 %v7890_v37 }
 0x20e   :  { %734 = vadd.xlane.f32.xlu1 %v733_v57  ;;  %v8996_v59 = vpop.f32.mrf.mxu1 }
 0x20f   :  { %v721_v60 = vmul.f32 %v8996_v59, %v8996_v59  ;;  %v730_v62 = vsel %vm217_vm2, %v718_v58, 0.0  ;;  %7314 = vmatmul.mubr.msk.bf16.gmra.mxu0 %vm586_vm3, %v7887_v55  ;;  %v750_v20 = vmul.f32 2.0, %v718_v58 }
 0x210   :  { %728 = vadd.xlane.f32.xlu0 %v727_v61  ;;  %v9003_v63 = vpop.f32.mrf.mxu1  ;;  %7322 = vmatpush3.bf16.msra.mxu0 %v7890_v37 }
 0x211   :  { %v720_v1 = vmul.f32 %v9003_v63, %v9003_v63  ;;  %v739_v5 = vsel %vm217_vm2, %v721_v60, 0.0  ;;  %v753_v24 = vmul.f32 2.0, %v721_v60  ;;  %7323 = vmatprep.subr.bf16.mxu0 %v7891_v39 }
 0x212   :  { %731 = vadd.xlane.f32.xlu1 %v730_v62  ;;  %v9007_v2 = vpop.f32.mrf.mxu1  ;;  %v917_v62 = vld [vmem:[#allocation2 + $0x8] sm:$0xff] }
 0x213   :  { %v723_v3 = vmul.f32 %v9007_v2, %v9007_v2  ;;  %v736_v4 = vsel %vm217_vm2, %v720_v1, 0.0  ;;  %v752_v27 = vmul.f32 2.0, %v720_v1 }
 0x214   :  { %737 = vadd.xlane.f32.xlu0 %v736_v4  ;;  %v9013_v6 = vpop.f32.mrf.mxu1  ;;  %7324 = vmatpush3.bf16.msra.mxu0 %v7891_v39 }
 0x215   :  { %v722_v7 = vmul.f32 %v9013_v6, %v9013_v6  ;;  %v745_v9 = vsel %vm217_vm2, %v723_v3, 0.0  ;;  %v755_v36 = vmul.f32 2.0, %v723_v3  ;;  %7325 = vmatprep.subr.bf16.mxu0 %v7892_v40 }
 0x216   :  { %740 = vadd.xlane.f32.xlu1 %v739_v5 }
 0x217   :  { %v742_v8 = vsel %vm217_vm2, %v722_v7, 0.0  ;;  %v754_v32 = vmul.f32 2.0, %v722_v7 }
 0x218   :  { %743 = vadd.xlane.f32.xlu0 %v742_v8  ;;  %7326 = vmatpush3.bf16.msra.mxu0 %v7892_v40  ;;  %v922_v40 = vld [vmem:[#allocation2 + $0x30] sm:$0xff] }
 0x219   :  { %7327 = vmatprep.subr.bf16.mxu0 %v7893_v41 }
 0x21a   :  { %746 = vadd.xlane.f32.xlu1 %v745_v9  ;;  %v919_v9 = vld [vmem:[#allocation2 + $0x18] sm:$0xff] }
 0x21c   :  { %7328 = vmatpush3.bf16.msra.mxu0 %v7893_v41 }
 0x21d   :  { %7329 = vmatprep.subr.bf16.mxu0 %v7894_v42 }
 0x220   :  { %7330 = vmatpush3.bf16.msra.mxu0 %v7894_v42 }
 0x221   :  { %7331 = vmatprep.subr.bf16.mxu0 %v7895_v43 }
 0x224   :  { %7332 = vmatpush3.bf16.msra.mxu0 %v7895_v43 }
 0x225   :  { %7365 = vmatprep.subr.mxu0 %v8719_v0 }
 0x295   :  { %v726_v11 = vpop.xlane.xlu0 %725 }
 0x296   :  { %v756_v12 = vsub.f32 %v726_v11, %v748_v10 }
 0x297   :  { %v735_v13 = vpop.xlane.xlu1 %734 }
 0x298   :  { %767 = vperm.xlu0 %7858, %v756_v12   ;;  %v759_v19 = vsub.f32 %v735_v13, %v751_v17 }
 0x299   :  { %v729_v15 = vpop.xlane.xlu0 %728 }
 0x29a   :  { %v757_v16 = vsub.f32 %v729_v15, %v749_v14 }
 0x29b   :  { %v732_v18 = vpop.xlane.xlu1 %731 }
 0x29c   :  { %772 = vperm.xlu1 %7859, %v757_v16   ;;  %v758_v21 = vsub.f32 %v732_v18, %v750_v20  ;;  %v918_v16 = vld [vmem:[#allocation2 + $0x10] sm:$0xff] }
 0x29d   :  { %v738_v25 = vpop.xlane.xlu0 %737 }
 0x29e   :  { %v760_v30 = vsub.f32 %v738_v25, %v752_v27 }
 0x29f   :  { %v741_v23 = vpop.xlane.xlu1 %740 }
 0x2a0   :  { %782 = vperm.xlu1 %7859, %v759_v19   ;;  %v761_v26 = vsub.f32 %v741_v23, %v753_v24  ;;  %v921_v24 = vld [vmem:[#allocation2 + $0x28] sm:$0xff] }
 0x2a1   :  { %v744_v31 = vpop.xlane.xlu0 %743 }
 0x2a2   :  { %v762_v34 = vsub.f32 %v744_v31, %v754_v32  ;;  %v920_v32 = vld [vmem:[#allocation2 + $0x20] sm:$0xff] }
 0x2a3   :  { %v747_v35 = vpop.xlane.xlu1 %746 }
 0x2a4   :  { %777 = vperm.xlu1 %7859, %v758_v21   ;;  %v763_v38 = vsub.f32 %v747_v35, %v755_v36 }
 0x2a8   :  { %792 = vperm.xlu1 %7859, %v761_v26  }
 0x2ac   :  { %787 = vperm.xlu1 %7859, %v760_v30  }
 0x2b0   :  { %797 = vperm.xlu1 %7859, %v762_v34  }
 0x2b4   :  { %802 = vperm.xlu1 %7859, %v763_v38  }
 0x2c7   :  { %v7311_v44 = vpop.f32.mrf.mxu0 }
 0x2c9   :  { %v885_v45 = vpop.f32.mrf.mxu0 }
 0x2cb   :  { %v7312_v47 = vpop.f32.mrf.mxu0 }
 0x2cd   :  { %v888_v54 = vpop.f32.mrf.mxu0 }
 0x2cf   :  { %v7315_v58 = vpop.f32.mrf.mxu0 }
 0x2d1   :  { %v901_v5 = vpop.f32.mrf.mxu0 }
 0x2d3   :  { %v7316_v13 = vpop.f32.mrf.mxu0 }
 0x2d5   :  { %v904_v20 = vpop.f32.mrf.mxu0 }
 0x313   :  { %v768_v50 = vpop.permute.xlu0 %767 }
 0x314   :  { %v811_v52 = vmul.f32 %v6516_v46, %v768_v50 }
 0x316   :  { %v886_v55 = vadd.f32 %v885_v45, %v811_v52  ;;  %v923_v52 = vld [vmem:[#allocation2 + $0x38] sm:$0xff] }
 0x317   :  { %v773_v57 = vpop.permute.xlu1 %772 }
 0x318   :  { %v9023_v60 = vadd.f32 %v916_v53, %v886_v55  ;;  %v812_v61 = vmul.f32 %v6516_v46, %v773_v57 }
 0x31a   :  { %v6525_v1 = vmul.f32 -1.442695, %v9023_v60  ;;  %v889_v3 = vadd.f32 %v888_v54, %v812_v61 }
 0x31b   :  { %v783_v4 = vpop.permute.xlu1 %782 }
 0x31c   :  { %8128 = vpow2.f32 %v6525_v1  ;;  %v9026_v7 = vadd.f32 %v917_v62, %v889_v3  ;;  %v814_v8 = vmul.f32 %v6516_v46, %v783_v4 }
 0x31e   :  { %v6526_v10 = vmul.f32 -1.442695, %v9026_v7  ;;  %v897_v11 = vadd.f32 %v7312_v47, %v814_v8 }
 0x31f   :  { %v778_v12 = vpop.permute.xlu1 %777 }
 0x320   :  { %8130 = vpow2.f32 %v6526_v10  ;;  %v9029_v14 = vadd.f32 %v919_v9, %v897_v11  ;;  %v813_v15 = vmul.f32 %v6516_v46, %v778_v12 }
 0x322   :  { %v6528_v17 = vmul.f32 -1.442695, %v9029_v14  ;;  %v894_v18 = vadd.f32 %v7311_v44, %v813_v15 }
 0x323   :  { %v793_v19 = vpop.permute.xlu1 %792 }
 0x324   :  { %8132 = vpow2.f32 %v6528_v17  ;;  %v926_v21 = vadd.f32 %v918_v16, %v894_v18  ;;  %v816_v23 = vmul.f32 %v6516_v46, %v793_v19 }
 0x326   :  { %v6527_v25 = vmul.f32 -1.442695, %v926_v21  ;;  %v905_v26 = vadd.f32 %v904_v20, %v816_v23 }
 0x327   :  { %v788_v27 = vpop.permute.xlu1 %787 }
 0x328   :  { %8134 = vpow2.f32 %v6527_v25  ;;  %v929_v28 = vadd.f32 %v921_v24, %v905_v26  ;;  %v815_v30 = vmul.f32 %v6516_v46, %v788_v27 }
 0x329   :  { %v8129_v31 = vpop.eup %8128 }
 0x32a   :  { %v956_v33 = vadd.f32 1.0, %v8129_v31  ;;  %v6530_v34 = vmul.f32 -1.442695, %v929_v28  ;;  %v902_v35 = vadd.f32 %v901_v5, %v815_v30 }
 0x32b   :  { %v798_v36 = vpop.permute.xlu1 %797 }
 0x32c   :  { %v928_v37 = vadd.f32 %v920_v32, %v902_v35  ;;  %v817_v38 = vmul.f32 %v6516_v46, %v798_v36  ;;  %8136 = vpow2.f32 %v6530_v34  ;;  %v7898_v34 = vld [vmem:[#allocation14 + $0x28] sm:$0xff]   ;;  %v7900_v35 = vld [vmem:[#allocation14 + $0x18] sm:$0xff]   ;;  %v7901_v36 = vld [vmem:[#allocation14 + $0x10] sm:$0xff]  }
 0x32d   :  { %v8131_v39 = vpop.eup %8130  ;;  %8138 = vrcp.f32 %v956_v33 }
 0x32e   :  { %v957_v41 = vadd.f32 1.0, %v8131_v39  ;;  %v6529_v42 = vmul.f32 -1.442695, %v928_v37  ;;  %v910_v43 = vadd.f32 %v7315_v58, %v817_v38  ;;  %v7903_v38 = vld [vmem:[#allocation14] sm:$0xff]   ;;  %v6533_v39 = vld [vmem:[%s9778_s15] ss:$0 sm:$0xff] }
 0x32f   :  { %v803_v44 = vpop.permute.xlu1 %802 }
 0x330   :  { %8140 = vrcp.f32 %v957_v41  ;;  %v930_v45 = vadd.f32 %v922_v40, %v910_v43  ;;  %v818_v47 = vmul.f32 %v6516_v46, %v803_v44 }
 0x331   :  { %v8133_v50 = vpop.eup %8132  ;;  %8142 = vpow2.f32 %v6529_v42 }
 0x332   :  { %v959_v53 = vadd.f32 1.0, %v8133_v50  ;;  %v6531_v54 = vmul.f32 -1.442695, %v930_v45  ;;  %v913_v55 = vadd.f32 %v7316_v13, %v818_v47 }
 0x334   :  { %v931_v57 = vadd.f32 %v923_v52, %v913_v55  ;;  %8144 = vpow2.f32 %v6531_v54 }
 0x335   :  { %v8135_v61 = vpop.eup %8134  ;;  %8146 = vrcp.f32 %v959_v53 }
 0x336   :  { %v958_v62 = vadd.f32 1.0, %v8135_v61  ;;  %v6532_v1 = vmul.f32 -1.442695, %v931_v57 }
 0x338   :  { %8148 = vrcp.f32 %v958_v62 }
 0x339   :  { %8150 = vpow2.f32 %v6532_v1  ;;  %v8137_v3 = vpop.eup %8136 }
 0x33a   :  { %v8139_v58 = vpop.eup %8138  ;;  %v961_v4 = vadd.f32 1.0, %v8137_v3 }
 0x33b   :  { %v980_v46 = vmul.f32 %v8139_v58, %v9023_v60 }
 0x33c   :  { %8152 = vrcp.f32 %v961_v4 }
 0x33d   :  { %v8141_v5 = vpop.eup %8140 }
 0x33e   :  { %v8143_v8 = vpop.eup %8142  ;;  %v981_v9 = vmul.f32 %v8141_v5, %v9026_v7 }
 0x33f   :  { %v960_v10 = vadd.f32 1.0, %v8143_v8 }
 0x340   :  { %v988_v11 = vpack.c.bf16 %v981_v9, %v980_v46 }
 0x341   :  { %8154 = vrcp.f32 %v960_v10  ;;  %v8145_v12 = vpop.eup %8144 }
 0x342   :  { %7333 = vmatprep.mubr.bf16.mxu0 %v988_v11  ;;  %v8147_v13 = vpop.eup %8146  ;;  %v962_v15 = vadd.f32 1.0, %v8145_v12 }
 0x343   :  { %v983_v18 = vmul.f32 %v8147_v13, %v9029_v14  ;;  %v7896_v14 = vld [vmem:[#allocation14 + $0x38] sm:$0xff]  }
 0x344   :  { %8156 = vrcp.f32 %v962_v15  ;;  %7341 = vmatprep.subr.bf16.mxu1 %v7896_v14 }
 0x345   :  { %v8149_v16 = vpop.eup %8148  ;;  %7342 = vmatpush3.bf16.msra.mxu1 %v7896_v14 }
 0x346   :  { %v8151_v17 = vpop.eup %8150  ;;  %v982_v19 = vmul.f32 %v8149_v16, %v926_v21  ;;  %v7897_v21 = vld [vmem:[#allocation14 + $0x30] sm:$0xff]  }
 0x347   :  { %v963_v20 = vadd.f32 1.0, %v8151_v17  ;;  %7343 = vmatprep.subr.bf16.mxu1 %v7897_v21 }
 0x348   :  { %v989_v23 = vpack.c.bf16 %v983_v18, %v982_v19 }
 0x349   :  { %8158 = vrcp.f32 %v963_v20  ;;  %v8153_v60 = vpop.eup %8152  ;;  %7344 = vmatpush3.bf16.msra.mxu1 %v7897_v21 }
 0x34a   :  { %7334 = vmatmul.mubr.bf16.vlgmr.msra.gmra.mxu0 %v989_v23  ;;  %v985_v24 = vmul.f32 %v8153_v60, %v929_v28  ;;  %7345 = vmatprep.subr.bf16.mxu1 %v7898_v34  ;;  %v7899_v28 = vld [vmem:[#allocation14 + $0x20] sm:$0xff]  }
 0x34d   :  { %7346 = vmatpush3.bf16.msra.mxu1 %v7898_v34 }
 0x34e   :  { %v8155_v7 = vpop.eup %8154  ;;  %7347 = vmatprep.subr.bf16.mxu1 %v7899_v28 }
 0x34f   :  { %v984_v25 = vmul.f32 %v8155_v7, %v928_v37  ;;  %v7902_v37 = vld [vmem:[#allocation14 + $0x8] sm:$0xff]  }
 0x351   :  { %v990_v26 = vpack.c.bf16 %v985_v24, %v984_v25  ;;  %v8157_v27 = vpop.eup %8156  ;;  %7348 = vmatpush3.bf16.msra.mxu1 %v7899_v28 }
 0x352   :  { %v986_v31 = vmul.f32 %v8157_v27, %v930_v45  ;;  %7349 = vmatprep.subr.bf16.mxu1 %v7900_v35 }
 0x353   :  { %7337 = vmatprep.mubr.bf16.mxu0 %v990_v26 }
 0x355   :  { %7350 = vmatpush3.bf16.msra.mxu1 %v7900_v35 }
 0x356   :  { %v8159_v30 = vpop.eup %8158  ;;  %7351 = vmatprep.subr.bf16.mxu1 %v7901_v36 }
 0x357   :  { %v987_v32 = vmul.f32 %v8159_v30, %v931_v57 }
 0x359   :  { %v991_v33 = vpack.c.bf16 %v987_v32, %v986_v31  ;;  %7352 = vmatpush3.bf16.msra.mxu1 %v7901_v36 }
 0x35a   :  { %7353 = vmatprep.subr.bf16.mxu1 %v7902_v37 }
 0x35b   :  { %7338 = vmatmul.mubr.bf16.gmra.mxu0 %v991_v33 }
 0x35c   :  { %7381 = vmatprep.mubr.msk.f32.mxu0 %vm8720_vm0, %v8719_v0 }
 0x35d   :  { %7354 = vmatpush3.bf16.msra.mxu1 %v7902_v37 }
 0x35e   :  { %7355 = vmatprep.subr.bf16.mxu1 %v7903_v38 }
 0x361   :  { %7356 = vmatpush3.bf16.msra.mxu1 %v7903_v38 }
 0x362   :  { %7384 = vmatprep.subr.bf16.mxu1 %v8719_v0 }
 0x40a   :  { %v7335_v40 = vpop.f32.mrf.mxu0 }
 0x40b   :  { %v1106_v41 = vadd.f32 %v7335_v40, %v6533_v39 }
 0x40c   :  { %v1097_v42 = vpop.f32.mrf.mxu0 }
 0x40d   :  { %v1098_v43 = vadd.f32 %v6533_v39, %v1097_v42  ;;  %v1130_v44 = vand.u32 2147483647, %v1106_v41 }
 0x40e   :  { %v7336_v45 = vpop.f32.mrf.mxu0 }
 0x40f   :  { %v1128_v47 = vand.u32 2147483647, %v1098_v43  ;;  %v1109_v50 = vadd.f32 %v7336_v45, %v6533_v39  ;;  %v1138_v57 = vadd.f32 1.0, %v1130_v44 }
 0x410   :  { %v1100_v52 = vpop.f32.mrf.mxu0 }
 0x411   :  { %v1136_v53 = vadd.f32 1.0, %v1128_v47  ;;  %v1131_v54 = vand.u32 2147483647, %v1109_v50  ;;  %v1101_v55 = vadd.f32 %v6533_v39, %v1100_v52 }
 0x413   :  { %v1139_v61 = vadd.f32 1.0, %v1131_v54  ;;  %v1129_v62 = vand.u32 2147483647, %v1101_v55  ;;  %8160 = vrcp.f32 %v1136_v53 }
 0x415   :  { %8162 = vrcp.f32 %v1139_v61  ;;  %v1137_v1 = vadd.f32 1.0, %v1129_v62 }
 0x416   :  { %8164 = vrcp.f32 %v1138_v57 }
 0x417   :  { %8166 = vrcp.f32 %v1137_v1 }
 0x41b   :  { %v7339_v3 = vpop.f32.mrf.mxu0 }
 0x41c   :  { %v1122_v58 = vadd.f32 %v7339_v3, %v6533_v39 }
 0x41d   :  { %v1113_v4 = vpop.f32.mrf.mxu0 }
 0x41e   :  { %v1134_v5 = vand.u32 2147483647, %v1122_v58  ;;  %v1114_v8 = vadd.f32 %v6533_v39, %v1113_v4 }
 0x41f   :  { %v7340_v46 = vpop.f32.mrf.mxu0 }
 0x420   :  { %v1142_v9 = vadd.f32 1.0, %v1134_v5  ;;  %v1132_v10 = vand.u32 2147483647, %v1114_v8  ;;  %v1125_v11 = vadd.f32 %v7340_v46, %v6533_v39  ;;  %v8161_v12 = vpop.eup %8160 }
 0x421   :  { %v1116_v13 = vpop.f32.mrf.mxu0  ;;  %v1145_v24 = vmul.f32 %v8161_v12, %v1098_v43  ;;  %v6542_v43 = vld [vmem:[%s9784_s21] ss:$0 sm:$0xff] }
 0x422   :  { %v8163_v15 = vpop.eup %8162  ;;  %v1140_v16 = vadd.f32 1.0, %v1132_v10  ;;  %v1135_v17 = vand.u32 2147483647, %v1125_v11  ;;  %v1117_v18 = vadd.f32 %v6533_v39, %v1116_v13  ;;  %8168 = vrcp.f32 %v1142_v9  ;;  %v205_v39 = vld [vmem:[%s9815_s4] sm:$0xf] }
 0x423   :  { %v8165_v19 = vpop.eup %8164  ;;  %v1151_v23 = vmul.f32 %v8163_v15, %v1109_v50 }
 0x424   :  { %v8167_v20 = vpop.eup %8166  ;;  %v1143_v60 = vadd.f32 1.0, %v1135_v17  ;;  %v1133_v7 = vand.u32 2147483647, %v1117_v18  ;;  %8170 = vrcp.f32 %v1140_v16  ;;  %v1149_v26 = vmul.f32 %v8165_v19, %v1106_v41 }
 0x425   :  { %v1147_v25 = vmul.f32 %v8167_v20, %v1101_v55 }
 0x426   :  { %8172 = vrcp.f32 %v1143_v60  ;;  %v1141_v27 = vadd.f32 1.0, %v1133_v7  ;;  %v1161_v31 = vpack.c.bf16 %v1151_v23, %v1149_v26 }
 0x427   :  { %v1160_v30 = vpack.c.bf16 %v1147_v25, %v1145_v24 }
 0x428   :  { %8174 = vrcp.f32 %v1141_v27 }
 0x429   :  { %7357 = vmatprep.mubr.bf16.mxu1 %v1160_v30 }
 0x42a   :  { %7358 = vmatmul.mubr.bf16.vlgmr.msra.gmra.mxu1 %v1161_v31 }
 0x42f   :  { %v8169_v32 = vpop.eup %8168 }
 0x430   :  { %v1157_v21 = vmul.f32 %v8169_v32, %v1122_v58 }
 0x431   :  { %v8171_v33 = vpop.eup %8170 }
 0x432   :  { %v1153_v35 = vmul.f32 %v8171_v33, %v1114_v8  ;;  %v6559_v33 = vld [vmem:[%s9785_s22] ss:$0 sm:$0xff] }
 0x433   :  { %v8173_v14 = vpop.eup %8172 }
 0x434   :  { %v1159_v34 = vmul.f32 %v8173_v14, %v1125_v11 }
 0x435   :  { %v8175_v28 = vpop.eup %8174 }
 0x436   :  { %v1163_v36 = vpack.c.bf16 %v1159_v34, %v1157_v21  ;;  %v1155_v37 = vmul.f32 %v8175_v28, %v1117_v18 }
 0x438   :  { %7385 = vmatpush3.bf16.msra.mxu1 %v1163_v36  ;;  %v1162_v38 = vpack.c.bf16 %v1155_v37, %v1153_v35 }
 0x439   :  { %7386 = vmatprep.subr.bf16.mxu1 %v8719_v0 }
 0x43a   :  { %7361 = vmatprep.mubr.bf16.mxu1 %v1162_v38 }
 0x43b   :  { %7362 = vmatmul.mubr.bf16.gmra.mxu1 %v1163_v36 }
 0x43c   :  { %7387 = vmatpush3.bf16.msra.mxu1 %v1162_v38  ;;  %7392 = vmatprep.mubr.msk.bf16.mxu1 %vm8720_vm0, %v8719_v0 }
 0x43d   :  { %7388 = vmatprep.subr.bf16.mxu1 %v8719_v0 }
 0x440   :  { %7389 = vmatpush3.bf16.msra.mxu1 %v1161_v31 }
 0x441   :  { %7390 = vmatprep.subr.bf16.mxu1 %v8719_v0 }
 0x444   :  { %7391 = vmatpush3.bf16.msra.mxu1 %v1160_v30 }
 0x445   :  { %7396 = vmatprep.subr.bf16.mxu1 %v8719_v0 }
 0x447   :  { %7393 = vmatmul.mubr.msk.bf16.vlgmr.msra.gmra.mxu1 %vm1427_vm4, %v205_v39 }
 0x448   :  { %7412 = vmatprep.mubr.msk.bf16.mxu1 %vm8720_vm0, %v8719_v0 }
 0x4ea   :  { %v7359_v40 = vpop.f32.mrf.mxu1 }
 0x4eb   :  { %v9058_v47 = vadd.f32 %v7359_v40, %v6542_v43 }
 0x4ec   :  { %v1269_v41 = vpop.f32.mrf.mxu1 }
 0x4ed   :  { %v6553_v62 = vmul.f32 -1.442695, %v9058_v47  ;;  %v9064_v3 = vadd.f32 %v6542_v43, %v1269_v41 }
 0x4ee   :  { %v7360_v42 = vpop.f32.mrf.mxu1 }
 0x4ef   :  { %v9056_v44 = vadd.f32 %v7360_v42, %v6542_v43  ;;  %v6551_v10 = vmul.f32 -1.442695, %v9064_v3 }
 0x4f0   :  { %v1272_v45 = vpop.f32.mrf.mxu1 }
 0x4f1   :  { %v6554_v53 = vmul.f32 -1.442695, %v9056_v44  ;;  %v9061_v54 = vadd.f32 %v6542_v43, %v1272_v45 }
 0x4f3   :  { %v6552_v5 = vmul.f32 -1.442695, %v9061_v54 }
 0x4fb   :  { %v7363_v50 = vpop.f32.mrf.mxu1 }
 0x4fc   :  { %v1294_v52 = vadd.f32 %v7363_v50, %v6542_v43 }
 0x4fd   :  { %v1285_v55 = vpop.f32.mrf.mxu1 }
 0x4fe   :  { %v6557_v57 = vmul.f32 -1.442695, %v1294_v52  ;;  %v1286_v61 = vadd.f32 %v6542_v43, %v1285_v55 }
 0x4ff   :  { %v7364_v1 = vpop.f32.mrf.mxu1 }
 0x500   :  { %8176 = vpow2.f32 %v6557_v57  ;;  %v6555_v58 = vmul.f32 -1.442695, %v1286_v61  ;;  %v1297_v4 = vadd.f32 %v7364_v1, %v6542_v43 }
 0x501   :  { %8178 = vpow2.f32 %v6554_v53  ;;  %v1288_v8 = vpop.f32.mrf.mxu1 }
 0x502   :  { %8180 = vpow2.f32 %v6555_v58  ;;  %v6558_v46 = vmul.f32 -1.442695, %v1297_v4  ;;  %v1289_v9 = vadd.f32 %v6542_v43, %v1288_v8 }
 0x503   :  { %8182 = vpow2.f32 %v6553_v62 }
 0x504   :  { %8184 = vpow2.f32 %v6558_v46  ;;  %v6556_v11 = vmul.f32 -1.442695, %v1289_v9 }
 0x505   :  { %8186 = vpow2.f32 %v6552_v5 }
 0x506   :  { %8188 = vpow2.f32 %v6556_v11 }
 0x507   :  { %8190 = vpow2.f32 %v6551_v10 }
 0x50d   :  { %v8177_v12 = vpop.eup %8176 }
 0x50e   :  { %v8179_v13 = vpop.eup %8178  ;;  %v1330_v15 = vadd.f32 1.0, %v8177_v12 }
 0x50f   :  { %v8181_v16 = vpop.eup %8180  ;;  %v1327_v20 = vadd.f32 1.0, %v8179_v13 }
 0x510   :  { %v8183_v17 = vpop.eup %8182  ;;  %8192 = vrcp.f32 %v1330_v15  ;;  %v1328_v18 = vadd.f32 1.0, %v8181_v16 }
 0x511   :  { %v8185_v19 = vpop.eup %8184  ;;  %v1326_v24 = vadd.f32 1.0, %v8183_v17 }
 0x512   :  { %v8187_v23 = vpop.eup %8186  ;;  %v1331_v60 = vadd.f32 1.0, %v8185_v19  ;;  %8194 = vrcp.f32 %v1328_v18 }
 0x513   :  { %v8189_v7 = vpop.eup %8188  ;;  %v1325_v27 = vadd.f32 1.0, %v8187_v23  ;;  %v7904_v23 = vld [vmem:[#allocation11 + $0x78] sm:$0xff]  }
 0x514   :  { %8196 = vrcp.f32 %v1331_v60  ;;  %v1329_v25 = vadd.f32 1.0, %v8189_v7  ;;  %v8191_v26 = vpop.eup %8190  ;;  %v206_v60 = vld [vmem:[%s9817_s30] sm:$0xff] }
 0x515   :  { %8198 = vrcp.f32 %v1327_v20  ;;  %v1324_v30 = vadd.f32 1.0, %v8191_v26  ;;  %v7905_v7 = vld [vmem:[#allocation11 + $0x38] sm:$0xff]   ;;  %v7906_v26 = vld [vmem:[#allocation11 + $0x70] sm:$0xff]  }
 0x516   :  { %8200 = vrcp.f32 %v1329_v25 }
 0x517   :  { %8202 = vrcp.f32 %v1326_v24 }
 0x518   :  { %8204 = vrcp.f32 %v1325_v27  ;;  %v7907_v27 = vld [vmem:[#allocation11 + $0x30] sm:$0xff]  }
 0x519   :  { %8206 = vrcp.f32 %v1324_v30  ;;  %v7908_v30 = vld [vmem:[#allocation11 + $0x68] sm:$0xff]  }
 0x51d   :  { %v8193_v31 = vpop.eup %8192 }
 0x51e   :  { %v1354_v32 = vmul.f32 %v8193_v31, %v1294_v52  ;;  %v7909_v31 = vld [vmem:[#allocation11 + $0x28] sm:$0xff]  }
 0x51f   :  { %v8195_v14 = vpop.eup %8194 }
 0x520   :  { %v1369_v21 = vmul.f32 %v6559_v33, %v1354_v32  ;;  %v1352_v37 = vmul.f32 %v8195_v14, %v1286_v61  ;;  %v7910_v32 = vld [vmem:[#allocation11 + $0x60] sm:$0xff]   ;;  %v7912_v14 = vld [vmem:[#allocation11 + $0x58] sm:$0xff]  }
 0x521   :  { %v8197_v34 = vpop.eup %8196 }
 0x522   :  { %v8199_v28 = vpop.eup %8198  ;;  %v1355_v35 = vmul.f32 %v8197_v34, %v1297_v4  ;;  %1383 = vadd.xlane.f32.xlu0 %v1369_v21  ;;  %v1367_v50 = vmul.f32 %v6559_v33, %v1352_v37  ;;  %v7913_v21 = vld [vmem:[#allocation11 + $0x18] sm:$0xff]   ;;  %v7914_v34 = vld [vmem:[#allocation11 + $0x50] sm:$0xff]   ;;  %v7918_v37 = vld [vmem:[#allocation11 + $0x40] sm:$0xff]  }
 0x523   :  { %v8201_v36 = vpop.eup %8200  ;;  %v1351_v41 = vmul.f32 %v8199_v28, %v9056_v44  ;;  %v7915_v28 = vld [vmem:[#allocation11 + $0x10] sm:$0xff]  }
 0x524   :  { %v1370_v38 = vmul.f32 %v6559_v33, %v1355_v35  ;;  %v1353_v39 = vmul.f32 %v8201_v36, %v1289_v9  ;;  %v8203_v40 = vpop.eup %8202  ;;  %v7916_v35 = vld [vmem:[#allocation11 + $0x48] sm:$0xff]  }
 0x525   :  { %v8205_v43 = vpop.eup %8204  ;;  %v1350_v45 = vmul.f32 %v8203_v40, %v9058_v47  ;;  %v1366_v53 = vmul.f32 %v6559_v33, %v1351_v41  ;;  %v7917_v36 = vld [vmem:[#allocation11 + $0x8] sm:$0xff]   ;;  %v7921_v40 = vld [vmem:[#allocation13 + $0x30] sm:$0xff]  }
 0x526   :  { %1385 = vadd.xlane.f32.xlu1 %v1370_v38  ;;  %v1368_v42 = vmul.f32 %v6559_v33, %v1353_v39  ;;  %v8207_v52 = vpop.eup %8206  ;;  %v1349_v55 = vmul.f32 %v8205_v43, %v9061_v54  ;;  %v7919_v38 = vld [vmem:[#allocation11] sm:$0xff]   ;;  %v7920_v39 = vld [vmem:[#allocation13 + $0x38] sm:$0xff]   ;;  %v7922_v41 = vld [vmem:[#allocation13 + $0x28] sm:$0xff]  }
 0x527   :  { %v1348_v57 = vmul.f32 %v8207_v52, %v9064_v3  ;;  %v1365_v61 = vmul.f32 %v6559_v33, %v1350_v45  ;;  %7397 = vmatpush3.bf16.msra.mxu1 %v7920_v39  ;;  %v7924_v43 = vld [vmem:[#allocation13 + $0x18] sm:$0xff]   ;;  %v7926_v45 = vld [vmem:[#allocation13 + $0x8] sm:$0xff]  }
 0x528   :  { %1381 = vadd.xlane.f32.xlu0 %v1368_v42  ;;  %v1364_v62 = vmul.f32 %v6559_v33, %v1349_v55  ;;  %7398 = vmatprep.subr.bf16.mxu1 %v8719_v0  ;;  %v7923_v42 = vld [vmem:[#allocation13 + $0x20] sm:$0xff]   ;;  %v7928_v52 = vld [vmem:[#allocation8 + $0xf0] ss:$8 sps:$4 sm:$0xff]  }
 0x529   :  { %v1363_v44 = vmul.f32 %v6559_v33, %v1348_v57  ;;  %v7911_v33 = vld [vmem:[#allocation11 + $0x20] sm:$0xff]   ;;  %v8476_v39 = vld [vmem:[%s9813_s9 + $0x18] sm:$0xff] }
 0x52a   :  { %1379 = vadd.xlane.f32.xlu1 %v1367_v50  ;;  %v7927_v50 = vld [vmem:[#allocation13] sm:$0xff]  }
 0x52b   :  { %7399 = vmatpush3.bf16.msra.mxu1 %v7921_v40  ;;  %v7933_v55 = vld [vmem:[#allocation8 + $0xe4] ss:$8 sps:$4 sm:$0xff]   ;;  %v7931_v57 = vld [vmem:[#allocation8 + $0xe0] ss:$8 sps:$4 sm:$0xff]  }
 0x52c   :  { %1377 = vadd.xlane.f32.xlu0 %v1366_v53  ;;  %7400 = vmatprep.subr.bf16.mxu1 %v8719_v0  ;;  %v7930_v53 = vld [vmem:[#allocation8 + $0xf4] ss:$8 sps:$4 sm:$0xff]  }
 0x52d   :  { %v8477_v40 = vld [vmem:[%s9813_s9 + $0x20] sm:$0xff] }
 0x52e   :  { %1375 = vadd.xlane.f32.xlu1 %v1365_v61 }
 0x52f   :  { %7401 = vmatpush3.bf16.msra.mxu1 %v7922_v41 }
 0x530   :  { %1373 = vadd.xlane.f32.xlu0 %v1364_v62  ;;  %7402 = vmatprep.subr.bf16.mxu1 %v8719_v0 }
 0x532   :  { %1371 = vadd.xlane.f32.xlu1 %v1363_v44 }
 0x533   :  { %7403 = vmatpush3.bf16.msra.mxu1 %v7923_v42  ;;  %v8478_v42 = vld [vmem:[%s9813_s9 + $0x28] sm:$0xff] }
 0x534   :  { %7404 = vmatprep.subr.bf16.mxu1 %v8719_v0 }
 0x537   :  { %7405 = vmatpush3.bf16.msra.mxu1 %v7924_v43  ;;  %v8479_v43 = vld [vmem:[%s9813_s9 + $0x30] sm:$0xff] }
 0x538   :  { %7406 = vmatprep.subr.bf16.mxu1 %v8719_v0 }
 0x5ab   :  { %v1384_v1 = vpop.xlane.xlu0 %1383 }
 0x5ac   :  { %v1393_v58 = vmul.f32 %v1384_v1, %v9013_v6  ;;  %v6562_v1 = vld [vmem:[%s9780_s17] ss:$0 sm:$0xff] }
 0x5ae   :  { %1415 = vrot.lane.b32.xlu1 %v1393_v58, %s8722_s29 }
 0x5af   :  { %v1386_v47 = vpop.xlane.xlu1 %1385 }
 0x5b0   :  { %v1394_v4 = vmul.f32 %v9007_v2, %v1386_v47 }
 0x5b1   :  { %v1382_v5 = vpop.xlane.xlu0 %1381 }
 0x5b2   :  { %v1392_v54 = vmul.f32 %v8996_v59, %v1382_v5  ;;  %1417 = vrot.lane.b32.xlu0 %v1394_v4, %s8722_s29 }
 0x5b3   :  { %v1380_v3 = vpop.xlane.xlu1 %1379 }
 0x5b4   :  { %v1391_v8 = vmul.f32 %v1380_v3, %v9003_v63  ;;  %1413 = vrot.lane.b32.xlu1 %v1392_v54, %s8722_s29 }
 0x5b5   :  { %v1378_v46 = vpop.xlane.xlu0 %1377 }
 0x5b6   :  { %v1390_v9 = vmul.f32 %v8981_v51, %v1378_v46  ;;  %1411 = vrot.lane.b32.xlu0 %v1391_v8, %s8722_s29  ;;  %v207_v51 = vld [vmem:[%s9816_s3] sm:$0xff] }
 0x5b7   :  { %v1376_v6 = vpop.xlane.xlu1 %1375 }
 0x5b8   :  { %v1389_v10 = vmul.f32 %v1376_v6, %v8991_v56  ;;  %1409 = vrot.lane.b32.xlu1 %v1390_v9, %s8722_s29  ;;  %v1545_v56 = vpop.f32.mrf.mxu1 }
 0x5b9   :  { %v1374_v2 = vpop.xlane.xlu0 %1373  ;;  %v1551_v24 = vpack.c.bf16 %v1545_v56, %v1545_v56  ;;  %v6608_v56 = vld [vmem:[%s9787_s24 + $0x4] sm:$0xf] }
 0x5ba   :  { %v1388_v59 = vmul.f32 %v8973_v48, %v1374_v2  ;;  %1407 = vrot.lane.b32.xlu0 %v1389_v10, %s8722_s29  ;;  %v7394_v12 = vpop.f32.mrf.mxu1  ;;  %v6605_v2 = vld [vmem:[%s9786_s23 + $0x4] sm:$0xf] }
 0x5bb   :  { %v1372_v11 = vpop.xlane.xlu1 %1371  ;;  %v8473_v12 = vld [vmem:[%s9813_s9] sm:$0xff] }
 0x5bc   :  { %v1387_v63 = vmul.f32 %v1372_v11, %v8976_v49  ;;  %1405 = vrot.lane.b32.xlu1 %v1388_v59, %s8722_s29  ;;  %v1548_v13 = vpop.f32.mrf.mxu1 }
 0x5bd   :  { %v7936_v13 = vld [vmem:[#allocation8 + $0xd4] ss:$8 sps:$4 sm:$0xff]  }
 0x5be   :  { %1403 = vrot.lane.b32.xlu0 %v1387_v63, %s8722_s29  ;;  %v7395_v15 = vpop.f32.mrf.mxu1  ;;  %v8472_v63 = vld [vmem:[%s9812_s2] sm:$0xff] }
 0x5bf   :  { %v7934_v15 = vld [vmem:[#allocation8 + $0xd0] ss:$8 sps:$4 sm:$0xff]  }
 0x5c0   :  { %1503 = vperm.xlu1 %7859, %v207_v51  }
 0x620   :  { %v1416_v16 = vpop.permute.xlu1 %1415 }
 0x624   :  { %v1418_v48 = vpop.permute.xlu0 %1417 }
 0x625   :  { %7366 = vmatpush3.msra.mxu0 %v1418_v48  ;;  %v7937_v48 = vld [vmem:[#allocation8 + $0xc0] ss:$8 sps:$4 sm:$0xff]  }
 0x626   :  { %7367 = vmatprep.subr.mxu0 %v8719_v0  ;;  %v1414_v17 = vpop.permute.xlu1 %1413 }
 0x627   :  { %7368 = vmatpush3.msra.mxu0 %v1416_v16  ;;  %v7939_v16 = vld [vmem:[#allocation8 + $0xc4] ss:$8 sps:$4 sm:$0xff]  }
 0x628   :  { %v1412_v49 = vpop.permute.xlu0 %1411  ;;  %7369 = vmatprep.subr.mxu0 %v8719_v0 }
 0x629   :  { %7370 = vmatpush3.msra.mxu0 %v1414_v17  ;;  %v7942_v17 = vld [vmem:[#allocation8 + $0xb4] ss:$8 sps:$4 sm:$0xff]  }
 0x62a   :  { %7371 = vmatprep.subr.mxu0 %v8719_v0  ;;  %v1410_v18 = vpop.permute.xlu1 %1409 }
 0x62b   :  { %7372 = vmatpush3.msra.mxu0 %v1412_v49  ;;  %v7940_v49 = vld [vmem:[#allocation8 + $0xb0] ss:$8 sps:$4 sm:$0xff]  }
 0x62c   :  { %v1408_v19 = vpop.permute.xlu0 %1407  ;;  %7373 = vmatprep.subr.mxu0 %v8719_v0 }
 0x62d   :  { %7374 = vmatpush3.msra.mxu0 %v1410_v18  ;;  %v7945_v18 = vld [vmem:[#allocation8 + $0xa4] ss:$8 sps:$4 sm:$0xff]  }
 0x62e   :  { %7375 = vmatprep.subr.mxu0 %v8719_v0  ;;  %v1406_v20 = vpop.permute.xlu1 %1405 }
 0x62f   :  { %7376 = vmatpush3.msra.mxu0 %v1408_v19  ;;  %v7943_v19 = vld [vmem:[#allocation8 + $0xa0] ss:$8 sps:$4 sm:$0xff]  }
 0x630   :  { %7377 = vmatprep.subr.mxu0 %v8719_v0  ;;  %v1404_v25 = vpop.permute.xlu0 %1403 }
 0x631   :  { %7378 = vmatpush3.msra.mxu0 %v1406_v20  ;;  %v7948_v20 = vld [vmem:[#allocation8 + $0x94] ss:$8 sps:$4 sm:$0xff]  }
 0x632   :  { %7379 = vmatprep.subr.mxu0 %v8719_v0 }
 0x633   :  { %7380 = vmatpush3.msra.mxu0 %v1404_v25 }
 0x634   :  { %7382 = vmatmul.mubr.msk.f32.vlgmr.msra.gmra.mxu0 %vm1427_vm4, %v206_v60  ;;  %6972 = vmatprep.subr.bf16.mxu0 %v7904_v23  ;;  %v7946_v23 = vld [vmem:[#allocation8 + $0x90] ss:$8 sps:$4 sm:$0xff]   ;;  %v7951_v60 = vld [vmem:[#allocation8 + $0x84] ss:$8 sps:$4 sm:$0xff]  }
 0x635   :  { %6973 = vmatpush3.bf16.msra.mxu0 %v7905_v7  ;;  %1719 = vmatprep.mubr.bf16.mxu0 %v1551_v24  ;;  %v7949_v7 = vld [vmem:[#allocation8 + $0x80] ss:$8 sps:$4 sm:$0xff]   ;;  %v6580_v24 = vld [vmem:[%s9782_s19] ss:$0 sm:$0xff] }
 0x636   :  { %6974 = vmatprep.subr.bf16.mxu0 %v7906_v26 }
 0x639   :  { %6975 = vmatpush3.bf16.msra.mxu0 %v7907_v27 }
 0x63a   :  { %6976 = vmatprep.subr.bf16.mxu0 %v7908_v30 }
 0x63b   :  { %v9121_v59 = vpop.permute.xlu1 %1503 }
 0x63d   :  { %6977 = vmatpush3.bf16.msra.mxu0 %v7909_v31 }
 0x63e   :  { %6978 = vmatprep.subr.bf16.mxu0 %v7910_v32 }
 0x641   :  { %6979 = vmatpush3.bf16.msra.mxu0 %v7911_v33 }
 0x642   :  { %6980 = vmatprep.subr.bf16.mxu0 %v7912_v14 }
 0x645   :  { %6981 = vmatpush3.bf16.msra.mxu0 %v7913_v21 }
 0x646   :  { %6982 = vmatprep.subr.bf16.mxu0 %v7914_v34 }
 0x649   :  { %6983 = vmatpush3.bf16.msra.mxu0 %v7915_v28 }
 0x64a   :  { %6984 = vmatprep.subr.bf16.mxu0 %v7916_v35  ;;  %v8474_v35 = vld [vmem:[%s9813_s9 + $0x8] sm:$0xff] }
 0x64d   :  { %6985 = vmatpush3.bf16.msra.mxu0 %v7917_v36  ;;  %v8475_v36 = vld [vmem:[%s9813_s9 + $0x10] sm:$0xff] }
 0x64e   :  { %6986 = vmatprep.subr.bf16.mxu0 %v7918_v37 }
 0x651   :  { %6987 = vmatpush3.bf16.msra.mxu0 %v7919_v38 }
 0x652   :  { %1948 = vmatprep.subr.bf16.mxu0 %v7930_v53 }
 0x654   :  { %1720 = vmatmul.mubr.bf16.vlgmr.msra.gmra.mxu0 %v8928_v29  ;;  %v7925_v29 = vld [vmem:[#allocation13 + $0x10] sm:$0xff]  }
 0x655   :  { %1980 = vmatprep.mubr.bf16.mxu0 %v8721_v22  ;;  %7407 = vmatpush3.bf16.msra.mxu1 %v7925_v29  ;;  %v8480_v29 = vld [vmem:[%s9813_s9 + $0x38] sm:$0xff] }
 0x656   :  { %7408 = vmatprep.subr.bf16.mxu1 %v8719_v0  ;;  %1949 = vmatpush1.bf16.msra.mxu0 %v7928_v52 }
 0x657   :  { %1950 = vmatprep.subr.bf16.mxu0 %v7933_v55 }
 0x659   :  { %7409 = vmatpush3.bf16.msra.mxu1 %v7926_v45  ;;  %v8481_v45 = vld [vmem:[%s9814_s5] sm:$0xff]  }
 0x65a   :  { %7410 = vmatprep.subr.bf16.mxu1 %v8719_v0  ;;  %1951 = vmatpush1.bf16.msra.mxu0 %v7931_v57 }
 0x65b   :  { %1952 = vmatprep.subr.bf16.mxu0 %v7936_v13 }
 0x65d   :  { %7411 = vmatpush3.bf16.msra.mxu1 %v7927_v50 }
 0x65e   :  { %7416 = vmatprep.subr.mxu1 %v8719_v0  ;;  %1953 = vmatpush1.bf16.msra.mxu0 %v7934_v15 }
 0x65f   :  { %1954 = vmatprep.subr.bf16.mxu0 %v7939_v16 }
 0x662   :  { %1955 = vmatpush1.bf16.msra.mxu0 %v7937_v48  ;;  %v8482_v48 = vld [vmem:[%s9814_s5 + $0x8] sm:$0xff]  }
 0x663   :  { %1956 = vmatprep.subr.bf16.mxu0 %v7942_v17  ;;  %v8483_v17 = vld [vmem:[%s9814_s5 + $0x10] sm:$0xff]  }
 0x666   :  { %1957 = vmatpush1.bf16.msra.mxu0 %v7940_v49 }
 0x667   :  { %1958 = vmatprep.subr.bf16.mxu0 %v7945_v18  ;;  %v8484_v18 = vld [vmem:[%s9814_s5 + $0x18] sm:$0xff]  }
 0x66a   :  { %1959 = vmatpush1.bf16.msra.mxu0 %v7943_v19 }
 0x66b   :  { %1960 = vmatprep.subr.bf16.mxu0 %v7948_v20 }
 0x66e   :  { %1961 = vmatpush1.bf16.msra.mxu0 %v7946_v23 }
 0x66f   :  { %1962 = vmatprep.subr.bf16.mxu0 %v7951_v60 }
 0x672   :  { %1963 = vmatpush1.bf16.msra.mxu0 %v7949_v7 }
 0x6f4   :  { %v1497_v61 = vpop.f32.mrf.mxu0 }
 0x6f5   :  { %v1506_v11 = vmul.f32 %v9121_v59, %v1497_v61 }
 0x6f6   :  { %v7383_v62 = vpop.f32.mrf.mxu0 }
 0x6f7   :  { %v9131_v51 = vadd.f32 %v8472_v63, %v1506_v11 }
 0x714   :  { %v6988_v44 = vpop.f32.mrf.mxu0 }
 0x716   :  { %v6989_v58 = vpop.f32.mrf.mxu0 }
 0x717   :  { %v6990_v47 = vadd.f32 %v6989_v58, %v6988_v44 }
 0x718   :  { %v6991_v4 = vpop.f32.mrf.mxu0 }
 0x719   :  { %v1722_v5 = vadd.f32 %v6990_v47, %v6562_v1 }
 0x71a   :  { %v6992_v54 = vpop.f32.mrf.mxu0 }
 0x71b   :  { %v6579_v3 = vmul.f32 -1.442695, %v1722_v5 }
 0x71d   :  { %8208 = vpow2.f32 %v6579_v3 }
 0x72a   :  { %v8209_v8 = vpop.eup %8208 }
 0x72b   :  { %v1730_v46 = vadd.f32 1.0, %v8209_v8 }
 0x72d   :  { %8210 = vrcp.f32 %v1730_v46 }
 0x73a   :  { %v8211_v9 = vpop.eup %8210 }
 0x73b   :  { %v1733_v6 = vmul.f32 %v8211_v9, %v1722_v5 }
 0x73d   :  { %v1734_v10 = vpack.c.bf16 %v1733_v6, %v1733_v6 }
 0x73f   :  { %7413 = vmatmul.mubr.bf16.vlgmr.msra.gmra.mxu1 %v1734_v10 }
 0x740   :  { %7417 = vmatpush3.msk.msra.mxu1 %vm221_vm1, %v6605_v2  ;;  %7418 = vmatprep.mubr.msk.f32.mxu1 %vm8720_vm0, %v8719_v0 }
 0x741   :  { %7421 = vmatprep.subr.mxu1 %v8719_v0 }
 0x747   :  { %7419 = vmatmul.mubr.msk.f32.vlgmr.msra.gmra.mxu1 %vm217_vm2, %v9131_v51 }
 0x748   :  { %7422 = vmatpush3.msk.msra.mxu1 %vm221_vm1, %v6608_v56  ;;  %7423 = vmatprep.mubr.msk.f32.mxu1 %vm8720_vm0, %v8719_v0 }
 0x74b   :  { %7424 = vmatmul.mubr.msk.f32.vlgmr.msra.gmra.mxu1 %vm217_vm2, %v9131_v51 }
 0x74c   :  { %7430 = vmatprep.mubr.msk.f32.mxu1 %vm586_vm3, %v8473_v12 }
 0x7ff   :  { %v1840_v25 = vpop.f32.mrf.mxu1 }
 0x800   :  { %v1841_v26 = vadd.f32 %v6580_v24, %v1840_v25 }
 0x801   :  { %v7414_v27 = vpop.f32.mrf.mxu1 }
 0x802   :  { %v1846_v30 = vand.u32 2147483647, %v1841_v26 }
 0x803   :  { %v1843_v31 = vpop.f32.mrf.mxu1 }
 0x804   :  { %v1847_v32 = vadd.f32 1.0, %v1846_v30 }
 0x805   :  { %v7415_v33 = vpop.f32.mrf.mxu1 }
 0x806   :  { %8212 = vrcp.f32 %v1847_v32 }
 0x807   :  { %v2064_v14 = vpop.f32.mrf.mxu1 }
 0x809   :  { %v7420_v21 = vpop.f32.mrf.mxu1 }
 0x80b   :  { %v2139_v34 = vpop.f32.mrf.mxu1 }
 0x80c   :  { %7426 = vmatprep.subr.mxu1 %v2139_v34 }
 0x80d   :  { %v7425_v28 = vpop.f32.mrf.mxu1  ;;  %7427 = vmatpush3.msra.mxu1 %v2139_v34 }
 0x80e   :  { %7428 = vmatprep.subr.mxu1 %v2064_v14 }
 0x80f   :  { %7429 = vmatpush3.msra.mxu1 %v2064_v14 }
 0x810   :  { %7431 = vmatmul.mubr.msk.f32.vlgmr.msra.gmra.mxu1 %vm586_vm3, %v8474_v35 }
 0x811   :  { %7433 = vmatprep.mubr.msk.f32.mxu1 %vm586_vm3, %v8475_v36 }
 0x813   :  { %v8213_v37 = vpop.eup %8212 }
 0x814   :  { %v1849_v38 = vmul.f32 %v8213_v37, %v1841_v26  ;;  %7434 = vmatmul.mubr.msk.f32.gmra.mxu1 %vm586_vm3, %v8476_v39 }
 0x815   :  { %7436 = vmatprep.mubr.msk.f32.mxu1 %vm586_vm3, %v8477_v40 }
 0x816   :  { %v9166_v41 = vpack.c.bf16 %v1849_v38, %v1849_v38 }
 0x818   :  { %1981 = vmatmul.mubr.bf16.vlgmr.msra.gmra.mxu0 %v9166_v41  ;;  %7437 = vmatmul.mubr.msk.f32.gmra.mxu1 %vm586_vm3, %v8478_v42  ;;  %v7952_v42 = vld [vmem:[#allocation10 + $0x78] sm:$0xff]  }
 0x819   :  { %7439 = vmatprep.mubr.msk.f32.mxu1 %vm586_vm3, %v8479_v43  ;;  %7452 = vmatprep.subr.bf16.mxu0 %v7952_v42 }
 0x81a   :  { %7453 = vmatpush3.bf16.msra.mxu0 %v7952_v42 }
 0x81c   :  { %7440 = vmatmul.mubr.msk.f32.gmra.mxu1 %vm586_vm3, %v8480_v29  ;;  %v7953_v29 = vld [vmem:[#allocation10 + $0x70] sm:$0xff]  }
 0x81d   :  { %7444 = vmatprep.mubr.msk.bf16.mxu1 %vm586_vm3, %v8481_v45  ;;  %7454 = vmatprep.subr.bf16.mxu0 %v7953_v29  ;;  %v7954_v45 = vld [vmem:[#allocation10 + $0x68] sm:$0xff]  }
 0x81e   :  { %7455 = vmatpush3.bf16.msra.mxu0 %v7953_v29 }
 0x81f   :  { %7456 = vmatprep.subr.bf16.mxu0 %v7954_v45 }
 0x822   :  { %7457 = vmatpush3.bf16.msra.mxu0 %v7954_v45 }
 0x8d0   :  { %v9185_v50 = vpop.f32.mrf.mxu1 }
 0x8d1   :  { %v2249_v52 = vmul.f32 %v9185_v50, %v9185_v50 }
 0x8d2   :  { %v9189_v53 = vpop.f32.mrf.mxu1 }
 0x8d3   :  { %v2248_v55 = vmul.f32 %v9189_v53, %v9189_v53  ;;  %v2259_v57 = vsel %vm217_vm2, %v2249_v52, 0.0  ;;  %v2281_v19 = vmul.f32 2.0, %v2249_v52  ;;  %v7955_v52 = vld [vmem:[#allocation10 + $0x60] sm:$0xff]  }
 0x8d4   :  { %2260 = vadd.xlane.f32.xlu1 %v2259_v57  ;;  %v9194_v61 = vpop.f32.mrf.mxu1  ;;  %7458 = vmatprep.subr.bf16.mxu0 %v7955_v52  ;;  %v7957_v57 = vld [vmem:[#allocation10 + $0x50] sm:$0xff]  }
 0x8d5   :  { %v2251_v62 = vmul.f32 %v9194_v61, %v9194_v61  ;;  %v2256_v44 = vsel %vm217_vm2, %v2248_v55, 0.0  ;;  %v2280_v60 = vmul.f32 2.0, %v2248_v55  ;;  %7459 = vmatpush3.bf16.msra.mxu0 %v7955_v52  ;;  %v7956_v55 = vld [vmem:[#allocation10 + $0x58] sm:$0xff]  }
 0x8d6   :  { %2257 = vadd.xlane.f32.xlu0 %v2256_v44  ;;  %v9199_v1 = vpop.f32.mrf.mxu1  ;;  %7460 = vmatprep.subr.bf16.mxu0 %v7956_v55  ;;  %v7959_v44 = vld [vmem:[#allocation10 + $0x40] sm:$0xff]  }
 0x8d7   :  { %v2265_v58 = vsel %vm217_vm2, %v2251_v62, 0.0  ;;  %v2250_v5 = vmul.f32 %v9199_v1, %v9199_v1  ;;  %v2283_v25 = vmul.f32 2.0, %v2251_v62  ;;  %v7958_v62 = vld [vmem:[#allocation10 + $0x48] sm:$0xff]  }
 0x8d8   :  { %v1982_v47 = vpop.f32.mrf.mxu0  ;;  %v9202_v4 = vpop.f32.mrf.mxu1 }
 0x8d9   :  { %v2253_v10 = vmul.f32 %v9202_v4, %v9202_v4  ;;  %v2262_v2 = vsel %vm217_vm2, %v2250_v5, 0.0  ;;  %v2282_v30 = vmul.f32 2.0, %v2250_v5  ;;  %7461 = vmatpush3.bf16.msra.mxu0 %v7956_v55 }
 0x8da   :  { %v1984_v54 = vpop.f32.mrf.mxu0  ;;  %2266 = vadd.xlane.f32.xlu0 %v2265_v58  ;;  %v9206_v3 = vpop.f32.mrf.mxu1  ;;  %7462 = vmatprep.subr.bf16.mxu0 %v7957_v57 }
 0x8db   :  { %v1989_v8 = vpack.c.bf16 %v1984_v54, %v1982_v47  ;;  %v2252_v46 = vmul.f32 %v9206_v3, %v9206_v3  ;;  %v2271_v15 = vsel %vm217_vm2, %v2253_v10, 0.0  ;;  %v2285_v34 = vmul.f32 2.0, %v2253_v10  ;;  %v6620_v54 = vld [vmem:[%s9776_s13 + $0x1] ss:$0 sm:$0xff]  ;;  %v2419_v10 = vld [vmem:[#allocation2 + $0x48] sm:$0xff] }
 0x8dc   :  { %v1986_v9 = vpop.f32.mrf.mxu0  ;;  %v9210_v6 = vpop.f32.mrf.mxu1 }
 0x8dd   :  { %7442 = vmatprep.subr.bf16.mxu1 %v1989_v8  ;;  %v2268_v11 = vsel %vm217_vm2, %v2252_v46, 0.0  ;;  %v2255_v13 = vmul.f32 %v9210_v6, %v9210_v6  ;;  %v2284_v32 = vmul.f32 2.0, %v2252_v46  ;;  %7463 = vmatpush3.bf16.msra.mxu0 %v7957_v57 }
 0x8de   :  { %v1987_v63 = vpop.f32.mrf.mxu0  ;;  %7443 = vmatpush3.bf16.msra.mxu1 %v1989_v8  ;;  %2263 = vadd.xlane.f32.xlu0 %v2262_v2  ;;  %v9216_v56 = vpop.f32.mrf.mxu1 }
 0x8df   :  { %2269 = vadd.xlane.f32.xlu1 %v2268_v11  ;;  %v2254_v12 = vmul.f32 %v9216_v56, %v9216_v56  ;;  %v2277_v49 = vsel %vm217_vm2, %v2255_v13, 0.0  ;;  %v2287_v39 = vmul.f32 2.0, %v2255_v13  ;;  %7464 = vmatprep.subr.bf16.mxu0 %v7958_v62 }
 0x8e1   :  { %v2274_v16 = vsel %vm217_vm2, %v2254_v12, 0.0  ;;  %7445 = vmatmul.mubr.msk.bf16.vlgmr.msra.gmra.mxu1 %vm586_vm3, %v8482_v48  ;;  %v2286_v35 = vmul.f32 2.0, %v2254_v12  ;;  %7465 = vmatpush3.bf16.msra.mxu0 %v7958_v62  ;;  %v2418_v12 = vld [vmem:[#allocation2 + $0x40] sm:$0xff] }
 0x8e2   :  { %2272 = vadd.xlane.f32.xlu0 %v2271_v15  ;;  %7448 = vmatprep.mubr.msk.bf16.mxu1 %vm586_vm3, %v8483_v17 }
 0x8e3   :  { %2275 = vadd.xlane.f32.xlu1 %v2274_v16  ;;  %7466 = vmatprep.subr.bf16.mxu0 %v7959_v44 }
 0x8e5   :  { %7467 = vmatpush3.bf16.msra.mxu0 %v7959_v44 }
 0x8e6   :  { %2278 = vadd.xlane.f32.xlu0 %v2277_v49  ;;  %7500 = vmatprep.subr.mxu0 %v8719_v0 }
 0x8e9   :  { %7449 = vmatmul.mubr.msk.bf16.gmra.mxu1 %vm586_vm3, %v8484_v18 }
 0x95d   :  { %v2261_v20 = vpop.xlane.xlu1 %2260 }
 0x95e   :  { %v2289_v23 = vsub.f32 %v2261_v20, %v2281_v19  ;;  %v2421_v19 = vld [vmem:[#allocation2 + $0x58] sm:$0xff] }
 0x95f   :  { %v2258_v7 = vpop.xlane.xlu0 %2257 }
 0x960   :  { %v2288_v24 = vsub.f32 %v2258_v7, %v2280_v60  ;;  %2305 = vperm.xlu0 %7858, %v2289_v23  }
 0x962   :  { %2300 = vperm.xlu1 %7859, %v2288_v24  }
 0x963   :  { %v2267_v26 = vpop.xlane.xlu0 %2266 }
 0x964   :  { %v2291_v27 = vsub.f32 %v2267_v26, %v2283_v25 }
 0x966   :  { %2315 = vperm.xlu1 %7859, %v2291_v27  }
 0x967   :  { %v2264_v31 = vpop.xlane.xlu0 %2263 }
 0x968   :  { %v2290_v33 = vsub.f32 %v2264_v31, %v2282_v30  ;;  %v2270_v14 = vpop.xlane.xlu1 %2269  ;;  %v2420_v30 = vld [vmem:[#allocation2 + $0x50] sm:$0xff] }
 0x969   :  { %v2292_v21 = vsub.f32 %v2270_v14, %v2284_v32 }
 0x96a   :  { %2310 = vperm.xlu1 %7859, %v2290_v33   ;;  %v2422_v33 = vld [vmem:[#allocation2 + $0x60] sm:$0xff] }
 0x96b   :  { %2320 = vperm.xlu0 %7858, %v2292_v21   ;;  %v2273_v28 = vpop.xlane.xlu0 %2272 }
 0x96c   :  { %v2293_v36 = vsub.f32 %v2273_v28, %v2285_v34  ;;  %v2276_v37 = vpop.xlane.xlu1 %2275 }
 0x96d   :  { %v2294_v38 = vsub.f32 %v2276_v37, %v2286_v35 }
 0x96e   :  { %2325 = vperm.xlu1 %7859, %v2293_v36  }
 0x96f   :  { %2330 = vperm.xlu0 %7858, %v2294_v38   ;;  %v2279_v40 = vpop.xlane.xlu0 %2278 }
 0x970   :  { %v2295_v43 = vsub.f32 %v2279_v40, %v2287_v39  ;;  %v2423_v40 = vld [vmem:[#allocation2 + $0x68] sm:$0xff] }
 0x972   :  { %2335 = vperm.xlu1 %7859, %v2295_v43   ;;  %v2424_v43 = vld [vmem:[#allocation2 + $0x70] sm:$0xff] }
 0x9a1   :  { %v7446_v58 = vpop.f32.mrf.mxu1 }
 0x9a3   :  { %v2386_v47 = vpop.f32.mrf.mxu1 }
 0x9a5   :  { %v7447_v5 = vpop.f32.mrf.mxu1 }
 0x9a7   :  { %v2389_v46 = vpop.f32.mrf.mxu1 }
 0x9a9   :  { %v7450_v13 = vpop.f32.mrf.mxu1 }
 0x9ab   :  { %v2402_v20 = vpop.f32.mrf.mxu1 }
 0x9ad   :  { %v7451_v31 = vpop.f32.mrf.mxu1 }
 0x9af   :  { %v2405_v38 = vpop.f32.mrf.mxu1 }
 0x9db   :  { %v2306_v8 = vpop.permute.xlu0 %2305 }
 0x9dc   :  { %v2345_v9 = vmul.f32 %v6620_v54, %v2306_v8 }
 0x9dd   :  { %v2301_v2 = vpop.permute.xlu1 %2300 }
 0x9de   :  { %v2390_v11 = vadd.f32 %v2389_v46, %v2345_v9  ;;  %v2344_v63 = vmul.f32 %v6620_v54, %v2301_v2 }
 0x9e0   :  { %v9241_v15 = vadd.f32 %v2419_v10, %v2390_v11  ;;  %v2387_v16 = vadd.f32 %v2386_v47, %v2344_v63 }
 0x9e1   :  { %v2316_v48 = vpop.permute.xlu1 %2315 }
 0x9e2   :  { %v6626_v17 = vmul.f32 -1.442695, %v9241_v15  ;;  %v9244_v49 = vadd.f32 %v2418_v12, %v2387_v16  ;;  %v2347_v18 = vmul.f32 %v6620_v54, %v2316_v48 }
 0x9e4   :  { %8214 = vpow2.f32 %v6626_v17  ;;  %v6625_v23 = vmul.f32 -1.442695, %v9244_v49  ;;  %v2398_v60 = vadd.f32 %v7447_v5, %v2347_v18 }
 0x9e5   :  { %v2311_v7 = vpop.permute.xlu1 %2310 }
 0x9e6   :  { %8216 = vpow2.f32 %v6625_v23  ;;  %v9247_v24 = vadd.f32 %v2421_v19, %v2398_v60  ;;  %v2321_v25 = vpop.permute.xlu0 %2320  ;;  %v2346_v26 = vmul.f32 %v6620_v54, %v2311_v7 }
 0x9e7   :  { %v2348_v27 = vmul.f32 %v6620_v54, %v2321_v25 }
 0x9e8   :  { %v6628_v32 = vmul.f32 -1.442695, %v9247_v24  ;;  %v2395_v14 = vadd.f32 %v7446_v58, %v2346_v26  ;;  %v2425_v58 = vld [vmem:[#allocation2 + $0x78] sm:$0xff] }
 0x9e9   :  { %v2403_v21 = vadd.f32 %v2402_v20, %v2348_v27  ;;  %v2326_v34 = vpop.permute.xlu1 %2325 }
 0x9ea   :  { %8218 = vpow2.f32 %v6628_v32  ;;  %v2428_v28 = vadd.f32 %v2420_v30, %v2395_v14  ;;  %v2331_v35 = vpop.permute.xlu0 %2330  ;;  %v2349_v36 = vmul.f32 %v6620_v54, %v2326_v34 }
 0x9eb   :  { %v2430_v37 = vadd.f32 %v2422_v33, %v2403_v21  ;;  %v2350_v39 = vmul.f32 %v6620_v54, %v2331_v35 }
 0x9ec   :  { %v6627_v42 = vmul.f32 -1.442695, %v2428_v28  ;;  %v2406_v29 = vadd.f32 %v2405_v38, %v2349_v36 }
 0x9ed   :  { %v6629_v45 = vmul.f32 -1.442695, %v2430_v37  ;;  %v2411_v52 = vadd.f32 %v7450_v13, %v2350_v39  ;;  %v2336_v55 = vpop.permute.xlu1 %2335 }
 0x9ee   :  { %8220 = vpow2.f32 %v6627_v42  ;;  %v2431_v57 = vadd.f32 %v2423_v40, %v2406_v29  ;;  %v2351_v62 = vmul.f32 %v6620_v54, %v2336_v55  ;;  %v7965_v55 = vld [vmem:[#allocation14 + $0x50] sm:$0xff]  }
 0x9ef   :  { %8222 = vpow2.f32 %v6629_v45  ;;  %v2432_v44 = vadd.f32 %v2424_v43, %v2411_v52  ;;  %v7960_v45 = vld [vmem:[#allocation14 + $0x78] sm:$0xff]  }
 0x9f0   :  { %v6630_v47 = vmul.f32 -1.442695, %v2431_v57  ;;  %v2414_v5 = vadd.f32 %v7451_v31, %v2351_v62  ;;  %7476 = vmatprep.subr.bf16.mxu1 %v7960_v45  ;;  %v7964_v52 = vld [vmem:[#allocation14 + $0x58] sm:$0xff]   ;;  %v7967_v62 = vld [vmem:[#allocation14 + $0x40] sm:$0xff]  }
 0x9f1   :  { %v8215_v8 = vpop.eup %8214  ;;  %v6631_v46 = vmul.f32 -1.442695, %v2432_v44  ;;  %7477 = vmatpush3.bf16.msra.mxu1 %v7960_v45 }
 0x9f2   :  { %v2459_v9 = vadd.f32 1.0, %v8215_v8  ;;  %8224 = vpow2.f32 %v6630_v47  ;;  %v2433_v10 = vadd.f32 %v2425_v58, %v2414_v5 }
 0x9f3   :  { %v8217_v2 = vpop.eup %8216  ;;  %8226 = vpow2.f32 %v6631_v46 }
 0x9f4   :  { %8228 = vrcp.f32 %v2459_v9  ;;  %v2458_v11 = vadd.f32 1.0, %v8217_v2  ;;  %v6632_v63 = vmul.f32 -1.442695, %v2433_v10 }
 0x9f6   :  { %8230 = vrcp.f32 %v2458_v11 }
 0x9f7   :  { %v8219_v12 = vpop.eup %8218  ;;  %8232 = vpow2.f32 %v6632_v63 }
 0x9f8   :  { %v2461_v13 = vadd.f32 1.0, %v8219_v12 }
 0x9fa   :  { %8234 = vrcp.f32 %v2461_v13 }
 0x9fb   :  { %v8221_v54 = vpop.eup %8220 }
 0x9fc   :  { %v8223_v16 = vpop.eup %8222  ;;  %v2460_v48 = vadd.f32 1.0, %v8221_v54 }
 0x9fd   :  { %v2462_v17 = vadd.f32 1.0, %v8223_v16 }
 0x9fe   :  { %8236 = vrcp.f32 %v2460_v48 }
 0x9ff   :  { %v8225_v18 = vpop.eup %8224  ;;  %8238 = vrcp.f32 %v2462_v17 }
 0xa00   :  { %v8227_v19 = vpop.eup %8226  ;;  %v2463_v20 = vadd.f32 1.0, %v8225_v18 }
 0xa01   :  { %v8229_v23 = vpop.eup %8228  ;;  %v2464_v60 = vadd.f32 1.0, %v8227_v19 }
 0xa02   :  { %8240 = vrcp.f32 %v2463_v20  ;;  %v2483_v26 = vmul.f32 %v8229_v23, %v9241_v15 }
 0xa03   :  { %v8231_v7 = vpop.eup %8230  ;;  %8242 = vrcp.f32 %v2464_v60 }
 0xa04   :  { %v8233_v25 = vpop.eup %8232  ;;  %v2482_v27 = vmul.f32 %v8231_v7, %v9244_v49 }
 0xa05   :  { %v2465_v30 = vadd.f32 1.0, %v8233_v25 }
 0xa06   :  { %v2490_v31 = vpack.c.bf16 %v2483_v26, %v2482_v27 }
 0xa07   :  { %8244 = vrcp.f32 %v2465_v30  ;;  %v8235_v32 = vpop.eup %8234 }
 0xa08   :  { %7468 = vmatprep.mubr.bf16.mxu0 %v2490_v31  ;;  %v2485_v14 = vmul.f32 %v8235_v32, %v9247_v24  ;;  %v7961_v24 = vld [vmem:[#allocation14 + $0x70] sm:$0xff]  }
 0xa09   :  { %7478 = vmatprep.subr.bf16.mxu1 %v7961_v24 }
 0xa0a   :  { %7479 = vmatpush3.bf16.msra.mxu1 %v7961_v24 }
 0xa0b   :  { %v8237_v33 = vpop.eup %8236 }
 0xa0c   :  { %v2484_v21 = vmul.f32 %v8237_v33, %v2428_v28  ;;  %v8239_v34 = vpop.eup %8238  ;;  %v7962_v28 = vld [vmem:[#allocation14 + $0x68] sm:$0xff]  }
 0xa0d   :  { %v2486_v38 = vmul.f32 %v8239_v34, %v2430_v37  ;;  %7480 = vmatprep.subr.bf16.mxu1 %v7962_v28  ;;  %v7963_v37 = vld [vmem:[#allocation14 + $0x60] sm:$0xff]  }
 0xa0e   :  { %v2491_v35 = vpack.c.bf16 %v2485_v14, %v2484_v21  ;;  %7481 = vmatpush3.bf16.msra.mxu1 %v7962_v28 }
 0xa0f   :  { %v8241_v36 = vpop.eup %8240  ;;  %7482 = vmatprep.subr.bf16.mxu1 %v7963_v37 }
 0xa10   :  { %7469 = vmatmul.mubr.bf16.vlgmr.msra.gmra.mxu0 %v2491_v35  ;;  %v2487_v39 = vmul.f32 %v8241_v36, %v2431_v57  ;;  %v8243_v40 = vpop.eup %8242  ;;  %v7966_v57 = vld [vmem:[#allocation14 + $0x48] sm:$0xff]  }
 0xa11   :  { %v2488_v49 = vmul.f32 %v8243_v40, %v2432_v44  ;;  %v6634_v44 = vld [vmem:[%s9778_s15 + $0x1] ss:$0 sm:$0xff] }
 0xa12   :  { %v2492_v15 = vpack.c.bf16 %v2487_v39, %v2486_v38  ;;  %7483 = vmatpush3.bf16.msra.mxu1 %v7963_v37 }
 0xa13   :  { %7484 = vmatprep.subr.bf16.mxu1 %v7964_v52 }
 0xa14   :  { %v8245_v42 = vpop.eup %8244  ;;  %7472 = vmatprep.mubr.bf16.mxu0 %v2492_v15 }
 0xa15   :  { %v2489_v43 = vmul.f32 %v8245_v42, %v2433_v10 }
 0xa16   :  { %7485 = vmatpush3.bf16.msra.mxu1 %v7964_v52 }
 0xa17   :  { %v2493_v29 = vpack.c.bf16 %v2489_v43, %v2488_v49  ;;  %7486 = vmatprep.subr.bf16.mxu1 %v7965_v55 }
 0xa19   :  { %7473 = vmatmul.mubr.bf16.gmra.mxu0 %v2493_v29 }
 0xa1a   :  { %7516 = vmatprep.mubr.msk.f32.mxu0 %vm8720_vm0, %v8719_v0  ;;  %7487 = vmatpush3.bf16.msra.mxu1 %v7965_v55 }
 0xa1b   :  { %7488 = vmatprep.subr.bf16.mxu1 %v7966_v57 }
 0xa1e   :  { %7489 = vmatpush3.bf16.msra.mxu1 %v7966_v57 }
 0xa1f   :  { %7490 = vmatprep.subr.bf16.mxu1 %v7967_v62 }
 0xa22   :  { %7491 = vmatpush3.bf16.msra.mxu1 %v7967_v62 }
 0xa23   :  { %7519 = vmatprep.subr.bf16.mxu1 %v8719_v0 }
 0xad0   :  { %v7470_v58 = vpop.f32.mrf.mxu0 }
 0xad1   :  { %v2610_v47 = vadd.f32 %v7470_v58, %v6634_v44 }
 0xad2   :  { %v2601_v5 = vpop.f32.mrf.mxu0 }
 0xad3   :  { %v2602_v8 = vadd.f32 %v6634_v44, %v2601_v5  ;;  %v2634_v46 = vand.u32 2147483647, %v2610_v47 }
 0xad4   :  { %v7471_v9 = vpop.f32.mrf.mxu0 }
 0xad5   :  { %v2632_v10 = vand.u32 2147483647, %v2602_v8  ;;  %v2613_v2 = vadd.f32 %v7471_v9, %v6634_v44  ;;  %v2642_v54 = vadd.f32 1.0, %v2634_v46  ;;  %v6644_v46 = vld [vmem:[%s9784_s21 + $0x1] ss:$0 sm:$0xff] }
 0xad6   :  { %v2604_v11 = vpop.f32.mrf.mxu0 }
 0xad7   :  { %v2640_v63 = vadd.f32 1.0, %v2632_v10  ;;  %v2635_v12 = vand.u32 2147483647, %v2613_v2  ;;  %v2605_v13 = vadd.f32 %v6634_v44, %v2604_v11 }
 0xad9   :  { %v2643_v16 = vadd.f32 1.0, %v2635_v12  ;;  %v2633_v48 = vand.u32 2147483647, %v2605_v13  ;;  %v7474_v17 = vpop.f32.mrf.mxu0  ;;  %8246 = vrcp.f32 %v2640_v63 }
 0xada   :  { %v2626_v18 = vadd.f32 %v7474_v17, %v6634_v44 }
 0xadb   :  { %8248 = vrcp.f32 %v2643_v16  ;;  %v2641_v19 = vadd.f32 1.0, %v2633_v48  ;;  %v2617_v20 = vpop.f32.mrf.mxu0 }
 0xadc   :  { %8250 = vrcp.f32 %v2642_v54  ;;  %v2638_v23 = vand.u32 2147483647, %v2626_v18  ;;  %v2618_v60 = vadd.f32 %v6634_v44, %v2617_v20 }
 0xadd   :  { %8252 = vrcp.f32 %v2641_v19  ;;  %v7475_v7 = vpop.f32.mrf.mxu0 }
 0xade   :  { %v2646_v25 = vadd.f32 1.0, %v2638_v23  ;;  %v2636_v26 = vand.u32 2147483647, %v2618_v60  ;;  %v2629_v27 = vadd.f32 %v7475_v7, %v6634_v44 }
 0xadf   :  { %v2620_v30 = vpop.f32.mrf.mxu0 }
 0xae0   :  { %v2644_v31 = vadd.f32 1.0, %v2636_v26  ;;  %v2639_v32 = vand.u32 2147483647, %v2629_v27  ;;  %v2621_v33 = vadd.f32 %v6634_v44, %v2620_v30  ;;  %8254 = vrcp.f32 %v2646_v25 }
 0xae2   :  { %v2647_v14 = vadd.f32 1.0, %v2639_v32  ;;  %v2637_v21 = vand.u32 2147483647, %v2621_v33  ;;  %8256 = vrcp.f32 %v2644_v31 }
 0xae4   :  { %8258 = vrcp.f32 %v2647_v14  ;;  %v2645_v34 = vadd.f32 1.0, %v2637_v21 }
 0xae6   :  { %8260 = vrcp.f32 %v2645_v34  ;;  %v8247_v35 = vpop.eup %8246 }
 0xae7   :  { %v2649_v15 = vmul.f32 %v8247_v35, %v2602_v8 }
 0xae8   :  { %v8249_v36 = vpop.eup %8248 }
 0xae9   :  { %v8251_v38 = vpop.eup %8250  ;;  %v2655_v40 = vmul.f32 %v8249_v36, %v2613_v2 }
 0xaea   :  { %v8253_v39 = vpop.eup %8252  ;;  %v2653_v49 = vmul.f32 %v8251_v38, %v2610_v47  ;;  %v8485_v47 = vld [vmem:[%s9815_s4] sm:$0xf] }
 0xaeb   :  { %v2651_v42 = vmul.f32 %v8253_v39, %v2605_v13 }
 0xaec   :  { %v2665_v29 = vpack.c.bf16 %v2655_v40, %v2653_v49 }
 0xaed   :  { %v2664_v43 = vpack.c.bf16 %v2651_v42, %v2649_v15  ;;  %v8255_v45 = vpop.eup %8254 }
 0xaee   :  { %v2661_v37 = vmul.f32 %v8255_v45, %v2626_v18 }
 0xaef   :  { %7492 = vmatprep.mubr.bf16.mxu1 %v2664_v43  ;;  %v8257_v24 = vpop.eup %8256 }
 0xaf0   :  { %7493 = vmatmul.mubr.bf16.vlgmr.msra.gmra.mxu1 %v2665_v29  ;;  %v2657_v57 = vmul.f32 %v8257_v24, %v2618_v60 }
 0xaf1   :  { %v8259_v28 = vpop.eup %8258 }
 0xaf2   :  { %v2663_v52 = vmul.f32 %v8259_v28, %v2629_v27 }
 0xaf3   :  { %v8261_v55 = vpop.eup %8260 }
 0xaf4   :  { %v2667_v62 = vpack.c.bf16 %v2663_v52, %v2661_v37  ;;  %v2659_v44 = vmul.f32 %v8261_v55, %v2621_v33  ;;  %v6662_v52 = vld [vmem:[%s9785_s22 + $0x1] ss:$0 sm:$0xff] }
 0xaf6   :  { %7520 = vmatpush3.bf16.msra.mxu1 %v2667_v62  ;;  %v2666_v58 = vpack.c.bf16 %v2659_v44, %v2657_v57 }
 0xaf7   :  { %7521 = vmatprep.subr.bf16.mxu1 %v8719_v0 }
 0xaf8   :  { %7496 = vmatprep.mubr.bf16.mxu1 %v2666_v58 }
 0xaf9   :  { %7497 = vmatmul.mubr.bf16.gmra.mxu1 %v2667_v62 }
 0xafa   :  { %7522 = vmatpush3.bf16.msra.mxu1 %v2666_v58  ;;  %7527 = vmatprep.mubr.msk.bf16.mxu1 %vm8720_vm0, %v8719_v0 }
 0xafb   :  { %7523 = vmatprep.subr.bf16.mxu1 %v8719_v0 }
 0xafe   :  { %7524 = vmatpush3.bf16.msra.mxu1 %v2665_v29 }
 0xaff   :  { %7525 = vmatprep.subr.bf16.mxu1 %v8719_v0 }
 0xb02   :  { %7526 = vmatpush3.bf16.msra.mxu1 %v2664_v43 }
 0xb03   :  { %7531 = vmatprep.subr.bf16.mxu1 %v8719_v0 }
 0xb05   :  { %7528 = vmatmul.mubr.msk.bf16.vlgmr.msra.gmra.mxu1 %vm1427_vm4, %v8485_v47 }
 0xb06   :  { %7547 = vmatprep.mubr.msk.bf16.mxu1 %vm8720_vm0, %v8719_v0 }
 0xbb0   :  { %v7494_v5 = vpop.f32.mrf.mxu1 }
 0xbb1   :  { %v9274_v19 = vadd.f32 %v7494_v5, %v6644_v46 }
 0xbb2   :  { %v2775_v8 = vpop.f32.mrf.mxu1 }
 0xbb3   :  { %v6655_v26 = vmul.f32 -1.442695, %v9274_v19  ;;  %v2776_v27 = vadd.f32 %v6644_v46, %v2775_v8 }
 0xbb4   :  { %v7495_v9 = vpop.f32.mrf.mxu1 }
 0xbb5   :  { %v2787_v10 = vadd.f32 %v7495_v9, %v6644_v46  ;;  %v6653_v32 = vmul.f32 -1.442695, %v2776_v27 }
 0xbb6   :  { %v2778_v2 = vpop.f32.mrf.mxu1 }
 0xbb7   :  { %v6656_v11 = vmul.f32 -1.442695, %v2787_v10  ;;  %v2779_v63 = vadd.f32 %v6644_v46, %v2778_v2 }
 0xbb9   :  { %8262 = vpow2.f32 %v6656_v11  ;;  %v6654_v12 = vmul.f32 -1.442695, %v2779_v63  ;;  %v7498_v13 = vpop.f32.mrf.mxu1 }
 0xbba   :  { %v2800_v54 = vadd.f32 %v7498_v13, %v6644_v46 }
 0xbbb   :  { %v2791_v16 = vpop.f32.mrf.mxu1  ;;  %8264 = vpow2.f32 %v6654_v12 }
 0xbbc   :  { %v6659_v48 = vmul.f32 -1.442695, %v2800_v54  ;;  %v2792_v17 = vadd.f32 %v6644_v46, %v2791_v16 }
 0xbbd   :  { %v7499_v18 = vpop.f32.mrf.mxu1 }
 0xbbe   :  { %8266 = vpow2.f32 %v6659_v48  ;;  %v6657_v20 = vmul.f32 -1.442695, %v2792_v17  ;;  %v2803_v23 = vadd.f32 %v7499_v18, %v6644_v46 }
 0xbbf   :  { %v2794_v60 = vpop.f32.mrf.mxu1 }
 0xbc0   :  { %v6660_v7 = vmul.f32 -1.442695, %v2803_v23  ;;  %v2795_v25 = vadd.f32 %v6644_v46, %v2794_v60  ;;  %8268 = vpow2.f32 %v6657_v20 }
 0xbc2   :  { %8270 = vpow2.f32 %v6660_v7  ;;  %v6658_v30 = vmul.f32 -1.442695, %v2795_v25 }
 0xbc4   :  { %8272 = vpow2.f32 %v6658_v30 }
 0xbc5   :  { %8274 = vpow2.f32 %v6655_v26 }
 0xbc6   :  { %v8263_v31 = vpop.eup %8262  ;;  %8276 = vpow2.f32 %v6653_v32 }
 0xbc7   :  { %v2833_v33 = vadd.f32 1.0, %v8263_v31 }
 0xbc8   :  { %v8265_v14 = vpop.eup %8264 }
 0xbc9   :  { %8278 = vrcp.f32 %v2833_v33  ;;  %v2831_v35 = vadd.f32 1.0, %v8265_v14 }
 0xbcb   :  { %v8267_v21 = vpop.eup %8266 }
 0xbcc   :  { %v2836_v34 = vadd.f32 1.0, %v8267_v21 }
 0xbcd   :  { %v8269_v36 = vpop.eup %8268 }
 0xbce   :  { %8280 = vrcp.f32 %v2836_v34  ;;  %v2834_v15 = vadd.f32 1.0, %v8269_v36 }
 0xbcf   :  { %v8271_v38 = vpop.eup %8270  ;;  %8282 = vrcp.f32 %v2831_v35 }
 0xbd0   :  { %v2837_v39 = vadd.f32 1.0, %v8271_v38 }
 0xbd1   :  { %v8273_v40 = vpop.eup %8272 }
 0xbd2   :  { %8284 = vrcp.f32 %v2837_v39  ;;  %v2835_v42 = vadd.f32 1.0, %v8273_v40  ;;  %v8275_v49 = vpop.eup %8274  ;;  %v7968_v40 = vld [vmem:[#allocation11 + $0xf8] sm:$0xff]  }
 0xbd3   :  { %v2832_v43 = vadd.f32 1.0, %v8275_v49  ;;  %v8277_v29 = vpop.eup %8276 }
 0xbd4   :  { %8286 = vrcp.f32 %v2835_v42  ;;  %v2830_v24 = vadd.f32 1.0, %v8277_v29  ;;  %v8486_v29 = vld [vmem:[%s9817_s30] sm:$0xff] }
 0xbd5   :  { %8288 = vrcp.f32 %v2834_v15  ;;  %v7969_v15 = vld [vmem:[#allocation11 + $0xb8] sm:$0xff]  }
 0xbd6   :  { %v8279_v45 = vpop.eup %8278  ;;  %8290 = vrcp.f32 %v2832_v43  ;;  %v7970_v43 = vld [vmem:[#allocation11 + $0xf0] sm:$0xff]  }
 0xbd7   :  { %8292 = vrcp.f32 %v2830_v24  ;;  %v2857_v57 = vmul.f32 %v8279_v45, %v2787_v10  ;;  %v7971_v45 = vld [vmem:[#allocation11 + $0xb0] sm:$0xff]   ;;  %v7972_v24 = vld [vmem:[#allocation11 + $0xe8] sm:$0xff]  }
 0xbd9   :  { %v2873_v46 = vmul.f32 %v6662_v52, %v2857_v57  ;;  %v7977_v57 = vld [vmem:[#allocation11 + $0x98] sm:$0xff]  }
 0xbdb   :  { %v8281_v28 = vpop.eup %8280 }
 0xbdc   :  { %v2860_v37 = vmul.f32 %v8281_v28, %v2800_v54  ;;  %v8283_v55 = vpop.eup %8282  ;;  %v7973_v28 = vld [vmem:[#allocation11 + $0xa8] sm:$0xff]  }
 0xbdd   :  { %v2855_v5 = vmul.f32 %v8283_v55, %v2779_v63  ;;  %v7976_v55 = vld [vmem:[#allocation11 + $0xd8] sm:$0xff]  }
 0xbde   :  { %v2876_v62 = vmul.f32 %v6662_v52, %v2860_v37  ;;  %v7974_v37 = vld [vmem:[#allocation11 + $0xe0] sm:$0xff]  }
 0xbdf   :  { %v8285_v44 = vpop.eup %8284  ;;  %v2871_v12 = vmul.f32 %v6662_v52, %v2855_v5  ;;  %v7982_v5 = vld [vmem:[#allocation11 + $0xc0] sm:$0xff]  }
 0xbe0   :  { %v2861_v58 = vmul.f32 %v8285_v44, %v2803_v23  ;;  %2890 = vadd.xlane.f32.xlu1 %v2876_v62  ;;  %v7978_v62 = vld [vmem:[#allocation11 + $0xd0] sm:$0xff]  }
 0xbe1   :  { %v8287_v47 = vpop.eup %8286  ;;  %v7979_v44 = vld [vmem:[#allocation11 + $0x90] sm:$0xff]  }
 0xbe2   :  { %v2859_v8 = vmul.f32 %v8287_v47, %v2795_v25  ;;  %v2877_v9 = vmul.f32 %v6662_v52, %v2861_v58  ;;  %v8289_v2 = vpop.eup %8288  ;;  %v7980_v58 = vld [vmem:[#allocation11 + $0xc8] sm:$0xff]  }
 0xbe3   :  { %v2858_v11 = vmul.f32 %v8289_v2, %v2792_v17  ;;  %v8291_v54 = vpop.eup %8290  ;;  %v7981_v47 = vld [vmem:[#allocation11 + $0x88] sm:$0xff]  }
 0xbe4   :  { %2884 = vadd.xlane.f32.xlu1 %v2873_v46  ;;  %2892 = vadd.xlane.f32.xlu0 %v2877_v9  ;;  %v2875_v13 = vmul.f32 %v6662_v52, %v2859_v8  ;;  %v2856_v10 = vmul.f32 %v8291_v54, %v9274_v19  ;;  %v8293_v48 = vpop.eup %8292  ;;  %v7983_v8 = vld [vmem:[#allocation11 + $0x80] sm:$0xff]   ;;  %v7984_v46 = vld [vmem:[#allocation13 + $0x78] sm:$0xff]   ;;  %v7985_v9 = vld [vmem:[#allocation13 + $0x70] sm:$0xff]  }
 0xbe5   :  { %v2874_v16 = vmul.f32 %v6662_v52, %v2858_v11  ;;  %v2854_v18 = vmul.f32 %v8293_v48, %v2776_v27  ;;  %7532 = vmatpush3.bf16.msra.mxu1 %v7984_v46  ;;  %v7986_v2 = vld [vmem:[#allocation13 + $0x68] sm:$0xff]   ;;  %v7987_v11 = vld [vmem:[#allocation13 + $0x60] sm:$0xff]  }
 0xbe6   :  { %v2872_v20 = vmul.f32 %v6662_v52, %v2856_v10  ;;  %7533 = vmatprep.subr.bf16.mxu1 %v8719_v0  ;;  %v7991_v54 = vld [vmem:[#allocation13 + $0x40] sm:$0xff]   ;;  %v7992_v10 = vld [vmem:[#allocation8 + $0x170] ss:$8 sps:$4 sm:$0xff]  }
 0xbe7   :  { %v2870_v63 = vmul.f32 %v6662_v52, %v2854_v18  ;;  %v7975_v52 = vld [vmem:[#allocation11 + $0xa0] sm:$0xff]  }
 0xbe8   :  { %2880 = vadd.xlane.f32.xlu1 %v2871_v12  ;;  %2888 = vadd.xlane.f32.xlu0 %v2875_v13  ;;  %v7988_v12 = vld [vmem:[#allocation13 + $0x58] sm:$0xff]   ;;  %v7990_v13 = vld [vmem:[#allocation13 + $0x48] sm:$0xff]  }
 0xbe9   :  { %7534 = vmatpush3.bf16.msra.mxu1 %v7985_v9  ;;  %v7997_v48 = vld [vmem:[#allocation8 + $0x164] ss:$8 sps:$4 sm:$0xff]   ;;  %v7995_v18 = vld [vmem:[#allocation8 + $0x160] ss:$8 sps:$4 sm:$0xff]  }
 0xbea   :  { %7535 = vmatprep.subr.bf16.mxu1 %v8719_v0  ;;  %v8491_v46 = vld [vmem:[%s9813_s9 + $0x20] sm:$0xff] }
 0xbec   :  { %2886 = vadd.xlane.f32.xlu0 %v2874_v16  ;;  %v7994_v16 = vld [vmem:[#allocation8 + $0x174] ss:$8 sps:$4 sm:$0xff]  }
 0xbed   :  { %7536 = vmatpush3.bf16.msra.mxu1 %v7986_v2  ;;  %v8492_v2 = vld [vmem:[%s9813_s9 + $0x28] sm:$0xff] }
 0xbee   :  { %7537 = vmatprep.subr.bf16.mxu1 %v8719_v0 }
 0xbf0   :  { %2882 = vadd.xlane.f32.xlu0 %v2872_v20 }
 0xbf1   :  { %7538 = vmatpush3.bf16.msra.mxu1 %v7987_v11  ;;  %v8493_v11 = vld [vmem:[%s9813_s9 + $0x30] sm:$0xff] }
 0xbf2   :  { %7539 = vmatprep.subr.bf16.mxu1 %v8719_v0 }
 0xbf4   :  { %2878 = vadd.xlane.f32.xlu0 %v2870_v63 }
 0xbf5   :  { %7540 = vmatpush3.bf16.msra.mxu1 %v7988_v12  ;;  %v8494_v12 = vld [vmem:[%s9813_s9 + $0x38] sm:$0xff] }
 0xbf6   :  { %7541 = vmatprep.subr.bf16.mxu1 %v8719_v0 }
 0xc69   :  { %v2891_v23 = vpop.xlane.xlu1 %2890 }
 0xc6a   :  { %v2900_v60 = vmul.f32 %v2891_v23, %v9216_v56 }
 0xc6c   :  { %2922 = vrot.lane.b32.xlu0 %v2900_v60, %s8722_s29  ;;  %v6666_v60 = vld [vmem:[%s9780_s17 + $0x1] ss:$0 sm:$0xff] }
 0xc6d   :  { %v2885_v17 = vpop.xlane.xlu1 %2884  ;;  %v2893_v7 = vpop.xlane.xlu0 %2892 }
 0xc6e   :  { %v2897_v25 = vmul.f32 %v9194_v61, %v2885_v17  ;;  %v2901_v26 = vmul.f32 %v9210_v6, %v2893_v7 }
 0xc70   :  { %2924 = vrot.lane.b32.xlu1 %v2901_v26, %s8722_s29  ;;  %2916 = vrot.lane.b32.xlu0 %v2897_v25, %s8722_s29 }
 0xc71   :  { %v2881_v19 = vpop.xlane.xlu1 %2880  ;;  %v2889_v27 = vpop.xlane.xlu0 %2888 }
 0xc72   :  { %v2895_v30 = vmul.f32 %v9185_v50, %v2881_v19  ;;  %v2899_v31 = vmul.f32 %v9202_v4, %v2889_v27  ;;  %v3040_v50 = vpop.f32.mrf.mxu1 }
 0xc73   :  { %v3046_v42 = vpack.c.bf16 %v3040_v50, %v3040_v50  ;;  %v6713_v50 = vld [vmem:[%s9787_s24 + $0x8] sm:$0xf] }
 0xc74   :  { %2920 = vrot.lane.b32.xlu1 %v2899_v31, %s8722_s29  ;;  %2912 = vrot.lane.b32.xlu0 %v2895_v30, %s8722_s29  ;;  %v7529_v4 = vpop.f32.mrf.mxu1 }
 0xc75   :  { %v2887_v56 = vpop.xlane.xlu0 %2886  ;;  %v8000_v4 = vld [vmem:[#allocation8 + $0x154] ss:$8 sps:$4 sm:$0xff]  }
 0xc76   :  { %v2898_v32 = vmul.f32 %v2887_v56, %v9206_v3  ;;  %v3043_v21 = vpop.f32.mrf.mxu1 }
 0xc77   :  { %v7998_v21 = vld [vmem:[#allocation8 + $0x150] ss:$8 sps:$4 sm:$0xff]  }
 0xc78   :  { %2918 = vrot.lane.b32.xlu1 %v2898_v32, %s8722_s29  ;;  %v7530_v34 = vpop.f32.mrf.mxu1 }
 0xc79   :  { %v2883_v61 = vpop.xlane.xlu0 %2882  ;;  %v8003_v34 = vld [vmem:[#allocation8 + $0x144] ss:$8 sps:$4 sm:$0xff]  }
 0xc7a   :  { %v2896_v6 = vmul.f32 %v2883_v61, %v9199_v1 }
 0xc7c   :  { %2914 = vrot.lane.b32.xlu1 %v2896_v6, %s8722_s29  ;;  %v6710_v6 = vld [vmem:[%s9786_s23 + $0x8] sm:$0xf] }
 0xc7d   :  { %v2879_v33 = vpop.xlane.xlu0 %2878 }
 0xc7e   :  { %v2894_v14 = vmul.f32 %v2879_v33, %v9189_v53 }
 0xc80   :  { %2910 = vrot.lane.b32.xlu1 %v2894_v14, %s8722_s29 }
 0xcde   :  { %v2923_v36 = vpop.permute.xlu0 %2922 }
 0xce2   :  { %v2925_v35 = vpop.permute.xlu1 %2924  ;;  %v2917_v1 = vpop.permute.xlu0 %2916 }
 0xce3   :  { %7501 = vmatpush3.msra.mxu0 %v2925_v35  ;;  %v8001_v35 = vld [vmem:[#allocation8 + $0x140] ss:$8 sps:$4 sm:$0xff]  }
 0xce4   :  { %7502 = vmatprep.subr.mxu0 %v8719_v0 }
 0xce5   :  { %7503 = vmatpush3.msra.mxu0 %v2923_v36  ;;  %v8006_v36 = vld [vmem:[#allocation8 + $0x134] ss:$8 sps:$4 sm:$0xff]  }
 0xce6   :  { %v2921_v3 = vpop.permute.xlu1 %2920  ;;  %7504 = vmatprep.subr.mxu0 %v8719_v0  ;;  %v2913_v39 = vpop.permute.xlu0 %2912 }
 0xce7   :  { %7505 = vmatpush3.msra.mxu0 %v2921_v3  ;;  %v8004_v3 = vld [vmem:[#allocation8 + $0x130] ss:$8 sps:$4 sm:$0xff]  }
 0xce8   :  { %7506 = vmatprep.subr.mxu0 %v8719_v0 }
 0xcea   :  { %v2919_v53 = vpop.permute.xlu1 %2918 }
 0xceb   :  { %7507 = vmatpush3.msra.mxu0 %v2919_v53  ;;  %v8007_v53 = vld [vmem:[#allocation8 + $0x120] ss:$8 sps:$4 sm:$0xff]  }
 0xcec   :  { %7508 = vmatprep.subr.mxu0 %v8719_v0 }
 0xced   :  { %7509 = vmatpush3.msra.mxu0 %v2917_v1  ;;  %v8009_v1 = vld [vmem:[#allocation8 + $0x124] ss:$8 sps:$4 sm:$0xff]  }
 0xcee   :  { %v2915_v38 = vpop.permute.xlu1 %2914  ;;  %7510 = vmatprep.subr.mxu0 %v8719_v0 }
 0xcef   :  { %7511 = vmatpush3.msra.mxu0 %v2915_v38  ;;  %v8012_v38 = vld [vmem:[#allocation8 + $0x114] ss:$8 sps:$4 sm:$0xff]  }
 0xcf0   :  { %7512 = vmatprep.subr.mxu0 %v8719_v0 }
 0xcf1   :  { %7513 = vmatpush3.msra.mxu0 %v2913_v39  ;;  %v8010_v39 = vld [vmem:[#allocation8 + $0x110] ss:$8 sps:$4 sm:$0xff]  }
 0xcf2   :  { %v2911_v49 = vpop.permute.xlu1 %2910  ;;  %7514 = vmatprep.subr.mxu0 %v8719_v0 }
 0xcf3   :  { %7515 = vmatpush3.msra.mxu0 %v2911_v49 }
 0xcf4   :  { %7517 = vmatmul.mubr.msk.f32.vlgmr.msra.gmra.mxu0 %vm1427_vm4, %v8486_v29  ;;  %7060 = vmatprep.subr.bf16.mxu0 %v7968_v40  ;;  %v8015_v40 = vld [vmem:[#allocation8 + $0x104] ss:$8 sps:$4 sm:$0xff]  }
 0xcf5   :  { %7061 = vmatpush3.bf16.msra.mxu0 %v7969_v15  ;;  %3216 = vmatprep.mubr.bf16.mxu0 %v3046_v42  ;;  %v8013_v15 = vld [vmem:[#allocation8 + $0x100] ss:$8 sps:$4 sm:$0xff]   ;;  %v6685_v42 = vld [vmem:[%s9782_s19 + $0x1] ss:$0 sm:$0xff] }
 0xcf6   :  { %7062 = vmatprep.subr.bf16.mxu0 %v7970_v43 }
 0xcf9   :  { %7063 = vmatpush3.bf16.msra.mxu0 %v7971_v45 }
 0xcfa   :  { %7064 = vmatprep.subr.bf16.mxu0 %v7972_v24 }
 0xcfd   :  { %7065 = vmatpush3.bf16.msra.mxu0 %v7973_v28 }
 0xcfe   :  { %7066 = vmatprep.subr.bf16.mxu0 %v7974_v37 }
 0xd01   :  { %7067 = vmatpush3.bf16.msra.mxu0 %v7975_v52 }
 0xd02   :  { %7068 = vmatprep.subr.bf16.mxu0 %v7976_v55 }
 0xd05   :  { %7069 = vmatpush3.bf16.msra.mxu0 %v7977_v57 }
 0xd06   :  { %7070 = vmatprep.subr.bf16.mxu0 %v7978_v62 }
 0xd09   :  { %7071 = vmatpush3.bf16.msra.mxu0 %v7979_v44  ;;  %v8488_v44 = vld [vmem:[%s9813_s9 + $0x8] sm:$0xff] }
 0xd0a   :  { %7072 = vmatprep.subr.bf16.mxu0 %v7980_v58  ;;  %v8489_v58 = vld [vmem:[%s9813_s9 + $0x10] sm:$0xff] }
 0xd0d   :  { %7073 = vmatpush3.bf16.msra.mxu0 %v7981_v47 }
 0xd0e   :  { %7074 = vmatprep.subr.bf16.mxu0 %v7982_v5 }
 0xd11   :  { %7075 = vmatpush3.bf16.msra.mxu0 %v7983_v8  ;;  %v8490_v8 = vld [vmem:[%s9813_s9 + $0x18] sm:$0xff] }
 0xd12   :  { %3447 = vmatprep.subr.bf16.mxu0 %v7994_v16 }
 0xd14   :  { %3217 = vmatmul.mubr.bf16.vlgmr.msra.gmra.mxu0 %v9166_v41  ;;  %v7989_v41 = vld [vmem:[#allocation13 + $0x50] sm:$0xff]  }
 0xd15   :  { %3479 = vmatprep.mubr.bf16.mxu0 %v8721_v22  ;;  %7542 = vmatpush3.bf16.msra.mxu1 %v7989_v41  ;;  %v8495_v41 = vld [vmem:[%s9814_s5] sm:$0xff]  }
 0xd16   :  { %7543 = vmatprep.subr.bf16.mxu1 %v8719_v0  ;;  %3448 = vmatpush1.bf16.msra.mxu0 %v7992_v10 }
 0xd17   :  { %3449 = vmatprep.subr.bf16.mxu0 %v7997_v48 }
 0xd19   :  { %7544 = vmatpush3.bf16.msra.mxu1 %v7990_v13 }
 0xd1a   :  { %7545 = vmatprep.subr.bf16.mxu1 %v8719_v0  ;;  %3450 = vmatpush1.bf16.msra.mxu0 %v7995_v18 }
 0xd1b   :  { %3451 = vmatprep.subr.bf16.mxu0 %v8000_v4 }
 0xd1d   :  { %7546 = vmatpush3.bf16.msra.mxu1 %v7991_v54 }
 0xd1e   :  { %7551 = vmatprep.subr.mxu1 %v8719_v0  ;;  %3452 = vmatpush1.bf16.msra.mxu0 %v7998_v21 }
 0xd1f   :  { %3453 = vmatprep.subr.bf16.mxu0 %v8003_v34 }
 0xd22   :  { %3454 = vmatpush1.bf16.msra.mxu0 %v8001_v35  ;;  %v8496_v35 = vld [vmem:[%s9814_s5 + $0x8] sm:$0xff]  }
 0xd23   :  { %3455 = vmatprep.subr.bf16.mxu0 %v8006_v36  ;;  %v8497_v36 = vld [vmem:[%s9814_s5 + $0x10] sm:$0xff]  }
 0xd26   :  { %3456 = vmatpush1.bf16.msra.mxu0 %v8004_v3 }
 0xd27   :  { %3457 = vmatprep.subr.bf16.mxu0 %v8009_v1  ;;  %v8498_v1 = vld [vmem:[%s9814_s5 + $0x18] sm:$0xff]  }
 0xd2a   :  { %3458 = vmatpush1.bf16.msra.mxu0 %v8007_v53 }
 0xd2b   :  { %3459 = vmatprep.subr.bf16.mxu0 %v8012_v38 }
 0xd2e   :  { %3460 = vmatpush1.bf16.msra.mxu0 %v8010_v39 }
 0xd2f   :  { %3461 = vmatprep.subr.bf16.mxu0 %v8015_v40 }
 0xd32   :  { %3462 = vmatpush1.bf16.msra.mxu0 %v8013_v15 }
 0xdb4   :  { %v3000_v20 = vpop.f32.mrf.mxu0 }
 0xdb5   :  { %v3004_v33 = vmul.f32 %v3000_v20, %v9121_v59 }
 0xdb6   :  { %v7518_v63 = vpop.f32.mrf.mxu0 }
 0xdb7   :  { %v9330_v14 = vadd.f32 %v3004_v33, %v9131_v51  ;;  %v8487_v51 = vld [vmem:[%s9813_s9] sm:$0xff] }
 0xdd4   :  { %v7076_v23 = vpop.f32.mrf.mxu0 }
 0xdd6   :  { %v7077_v17 = vpop.f32.mrf.mxu0 }
 0xdd7   :  { %v7078_v7 = vadd.f32 %v7077_v17, %v7076_v23 }
 0xdd8   :  { %v7079_v25 = vpop.f32.mrf.mxu0 }
 0xdd9   :  { %v3219_v26 = vadd.f32 %v7078_v7, %v6666_v60 }
 0xdda   :  { %v7080_v19 = vpop.f32.mrf.mxu0 }
 0xddb   :  { %v6683_v27 = vmul.f32 -1.442695, %v3219_v26 }
 0xddd   :  { %8294 = vpow2.f32 %v6683_v27 }
 0xdea   :  { %v8295_v30 = vpop.eup %8294 }
 0xdeb   :  { %v3227_v31 = vadd.f32 1.0, %v8295_v30 }
 0xded   :  { %8296 = vrcp.f32 %v3227_v31 }
 0xdfa   :  { %v8297_v56 = vpop.eup %8296 }
 0xdfb   :  { %v3230_v32 = vmul.f32 %v8297_v56, %v3219_v26 }
 0xdfd   :  { %v3231_v61 = vpack.c.bf16 %v3230_v32, %v3230_v32 }
 0xdff   :  { %7548 = vmatmul.mubr.bf16.vlgmr.msra.gmra.mxu1 %v3231_v61 }
 0xe00   :  { %7552 = vmatpush3.msk.msra.mxu1 %vm221_vm1, %v6710_v6  ;;  %7553 = vmatprep.mubr.msk.f32.mxu1 %vm8720_vm0, %v8719_v0 }
 0xe01   :  { %7556 = vmatprep.subr.mxu1 %v8719_v0 }
 0xe07   :  { %7554 = vmatmul.mubr.msk.f32.vlgmr.msra.gmra.mxu1 %vm217_vm2, %v9330_v14 }
 0xe08   :  { %7557 = vmatpush3.msk.msra.mxu1 %vm221_vm1, %v6713_v50  ;;  %7558 = vmatprep.mubr.msk.f32.mxu1 %vm8720_vm0, %v8719_v0 }
 0xe0b   :  { %7559 = vmatmul.mubr.msk.f32.vlgmr.msra.gmra.mxu1 %vm217_vm2, %v9330_v14 }
 0xe0c   :  { %7565 = vmatprep.mubr.msk.f32.mxu1 %vm586_vm3, %v8487_v51 }
 0xebf   :  { %v3339_v49 = vpop.f32.mrf.mxu1 }
 0xec0   :  { %v3340_v43 = vadd.f32 %v6685_v42, %v3339_v49 }
 0xec1   :  { %v7549_v29 = vpop.f32.mrf.mxu1 }
 0xec2   :  { %v3345_v45 = vand.u32 2147483647, %v3340_v43 }
 0xec3   :  { %v3342_v24 = vpop.f32.mrf.mxu1 }
 0xec4   :  { %v3346_v28 = vadd.f32 1.0, %v3345_v45 }
 0xec5   :  { %v7550_v37 = vpop.f32.mrf.mxu1 }
 0xec6   :  { %8298 = vrcp.f32 %v3346_v28 }
 0xec7   :  { %v3563_v52 = vpop.f32.mrf.mxu1 }
 0xec9   :  { %v7555_v55 = vpop.f32.mrf.mxu1 }
 0xecb   :  { %v3638_v57 = vpop.f32.mrf.mxu1 }
 0xecc   :  { %7561 = vmatprep.subr.mxu1 %v3638_v57 }
 0xecd   :  { %v7560_v62 = vpop.f32.mrf.mxu1  ;;  %7562 = vmatpush3.msra.mxu1 %v3638_v57 }
 0xece   :  { %7563 = vmatprep.subr.mxu1 %v3563_v52 }
 0xecf   :  { %7564 = vmatpush3.msra.mxu1 %v3563_v52 }
 0xed0   :  { %7566 = vmatmul.mubr.msk.f32.vlgmr.msra.gmra.mxu1 %vm586_vm3, %v8488_v44 }
 0xed1   :  { %7568 = vmatprep.mubr.msk.f32.mxu1 %vm586_vm3, %v8489_v58 }
 0xed3   :  { %v8299_v47 = vpop.eup %8298 }
 0xed4   :  { %v3348_v5 = vmul.f32 %v8299_v47, %v3340_v43  ;;  %7569 = vmatmul.mubr.msk.f32.gmra.mxu1 %vm586_vm3, %v8490_v8 }
 0xed5   :  { %7571 = vmatprep.mubr.msk.f32.mxu1 %vm586_vm3, %v8491_v46 }
 0xed6   :  { %v9365_v9 = vpack.c.bf16 %v3348_v5, %v3348_v5 }
 0xed8   :  { %3480 = vmatmul.mubr.bf16.vlgmr.msra.gmra.mxu0 %v9365_v9  ;;  %7572 = vmatmul.mubr.msk.f32.gmra.mxu1 %vm586_vm3, %v8492_v2  ;;  %v8016_v2 = vld [vmem:[#allocation10 + $0xb8] sm:$0xff]  }
 0xed9   :  { %7574 = vmatprep.mubr.msk.f32.mxu1 %vm586_vm3, %v8493_v11  ;;  %7587 = vmatprep.subr.bf16.mxu0 %v8016_v2 }
 0xeda   :  { %7588 = vmatpush3.bf16.msra.mxu0 %v8016_v2 }
 0xedc   :  { %7575 = vmatmul.mubr.msk.f32.gmra.mxu1 %vm586_vm3, %v8494_v12  ;;  %v8017_v12 = vld [vmem:[#allocation10 + $0xb0] sm:$0xff]  }
 0xedd   :  { %7579 = vmatprep.mubr.msk.bf16.mxu1 %vm586_vm3, %v8495_v41  ;;  %7589 = vmatprep.subr.bf16.mxu0 %v8017_v12  ;;  %v8018_v41 = vld [vmem:[#allocation10 + $0xa8] sm:$0xff]  }
 0xede   :  { %7590 = vmatpush3.bf16.msra.mxu0 %v8017_v12 }
 0xedf   :  { %7591 = vmatprep.subr.bf16.mxu0 %v8018_v41 }
 0xee2   :  { %7592 = vmatpush3.bf16.msra.mxu0 %v8018_v41 }
 0xf90   :  { %v9384_v13 = vpop.f32.mrf.mxu1 }
 0xf91   :  { %v3748_v54 = vmul.f32 %v9384_v13, %v9384_v13 }
 0xf92   :  { %v9388_v10 = vpop.f32.mrf.mxu1 }
 0xf93   :  { %v3747_v16 = vmul.f32 %v9388_v10, %v9388_v10  ;;  %v3758_v48 = vsel %vm217_vm2, %v3748_v54, 0.0  ;;  %v3780_v53 = vmul.f32 2.0, %v3748_v54  ;;  %v8019_v54 = vld [vmem:[#allocation10 + $0xa0] sm:$0xff]  }
 0xf94   :  { %3759 = vadd.xlane.f32.xlu1 %v3758_v48  ;;  %v9393_v18 = vpop.f32.mrf.mxu1  ;;  %7593 = vmatprep.subr.bf16.mxu0 %v8019_v54  ;;  %v8021_v48 = vld [vmem:[#allocation10 + $0x90] sm:$0xff]  }
 0xf95   :  { %v3750_v20 = vmul.f32 %v9393_v18, %v9393_v18  ;;  %v3755_v63 = vsel %vm217_vm2, %v3747_v16, 0.0  ;;  %v3779_v40 = vmul.f32 2.0, %v3747_v16  ;;  %7594 = vmatpush3.bf16.msra.mxu0 %v8019_v54  ;;  %v8020_v16 = vld [vmem:[#allocation10 + $0x98] sm:$0xff]  }
 0xf96   :  { %3756 = vadd.xlane.f32.xlu0 %v3755_v63  ;;  %v9398_v23 = vpop.f32.mrf.mxu1  ;;  %7595 = vmatprep.subr.bf16.mxu0 %v8020_v16  ;;  %v8023_v63 = vld [vmem:[#allocation10 + $0x80] sm:$0xff]  }
 0xf97   :  { %v3764_v60 = vsel %vm217_vm2, %v3750_v20, 0.0  ;;  %v3749_v25 = vmul.f32 %v9398_v23, %v9398_v23  ;;  %v3782_v49 = vmul.f32 2.0, %v3750_v20  ;;  %v8022_v20 = vld [vmem:[#allocation10 + $0x88] sm:$0xff]  }
 0xf98   :  { %v3481_v17 = vpop.f32.mrf.mxu0  ;;  %v9401_v7 = vpop.f32.mrf.mxu1 }
 0xf99   :  { %v3752_v32 = vmul.f32 %v9401_v7, %v9401_v7  ;;  %v3761_v61 = vsel %vm217_vm2, %v3749_v25, 0.0  ;;  %v3781_v45 = vmul.f32 2.0, %v3749_v25  ;;  %7596 = vmatpush3.bf16.msra.mxu0 %v8020_v16 }
 0xf9a   :  { %v3483_v26 = vpop.f32.mrf.mxu0  ;;  %3765 = vadd.xlane.f32.xlu0 %v3764_v60  ;;  %v9405_v19 = vpop.f32.mrf.mxu1  ;;  %7597 = vmatprep.subr.bf16.mxu0 %v8021_v48 }
 0xf9b   :  { %v3488_v27 = vpack.c.bf16 %v3483_v26, %v3481_v17  ;;  %v3751_v30 = vmul.f32 %v9405_v19, %v9405_v19  ;;  %v3770_v21 = vsel %vm217_vm2, %v3752_v32, 0.0  ;;  %v3784_v57 = vmul.f32 2.0, %v3752_v32  ;;  %v6725_v26 = vld [vmem:[%s9776_s13 + $0x2] ss:$0 sm:$0xff]  ;;  %v3918_v32 = vld [vmem:[#allocation2 + $0x88] sm:$0xff] }
 0xf9c   :  { %v3485_v31 = vpop.f32.mrf.mxu0  ;;  %v9409_v56 = vpop.f32.mrf.mxu1 }
 0xf9d   :  { %7577 = vmatprep.subr.bf16.mxu1 %v3488_v27  ;;  %v3767_v6 = vsel %vm217_vm2, %v3751_v30, 0.0  ;;  %v3754_v4 = vmul.f32 %v9409_v56, %v9409_v56  ;;  %v3783_v28 = vmul.f32 2.0, %v3751_v30  ;;  %7598 = vmatpush3.bf16.msra.mxu0 %v8021_v48 }
 0xf9e   :  { %v3486_v33 = vpop.f32.mrf.mxu0  ;;  %7578 = vmatpush3.bf16.msra.mxu1 %v3488_v27  ;;  %3762 = vadd.xlane.f32.xlu0 %v3761_v61  ;;  %v9415_v50 = vpop.f32.mrf.mxu1 }
 0xf9f   :  { %3768 = vadd.xlane.f32.xlu1 %v3767_v6  ;;  %v3753_v51 = vmul.f32 %v9415_v50, %v9415_v50  ;;  %v3776_v3 = vsel %vm217_vm2, %v3754_v4, 0.0  ;;  %v3786_v8 = vmul.f32 2.0, %v3754_v4  ;;  %7599 = vmatprep.subr.bf16.mxu0 %v8022_v20 }
 0xfa1   :  { %v3773_v34 = vsel %vm217_vm2, %v3753_v51, 0.0  ;;  %7580 = vmatmul.mubr.msk.bf16.vlgmr.msra.gmra.mxu1 %vm586_vm3, %v8496_v35  ;;  %v3785_v44 = vmul.f32 2.0, %v3753_v51  ;;  %7600 = vmatpush3.bf16.msra.mxu0 %v8022_v20  ;;  %v3917_v51 = vld [vmem:[#allocation2 + $0x80] sm:$0xff] }
 0xfa2   :  { %3771 = vadd.xlane.f32.xlu0 %v3770_v21  ;;  %7583 = vmatprep.mubr.msk.bf16.mxu1 %vm586_vm3, %v8497_v36 }
 0xfa3   :  { %3774 = vadd.xlane.f32.xlu1 %v3773_v34  ;;  %7601 = vmatprep.subr.bf16.mxu0 %v8023_v63 }
 0xfa5   :  { %7602 = vmatpush3.bf16.msra.mxu0 %v8023_v63 }
 0xfa6   :  { %3777 = vadd.xlane.f32.xlu0 %v3776_v3  ;;  %7635 = vmatprep.subr.mxu0 %v8719_v0 }
 0xfa9   :  { %7584 = vmatmul.mubr.msk.bf16.gmra.mxu1 %vm586_vm3, %v8498_v1 }
0x101d   :  { %v3760_v38 = vpop.xlane.xlu1 %3759 }
0x101e   :  { %v3788_v39 = vsub.f32 %v3760_v38, %v3780_v53  ;;  %v3920_v53 = vld [vmem:[#allocation2 + $0x98] sm:$0xff] }
0x101f   :  { %v3757_v15 = vpop.xlane.xlu0 %3756 }
0x1020   :  { %v3787_v42 = vsub.f32 %v3757_v15, %v3779_v40  ;;  %3804 = vperm.xlu0 %7858, %v3788_v39  }
0x1022   :  { %3799 = vperm.xlu1 %7859, %v3787_v42  }
0x1023   :  { %v3766_v43 = vpop.xlane.xlu0 %3765 }
0x1024   :  { %v3790_v29 = vsub.f32 %v3766_v43, %v3782_v49 }
0x1026   :  { %3814 = vperm.xlu1 %7859, %v3790_v29  }
0x1027   :  { %v3763_v24 = vpop.xlane.xlu0 %3762 }
0x1028   :  { %v3789_v37 = vsub.f32 %v3763_v24, %v3781_v45  ;;  %v3769_v52 = vpop.xlane.xlu1 %3768  ;;  %v3919_v45 = vld [vmem:[#allocation2 + $0x90] sm:$0xff] }
0x1029   :  { %v3791_v55 = vsub.f32 %v3769_v52, %v3783_v28 }
0x102a   :  { %3809 = vperm.xlu1 %7859, %v3789_v37   ;;  %v3921_v37 = vld [vmem:[#allocation2 + $0xa0] sm:$0xff] }
0x102b   :  { %3819 = vperm.xlu0 %7858, %v3791_v55   ;;  %v3772_v62 = vpop.xlane.xlu0 %3771 }
0x102c   :  { %v3792_v58 = vsub.f32 %v3772_v62, %v3784_v57  ;;  %v3775_v47 = vpop.xlane.xlu1 %3774 }
0x102d   :  { %v3793_v5 = vsub.f32 %v3775_v47, %v3785_v44 }
0x102e   :  { %3824 = vperm.xlu1 %7859, %v3792_v58  }
0x102f   :  { %3829 = vperm.xlu0 %7858, %v3793_v5   ;;  %v3778_v46 = vpop.xlane.xlu0 %3777 }
0x1030   :  { %v3794_v11 = vsub.f32 %v3778_v46, %v3786_v8  ;;  %v3922_v46 = vld [vmem:[#allocation2 + $0xa8] sm:$0xff] }
0x1032   :  { %3834 = vperm.xlu1 %7859, %v3794_v11   ;;  %v3923_v11 = vld [vmem:[#allocation2 + $0xb0] sm:$0xff] }
0x1061   :  { %v7581_v60 = vpop.f32.mrf.mxu1 }
0x1063   :  { %v3885_v17 = vpop.f32.mrf.mxu1 }
0x1065   :  { %v7582_v25 = vpop.f32.mrf.mxu1 }
0x1067   :  { %v3888_v30 = vpop.f32.mrf.mxu1 }
0x1069   :  { %v7585_v4 = vpop.f32.mrf.mxu1 }
0x106b   :  { %v3901_v38 = vpop.f32.mrf.mxu1 }
0x106d   :  { %v7586_v24 = vpop.f32.mrf.mxu1 }
0x106f   :  { %v3904_v5 = vpop.f32.mrf.mxu1 }
0x109b   :  { %v3805_v27 = vpop.permute.xlu0 %3804 }
0x109c   :  { %v3844_v31 = vmul.f32 %v6725_v26, %v3805_v27 }
0x109d   :  { %v3800_v61 = vpop.permute.xlu1 %3799 }
0x109e   :  { %v3889_v6 = vadd.f32 %v3888_v30, %v3844_v31  ;;  %v3843_v33 = vmul.f32 %v6725_v26, %v3800_v61 }
0x10a0   :  { %v9440_v21 = vadd.f32 %v3918_v32, %v3889_v6  ;;  %v3886_v34 = vadd.f32 %v3885_v17, %v3843_v33 }
0x10a1   :  { %v3815_v35 = vpop.permute.xlu1 %3814 }
0x10a2   :  { %v6731_v36 = vmul.f32 -1.442695, %v9440_v21  ;;  %v9443_v3 = vadd.f32 %v3917_v51, %v3886_v34  ;;  %v3846_v1 = vmul.f32 %v6725_v26, %v3815_v35 }
0x10a4   :  { %8300 = vpow2.f32 %v6731_v36  ;;  %v6730_v39 = vmul.f32 -1.442695, %v9443_v3  ;;  %v3897_v40 = vadd.f32 %v7582_v25, %v3846_v1 }
0x10a5   :  { %v3810_v15 = vpop.permute.xlu1 %3809 }
0x10a6   :  { %8302 = vpow2.f32 %v6730_v39  ;;  %v9446_v42 = vadd.f32 %v3920_v53, %v3897_v40  ;;  %v3820_v49 = vpop.permute.xlu0 %3819  ;;  %v3845_v43 = vmul.f32 %v6725_v26, %v3810_v15 }
0x10a7   :  { %v3847_v29 = vmul.f32 %v6725_v26, %v3820_v49 }
0x10a8   :  { %v6733_v28 = vmul.f32 -1.442695, %v9446_v42  ;;  %v3894_v52 = vadd.f32 %v7581_v60, %v3845_v43  ;;  %v3924_v60 = vld [vmem:[#allocation2 + $0xb8] sm:$0xff] }
0x10a9   :  { %v3902_v55 = vadd.f32 %v3901_v38, %v3847_v29  ;;  %v3825_v57 = vpop.permute.xlu1 %3824 }
0x10aa   :  { %8304 = vpow2.f32 %v6733_v28  ;;  %v3927_v62 = vadd.f32 %v3919_v45, %v3894_v52  ;;  %v3830_v44 = vpop.permute.xlu0 %3829  ;;  %v3848_v58 = vmul.f32 %v6725_v26, %v3825_v57 }
0x10ab   :  { %v3929_v47 = vadd.f32 %v3921_v37, %v3902_v55  ;;  %v3849_v8 = vmul.f32 %v6725_v26, %v3830_v44 }
0x10ac   :  { %v6732_v2 = vmul.f32 -1.442695, %v3927_v62  ;;  %v3905_v12 = vadd.f32 %v3904_v5, %v3848_v58 }
0x10ad   :  { %v6734_v41 = vmul.f32 -1.442695, %v3929_v47  ;;  %v3910_v54 = vadd.f32 %v7585_v4, %v3849_v8  ;;  %v3835_v16 = vpop.permute.xlu1 %3834 }
0x10ae   :  { %8306 = vpow2.f32 %v6732_v2  ;;  %v3930_v48 = vadd.f32 %v3922_v46, %v3905_v12  ;;  %v3850_v20 = vmul.f32 %v6725_v26, %v3835_v16  ;;  %v8029_v16 = vld [vmem:[#allocation14 + $0x90] sm:$0xff]  }
0x10af   :  { %8308 = vpow2.f32 %v6734_v41  ;;  %v3931_v63 = vadd.f32 %v3923_v11, %v3910_v54  ;;  %v8024_v41 = vld [vmem:[#allocation14 + $0xb8] sm:$0xff]  }
0x10b0   :  { %v6735_v17 = vmul.f32 -1.442695, %v3930_v48  ;;  %v3913_v25 = vadd.f32 %v7586_v24, %v3850_v20  ;;  %7611 = vmatprep.subr.bf16.mxu1 %v8024_v41  ;;  %v8028_v54 = vld [vmem:[#allocation14 + $0x98] sm:$0xff]   ;;  %v8031_v20 = vld [vmem:[#allocation14 + $0x80] sm:$0xff]  }
0x10b1   :  { %v8301_v27 = vpop.eup %8300  ;;  %v6736_v30 = vmul.f32 -1.442695, %v3931_v63  ;;  %7612 = vmatpush3.bf16.msra.mxu1 %v8024_v41 }
0x10b2   :  { %v3958_v31 = vadd.f32 1.0, %v8301_v27  ;;  %8310 = vpow2.f32 %v6735_v17  ;;  %v3932_v32 = vadd.f32 %v3924_v60, %v3913_v25 }
0x10b3   :  { %v8303_v61 = vpop.eup %8302  ;;  %8312 = vpow2.f32 %v6736_v30 }
0x10b4   :  { %8314 = vrcp.f32 %v3958_v31  ;;  %v3957_v6 = vadd.f32 1.0, %v8303_v61  ;;  %v6737_v33 = vmul.f32 -1.442695, %v3932_v32 }
0x10b6   :  { %8316 = vrcp.f32 %v3957_v6 }
0x10b7   :  { %v8305_v51 = vpop.eup %8304  ;;  %8318 = vpow2.f32 %v6737_v33 }
0x10b8   :  { %v3960_v4 = vadd.f32 1.0, %v8305_v51 }
0x10ba   :  { %8320 = vrcp.f32 %v3960_v4 }
0x10bb   :  { %v8307_v26 = vpop.eup %8306 }
0x10bc   :  { %v8309_v34 = vpop.eup %8308  ;;  %v3959_v35 = vadd.f32 1.0, %v8307_v26 }
0x10bd   :  { %v3961_v36 = vadd.f32 1.0, %v8309_v34 }
0x10be   :  { %8322 = vrcp.f32 %v3959_v35 }
0x10bf   :  { %v8311_v1 = vpop.eup %8310  ;;  %8324 = vrcp.f32 %v3961_v36 }
0x10c0   :  { %v8313_v53 = vpop.eup %8312  ;;  %v3962_v38 = vadd.f32 1.0, %v8311_v1 }
0x10c1   :  { %v8315_v39 = vpop.eup %8314  ;;  %v3963_v40 = vadd.f32 1.0, %v8313_v53 }
0x10c2   :  { %8326 = vrcp.f32 %v3962_v38  ;;  %v3982_v43 = vmul.f32 %v8315_v39, %v9440_v21 }
0x10c3   :  { %v8317_v15 = vpop.eup %8316  ;;  %8328 = vrcp.f32 %v3963_v40 }
0x10c4   :  { %v8319_v49 = vpop.eup %8318  ;;  %v3981_v29 = vmul.f32 %v8317_v15, %v9443_v3 }
0x10c5   :  { %v3964_v45 = vadd.f32 1.0, %v8319_v49 }
0x10c6   :  { %v3989_v24 = vpack.c.bf16 %v3982_v43, %v3981_v29 }
0x10c7   :  { %8330 = vrcp.f32 %v3964_v45  ;;  %v8321_v28 = vpop.eup %8320 }
0x10c8   :  { %7603 = vmatprep.mubr.bf16.mxu0 %v3989_v24  ;;  %v3984_v52 = vmul.f32 %v8321_v28, %v9446_v42  ;;  %v8025_v42 = vld [vmem:[#allocation14 + $0xb0] sm:$0xff]  }
0x10c9   :  { %7613 = vmatprep.subr.bf16.mxu1 %v8025_v42 }
0x10ca   :  { %7614 = vmatpush3.bf16.msra.mxu1 %v8025_v42 }
0x10cb   :  { %v8323_v37 = vpop.eup %8322 }
0x10cc   :  { %v3983_v55 = vmul.f32 %v8323_v37, %v3927_v62  ;;  %v8325_v57 = vpop.eup %8324  ;;  %v8026_v62 = vld [vmem:[#allocation14 + $0xa8] sm:$0xff]  }
0x10cd   :  { %v3985_v5 = vmul.f32 %v8325_v57, %v3929_v47  ;;  %7615 = vmatprep.subr.bf16.mxu1 %v8026_v62  ;;  %v8027_v47 = vld [vmem:[#allocation14 + $0xa0] sm:$0xff]  }
0x10ce   :  { %v3990_v44 = vpack.c.bf16 %v3984_v52, %v3983_v55  ;;  %7616 = vmatpush3.bf16.msra.mxu1 %v8026_v62 }
0x10cf   :  { %v8327_v58 = vpop.eup %8326  ;;  %7617 = vmatprep.subr.bf16.mxu1 %v8027_v47 }
0x10d0   :  { %7604 = vmatmul.mubr.bf16.vlgmr.msra.gmra.mxu0 %v3990_v44  ;;  %v3986_v8 = vmul.f32 %v8327_v58, %v3930_v48  ;;  %v8329_v46 = vpop.eup %8328  ;;  %v8030_v48 = vld [vmem:[#allocation14 + $0x88] sm:$0xff]  }
0x10d1   :  { %v3987_v3 = vmul.f32 %v8329_v46, %v3931_v63  ;;  %v6739_v63 = vld [vmem:[%s9778_s15 + $0x2] ss:$0 sm:$0xff] }
0x10d2   :  { %v3991_v21 = vpack.c.bf16 %v3986_v8, %v3985_v5  ;;  %7618 = vmatpush3.bf16.msra.mxu1 %v8027_v47 }
0x10d3   :  { %7619 = vmatprep.subr.bf16.mxu1 %v8028_v54 }
0x10d4   :  { %v8331_v2 = vpop.eup %8330  ;;  %7607 = vmatprep.mubr.bf16.mxu0 %v3991_v21 }
0x10d5   :  { %v3988_v11 = vmul.f32 %v8331_v2, %v3932_v32 }
0x10d6   :  { %7620 = vmatpush3.bf16.msra.mxu1 %v8028_v54 }
0x10d7   :  { %v3992_v12 = vpack.c.bf16 %v3988_v11, %v3987_v3  ;;  %7621 = vmatprep.subr.bf16.mxu1 %v8029_v16 }
0x10d9   :  { %7608 = vmatmul.mubr.bf16.gmra.mxu0 %v3992_v12 }
0x10da   :  { %7651 = vmatprep.mubr.msk.f32.mxu0 %vm8720_vm0, %v8719_v0  ;;  %7622 = vmatpush3.bf16.msra.mxu1 %v8029_v16 }
0x10db   :  { %7623 = vmatprep.subr.bf16.mxu1 %v8030_v48 }
0x10de   :  { %7624 = vmatpush3.bf16.msra.mxu1 %v8030_v48 }
0x10df   :  { %7625 = vmatprep.subr.bf16.mxu1 %v8031_v20 }
0x10e2   :  { %7626 = vmatpush3.bf16.msra.mxu1 %v8031_v20 }
0x10e3   :  { %7654 = vmatprep.subr.bf16.mxu1 %v8719_v0 }
0x1190   :  { %v7605_v60 = vpop.f32.mrf.mxu0 }
0x1191   :  { %v4109_v17 = vadd.f32 %v7605_v60, %v6739_v63 }
0x1192   :  { %v4100_v25 = vpop.f32.mrf.mxu0 }
0x1193   :  { %v4101_v27 = vadd.f32 %v6739_v63, %v4100_v25  ;;  %v4133_v30 = vand.u32 2147483647, %v4109_v17 }
0x1194   :  { %v7606_v31 = vpop.f32.mrf.mxu0 }
0x1195   :  { %v4131_v32 = vand.u32 2147483647, %v4101_v27  ;;  %v4112_v61 = vadd.f32 %v7606_v31, %v6739_v63  ;;  %v4141_v26 = vadd.f32 1.0, %v4133_v30  ;;  %v6749_v30 = vld [vmem:[%s9784_s21 + $0x2] ss:$0 sm:$0xff] }
0x1196   :  { %v4103_v6 = vpop.f32.mrf.mxu0 }
0x1197   :  { %v4139_v33 = vadd.f32 1.0, %v4131_v32  ;;  %v4134_v51 = vand.u32 2147483647, %v4112_v61  ;;  %v4104_v4 = vadd.f32 %v6739_v63, %v4103_v6 }
0x1199   :  { %v4142_v34 = vadd.f32 1.0, %v4134_v51  ;;  %v4132_v35 = vand.u32 2147483647, %v4104_v4  ;;  %v7609_v36 = vpop.f32.mrf.mxu0  ;;  %8332 = vrcp.f32 %v4139_v33 }
0x119a   :  { %v4125_v1 = vadd.f32 %v7609_v36, %v6739_v63 }
0x119b   :  { %8334 = vrcp.f32 %v4142_v34  ;;  %v4140_v53 = vadd.f32 1.0, %v4132_v35  ;;  %v4116_v38 = vpop.f32.mrf.mxu0 }
0x119c   :  { %8336 = vrcp.f32 %v4141_v26  ;;  %v4137_v39 = vand.u32 2147483647, %v4125_v1  ;;  %v4117_v40 = vadd.f32 %v6739_v63, %v4116_v38 }
0x119d   :  { %8338 = vrcp.f32 %v4140_v53  ;;  %v7610_v15 = vpop.f32.mrf.mxu0 }
0x119e   :  { %v4145_v49 = vadd.f32 1.0, %v4137_v39  ;;  %v4135_v43 = vand.u32 2147483647, %v4117_v40  ;;  %v4128_v29 = vadd.f32 %v7610_v15, %v6739_v63 }
0x119f   :  { %v4119_v45 = vpop.f32.mrf.mxu0 }
0x11a0   :  { %v4143_v24 = vadd.f32 1.0, %v4135_v43  ;;  %v4138_v28 = vand.u32 2147483647, %v4128_v29  ;;  %v4120_v37 = vadd.f32 %v6739_v63, %v4119_v45  ;;  %8340 = vrcp.f32 %v4145_v49 }
0x11a2   :  { %v4146_v52 = vadd.f32 1.0, %v4138_v28  ;;  %v4136_v55 = vand.u32 2147483647, %v4120_v37  ;;  %8342 = vrcp.f32 %v4143_v24 }
0x11a4   :  { %8344 = vrcp.f32 %v4146_v52  ;;  %v4144_v57 = vadd.f32 1.0, %v4136_v55 }
0x11a6   :  { %8346 = vrcp.f32 %v4144_v57  ;;  %v8333_v44 = vpop.eup %8332 }
0x11a7   :  { %v4148_v21 = vmul.f32 %v8333_v44, %v4101_v27 }
0x11a8   :  { %v8335_v58 = vpop.eup %8334 }
0x11a9   :  { %v8337_v5 = vpop.eup %8336  ;;  %v4154_v46 = vmul.f32 %v8335_v58, %v4112_v61 }
0x11aa   :  { %v8339_v8 = vpop.eup %8338  ;;  %v4152_v3 = vmul.f32 %v8337_v5, %v4109_v17  ;;  %v8499_v17 = vld [vmem:[%s9815_s4] sm:$0xf] }
0x11ab   :  { %v4150_v2 = vmul.f32 %v8339_v8, %v4104_v4 }
0x11ac   :  { %v4164_v12 = vpack.c.bf16 %v4154_v46, %v4152_v3 }
0x11ad   :  { %v4163_v11 = vpack.c.bf16 %v4150_v2, %v4148_v21  ;;  %v8341_v41 = vpop.eup %8340 }
0x11ae   :  { %v4160_v47 = vmul.f32 %v8341_v41, %v4125_v1 }
0x11af   :  { %7627 = vmatprep.mubr.bf16.mxu1 %v4163_v11  ;;  %v8343_v42 = vpop.eup %8342 }
0x11b0   :  { %7628 = vmatmul.mubr.bf16.vlgmr.msra.gmra.mxu1 %v4164_v12  ;;  %v4156_v48 = vmul.f32 %v8343_v42, %v4117_v40 }
0x11b1   :  { %v8345_v62 = vpop.eup %8344 }
0x11b2   :  { %v4162_v54 = vmul.f32 %v8345_v62, %v4128_v29 }
0x11b3   :  { %v8347_v16 = vpop.eup %8346 }
0x11b4   :  { %v4166_v20 = vpack.c.bf16 %v4162_v54, %v4160_v47  ;;  %v4158_v63 = vmul.f32 %v8347_v16, %v4120_v37  ;;  %v6767_v54 = vld [vmem:[%s9785_s22 + $0x2] ss:$0 sm:$0xff] }
0x11b6   :  { %7655 = vmatpush3.bf16.msra.mxu1 %v4166_v20  ;;  %v4165_v60 = vpack.c.bf16 %v4158_v63, %v4156_v48 }
0x11b7   :  { %7656 = vmatprep.subr.bf16.mxu1 %v8719_v0 }
0x11b8   :  { %7631 = vmatprep.mubr.bf16.mxu1 %v4165_v60 }
0x11b9   :  { %7632 = vmatmul.mubr.bf16.gmra.mxu1 %v4166_v20 }
0x11ba   :  { %7657 = vmatpush3.bf16.msra.mxu1 %v4165_v60  ;;  %7662 = vmatprep.mubr.msk.bf16.mxu1 %vm8720_vm0, %v8719_v0 }
0x11bb   :  { %7658 = vmatprep.subr.bf16.mxu1 %v8719_v0 }
0x11be   :  { %7659 = vmatpush3.bf16.msra.mxu1 %v4164_v12 }
0x11bf   :  { %7660 = vmatprep.subr.bf16.mxu1 %v8719_v0 }
0x11c2   :  { %7661 = vmatpush3.bf16.msra.mxu1 %v4163_v11 }
0x11c3   :  { %7666 = vmatprep.subr.bf16.mxu1 %v8719_v0 }
0x11c5   :  { %7663 = vmatmul.mubr.msk.bf16.vlgmr.msra.gmra.mxu1 %vm1427_vm4, %v8499_v17 }
0x11c6   :  { %7682 = vmatprep.mubr.msk.bf16.mxu1 %vm8720_vm0, %v8719_v0 }
0x1270   :  { %v7629_v25 = vpop.f32.mrf.mxu1 }
0x1271   :  { %v9473_v53 = vadd.f32 %v7629_v25, %v6749_v30 }
0x1272   :  { %v4274_v27 = vpop.f32.mrf.mxu1 }
0x1273   :  { %v6760_v43 = vmul.f32 -1.442695, %v9473_v53  ;;  %v4275_v29 = vadd.f32 %v6749_v30, %v4274_v27 }
0x1274   :  { %v7630_v31 = vpop.f32.mrf.mxu1 }
0x1275   :  { %v4286_v32 = vadd.f32 %v7630_v31, %v6749_v30  ;;  %v6758_v28 = vmul.f32 -1.442695, %v4275_v29 }
0x1276   :  { %v4277_v61 = vpop.f32.mrf.mxu1 }
0x1277   :  { %v6761_v6 = vmul.f32 -1.442695, %v4286_v32  ;;  %v4278_v33 = vadd.f32 %v6749_v30, %v4277_v61 }
0x1279   :  { %8348 = vpow2.f32 %v6761_v6  ;;  %v6759_v51 = vmul.f32 -1.442695, %v4278_v33  ;;  %v7633_v4 = vpop.f32.mrf.mxu1 }
0x127a   :  { %v4299_v26 = vadd.f32 %v7633_v4, %v6749_v30 }
0x127b   :  { %v4290_v34 = vpop.f32.mrf.mxu1  ;;  %8350 = vpow2.f32 %v6759_v51 }
0x127c   :  { %v6764_v35 = vmul.f32 -1.442695, %v4299_v26  ;;  %v4291_v36 = vadd.f32 %v6749_v30, %v4290_v34 }
0x127d   :  { %v7634_v1 = vpop.f32.mrf.mxu1 }
0x127e   :  { %8352 = vpow2.f32 %v6764_v35  ;;  %v6762_v38 = vmul.f32 -1.442695, %v4291_v36  ;;  %v4302_v39 = vadd.f32 %v7634_v1, %v6749_v30 }
0x127f   :  { %v4293_v40 = vpop.f32.mrf.mxu1 }
0x1280   :  { %v6765_v15 = vmul.f32 -1.442695, %v4302_v39  ;;  %v4294_v49 = vadd.f32 %v6749_v30, %v4293_v40  ;;  %8354 = vpow2.f32 %v6762_v38 }
0x1282   :  { %8356 = vpow2.f32 %v6765_v15  ;;  %v6763_v45 = vmul.f32 -1.442695, %v4294_v49 }
0x1284   :  { %8358 = vpow2.f32 %v6763_v45 }
0x1285   :  { %8360 = vpow2.f32 %v6760_v43 }
0x1286   :  { %v8349_v24 = vpop.eup %8348  ;;  %8362 = vpow2.f32 %v6758_v28 }
0x1287   :  { %v4332_v37 = vadd.f32 1.0, %v8349_v24 }
0x1288   :  { %v8351_v52 = vpop.eup %8350 }
0x1289   :  { %8364 = vrcp.f32 %v4332_v37  ;;  %v4330_v44 = vadd.f32 1.0, %v8351_v52 }
0x128b   :  { %v8353_v55 = vpop.eup %8352 }
0x128c   :  { %v4335_v57 = vadd.f32 1.0, %v8353_v55 }
0x128d   :  { %v8355_v58 = vpop.eup %8354 }
0x128e   :  { %8366 = vrcp.f32 %v4335_v57  ;;  %v4333_v21 = vadd.f32 1.0, %v8355_v58 }
0x128f   :  { %v8357_v5 = vpop.eup %8356  ;;  %8368 = vrcp.f32 %v4330_v44 }
0x1290   :  { %v4336_v8 = vadd.f32 1.0, %v8357_v5 }
0x1291   :  { %v8359_v46 = vpop.eup %8358 }
0x1292   :  { %8370 = vrcp.f32 %v4336_v8  ;;  %v4334_v2 = vadd.f32 1.0, %v8359_v46  ;;  %v8361_v3 = vpop.eup %8360  ;;  %v8032_v46 = vld [vmem:[#allocation11 + $0x178] sm:$0xff]  }
0x1293   :  { %v4331_v11 = vadd.f32 1.0, %v8361_v3  ;;  %v8363_v12 = vpop.eup %8362 }
0x1294   :  { %8372 = vrcp.f32 %v4334_v2  ;;  %v4329_v42 = vadd.f32 1.0, %v8363_v12  ;;  %v8500_v12 = vld [vmem:[%s9817_s30] sm:$0xff] }
0x1295   :  { %8374 = vrcp.f32 %v4333_v21  ;;  %v8033_v21 = vld [vmem:[#allocation11 + $0x138] sm:$0xff]  }
0x1296   :  { %v8365_v41 = vpop.eup %8364  ;;  %8376 = vrcp.f32 %v4331_v11  ;;  %v8034_v11 = vld [vmem:[#allocation11 + $0x170] sm:$0xff]  }
0x1297   :  { %8378 = vrcp.f32 %v4329_v42  ;;  %v4356_v48 = vmul.f32 %v8365_v41, %v4286_v32  ;;  %v8035_v41 = vld [vmem:[#allocation11 + $0x130] sm:$0xff]   ;;  %v8036_v42 = vld [vmem:[#allocation11 + $0x168] sm:$0xff]  }
0x1299   :  { %v4372_v30 = vmul.f32 %v6767_v54, %v4356_v48  ;;  %v8041_v48 = vld [vmem:[#allocation11 + $0x118] sm:$0xff]  }
0x129b   :  { %v8367_v62 = vpop.eup %8366 }
0x129c   :  { %v4359_v47 = vmul.f32 %v8367_v62, %v4299_v26  ;;  %v8369_v16 = vpop.eup %8368  ;;  %v8037_v62 = vld [vmem:[#allocation11 + $0x128] sm:$0xff]  }
0x129d   :  { %v4354_v25 = vmul.f32 %v8369_v16, %v4278_v33  ;;  %v8040_v16 = vld [vmem:[#allocation11 + $0x158] sm:$0xff]  }
0x129e   :  { %v4375_v20 = vmul.f32 %v6767_v54, %v4359_v47  ;;  %v8038_v47 = vld [vmem:[#allocation11 + $0x160] sm:$0xff]  }
0x129f   :  { %v8371_v63 = vpop.eup %8370  ;;  %v4370_v51 = vmul.f32 %v6767_v54, %v4354_v25  ;;  %v8046_v25 = vld [vmem:[#allocation11 + $0x140] sm:$0xff]  }
0x12a0   :  { %v4360_v60 = vmul.f32 %v8371_v63, %v4302_v39  ;;  %4389 = vadd.xlane.f32.xlu1 %v4375_v20  ;;  %v8042_v20 = vld [vmem:[#allocation11 + $0x150] sm:$0xff]  }
0x12a1   :  { %v8373_v17 = vpop.eup %8372  ;;  %v8043_v63 = vld [vmem:[#allocation11 + $0x110] sm:$0xff]  }
0x12a2   :  { %v4358_v27 = vmul.f32 %v8373_v17, %v4294_v49  ;;  %v4376_v31 = vmul.f32 %v6767_v54, %v4360_v60  ;;  %v8375_v61 = vpop.eup %8374  ;;  %v8044_v60 = vld [vmem:[#allocation11 + $0x148] sm:$0xff]  }
0x12a3   :  { %v4357_v6 = vmul.f32 %v8375_v61, %v4291_v36  ;;  %v8377_v26 = vpop.eup %8376  ;;  %v8045_v17 = vld [vmem:[#allocation11 + $0x108] sm:$0xff]  }
0x12a4   :  { %4383 = vadd.xlane.f32.xlu1 %v4372_v30  ;;  %4391 = vadd.xlane.f32.xlu0 %v4376_v31  ;;  %v4374_v4 = vmul.f32 %v6767_v54, %v4358_v27  ;;  %v4355_v32 = vmul.f32 %v8377_v26, %v9473_v53  ;;  %v8379_v35 = vpop.eup %8378  ;;  %v8047_v27 = vld [vmem:[#allocation11 + $0x100] sm:$0xff]   ;;  %v8048_v30 = vld [vmem:[#allocation13 + $0xb8] sm:$0xff]   ;;  %v8049_v31 = vld [vmem:[#allocation13 + $0xb0] sm:$0xff]  }
0x12a5   :  { %v4373_v34 = vmul.f32 %v6767_v54, %v4357_v6  ;;  %v4353_v1 = vmul.f32 %v8379_v35, %v4275_v29  ;;  %7667 = vmatpush3.bf16.msra.mxu1 %v8048_v30  ;;  %v8050_v61 = vld [vmem:[#allocation13 + $0xa8] sm:$0xff]   ;;  %v8051_v6 = vld [vmem:[#allocation13 + $0xa0] sm:$0xff]   ;;  %v8056_v26 = vld [vmem:[#allocation8 + $0x1f0] ss:$8 sps:$4 sm:$0xff]  }
0x12a6   :  { %v4371_v38 = vmul.f32 %v6767_v54, %v4355_v32  ;;  %7668 = vmatprep.subr.bf16.mxu1 %v8719_v0  ;;  %v8058_v32 = vld [vmem:[#allocation8 + $0x1f4] ss:$8 sps:$4 sm:$0xff]   ;;  %v8059_v35 = vld [vmem:[#allocation8 + $0x1e0] ss:$8 sps:$4 sm:$0xff]  }
0x12a7   :  { %v4369_v33 = vmul.f32 %v6767_v54, %v4353_v1  ;;  %v8039_v54 = vld [vmem:[#allocation11 + $0x120] sm:$0xff]  }
0x12a8   :  { %4379 = vadd.xlane.f32.xlu1 %v4370_v51  ;;  %4387 = vadd.xlane.f32.xlu0 %v4374_v4  ;;  %v8052_v51 = vld [vmem:[#allocation13 + $0x98] sm:$0xff]   ;;  %v8055_v4 = vld [vmem:[#allocation13 + $0x80] sm:$0xff]  }
0x12a9   :  { %7669 = vmatpush3.bf16.msra.mxu1 %v8049_v31  ;;  %v8506_v31 = vld [vmem:[%s9813_s9 + $0x28] sm:$0xff] }
0x12aa   :  { %7670 = vmatprep.subr.bf16.mxu1 %v8719_v0 }
0x12ac   :  { %4385 = vadd.xlane.f32.xlu0 %v4373_v34  ;;  %v8061_v34 = vld [vmem:[#allocation8 + $0x1e4] ss:$8 sps:$4 sm:$0xff]  }
0x12ad   :  { %7671 = vmatpush3.bf16.msra.mxu1 %v8050_v61  ;;  %v8507_v61 = vld [vmem:[%s9813_s9 + $0x30] sm:$0xff] }
0x12ae   :  { %7672 = vmatprep.subr.bf16.mxu1 %v8719_v0 }
0x12b0   :  { %4381 = vadd.xlane.f32.xlu0 %v4371_v38 }
0x12b1   :  { %7673 = vmatpush3.bf16.msra.mxu1 %v8051_v6  ;;  %v8508_v6 = vld [vmem:[%s9813_s9 + $0x38] sm:$0xff] }
0x12b2   :  { %7674 = vmatprep.subr.bf16.mxu1 %v8719_v0 }
0x12b4   :  { %4377 = vadd.xlane.f32.xlu0 %v4369_v33 }
0x12b5   :  { %7675 = vmatpush3.bf16.msra.mxu1 %v8052_v51  ;;  %v8509_v51 = vld [vmem:[%s9814_s5] sm:$0xff]  }
0x12b6   :  { %7676 = vmatprep.subr.bf16.mxu1 %v8719_v0 }
0x1329   :  { %v4390_v39 = vpop.xlane.xlu1 %4389 }
0x132a   :  { %v4399_v40 = vmul.f32 %v4390_v39, %v9415_v50  ;;  %v6771_v39 = vld [vmem:[%s9780_s17 + $0x2] ss:$0 sm:$0xff] }
0x132c   :  { %4421 = vrot.lane.b32.xlu0 %v4399_v40, %s8722_s29 }
0x132d   :  { %v4384_v36 = vpop.xlane.xlu1 %4383  ;;  %v4392_v15 = vpop.xlane.xlu0 %4391 }
0x132e   :  { %v4396_v49 = vmul.f32 %v9393_v18, %v4384_v36  ;;  %v4400_v43 = vmul.f32 %v9409_v56, %v4392_v15 }
0x1330   :  { %4423 = vrot.lane.b32.xlu1 %v4400_v43, %s8722_s29  ;;  %4415 = vrot.lane.b32.xlu0 %v4396_v49, %s8722_s29 }
0x1331   :  { %v4380_v53 = vpop.xlane.xlu1 %4379  ;;  %v4388_v29 = vpop.xlane.xlu0 %4387 }
0x1332   :  { %v4394_v45 = vmul.f32 %v9384_v13, %v4380_v53  ;;  %v4398_v24 = vmul.f32 %v9401_v7, %v4388_v29  ;;  %v4539_v13 = vpop.f32.mrf.mxu1 }
0x1333   :  { %v4545_v2 = vpack.c.bf16 %v4539_v13, %v4539_v13  ;;  %v8064_v13 = vld [vmem:[#allocation8 + $0x1d4] ss:$8 sps:$4 sm:$0xff]  }
0x1334   :  { %4419 = vrot.lane.b32.xlu1 %v4398_v24, %s8722_s29  ;;  %4411 = vrot.lane.b32.xlu0 %v4394_v45, %s8722_s29  ;;  %v7664_v7 = vpop.f32.mrf.mxu1 }
0x1335   :  { %v4386_v50 = vpop.xlane.xlu0 %4385  ;;  %v8062_v7 = vld [vmem:[#allocation8 + $0x1d0] ss:$8 sps:$4 sm:$0xff]  }
0x1336   :  { %v4397_v28 = vmul.f32 %v4386_v50, %v9405_v19  ;;  %v4542_v55 = vpop.f32.mrf.mxu1 }
0x1337   :  { %v8067_v55 = vld [vmem:[#allocation8 + $0x1c4] ss:$8 sps:$4 sm:$0xff]  }
0x1338   :  { %4417 = vrot.lane.b32.xlu1 %v4397_v28, %s8722_s29  ;;  %v7665_v57 = vpop.f32.mrf.mxu1 }
0x1339   :  { %v4382_v18 = vpop.xlane.xlu0 %4381  ;;  %v8065_v57 = vld [vmem:[#allocation8 + $0x1c0] ss:$8 sps:$4 sm:$0xff]  }
0x133a   :  { %v4395_v56 = vmul.f32 %v4382_v18, %v9398_v23  ;;  %v6815_v18 = vld [vmem:[%s9786_s23 + $0xc] sm:$0xf] }
0x133c   :  { %4413 = vrot.lane.b32.xlu1 %v4395_v56, %s8722_s29 }
0x133d   :  { %v4378_v37 = vpop.xlane.xlu0 %4377 }
0x133e   :  { %v4393_v52 = vmul.f32 %v4378_v37, %v9388_v10 }
0x1340   :  { %4409 = vrot.lane.b32.xlu1 %v4393_v52, %s8722_s29  ;;  %v6818_v52 = vld [vmem:[%s9787_s24 + $0xc] sm:$0xf] }
0x139e   :  { %v4422_v58 = vpop.permute.xlu0 %4421 }
0x13a2   :  { %v4424_v44 = vpop.permute.xlu1 %4423  ;;  %v4416_v23 = vpop.permute.xlu0 %4415 }
0x13a3   :  { %7636 = vmatpush3.msra.mxu0 %v4424_v44  ;;  %v8070_v44 = vld [vmem:[#allocation8 + $0x1b4] ss:$8 sps:$4 sm:$0xff]  }
0x13a4   :  { %7637 = vmatprep.subr.mxu0 %v8719_v0 }
0x13a5   :  { %7638 = vmatpush3.msra.mxu0 %v4422_v58  ;;  %v8068_v58 = vld [vmem:[#allocation8 + $0x1b0] ss:$8 sps:$4 sm:$0xff]  }
0x13a6   :  { %v4420_v19 = vpop.permute.xlu1 %4419  ;;  %7639 = vmatprep.subr.mxu0 %v8719_v0  ;;  %v4412_v8 = vpop.permute.xlu0 %4411 }
0x13a7   :  { %7640 = vmatpush3.msra.mxu0 %v4420_v19  ;;  %v8073_v19 = vld [vmem:[#allocation8 + $0x1a4] ss:$8 sps:$4 sm:$0xff]  }
0x13a8   :  { %7641 = vmatprep.subr.mxu0 %v8719_v0 }
0x13aa   :  { %v4418_v10 = vpop.permute.xlu1 %4417 }
0x13ab   :  { %7642 = vmatpush3.msra.mxu0 %v4418_v10  ;;  %v8076_v10 = vld [vmem:[#allocation8 + $0x194] ss:$8 sps:$4 sm:$0xff]  }
0x13ac   :  { %7643 = vmatprep.subr.mxu0 %v8719_v0 }
0x13ad   :  { %7644 = vmatpush3.msra.mxu0 %v4416_v23  ;;  %v8071_v23 = vld [vmem:[#allocation8 + $0x1a0] ss:$8 sps:$4 sm:$0xff]  }
0x13ae   :  { %v4414_v5 = vpop.permute.xlu1 %4413  ;;  %7645 = vmatprep.subr.mxu0 %v8719_v0 }
0x13af   :  { %7646 = vmatpush3.msra.mxu0 %v4414_v5  ;;  %v8074_v5 = vld [vmem:[#allocation8 + $0x190] ss:$8 sps:$4 sm:$0xff]  }
0x13b0   :  { %7647 = vmatprep.subr.mxu0 %v8719_v0 }
0x13b1   :  { %7648 = vmatpush3.msra.mxu0 %v4412_v8  ;;  %v8079_v8 = vld [vmem:[#allocation8 + $0x184] ss:$8 sps:$4 sm:$0xff]  }
0x13b2   :  { %v4410_v3 = vpop.permute.xlu1 %4409  ;;  %7649 = vmatprep.subr.mxu0 %v8719_v0 }
0x13b3   :  { %7650 = vmatpush3.msra.mxu0 %v4410_v3 }
0x13b4   :  { %7652 = vmatmul.mubr.msk.f32.vlgmr.msra.gmra.mxu0 %vm1427_vm4, %v8500_v12  ;;  %7148 = vmatprep.subr.bf16.mxu0 %v8032_v46  ;;  %v8077_v46 = vld [vmem:[#allocation8 + $0x180] ss:$8 sps:$4 sm:$0xff]  }
0x13b5   :  { %7149 = vmatpush3.bf16.msra.mxu0 %v8033_v21  ;;  %4715 = vmatprep.mubr.bf16.mxu0 %v4545_v2  ;;  %v6790_v21 = vld [vmem:[%s9782_s19 + $0x2] ss:$0 sm:$0xff] }
0x13b6   :  { %7150 = vmatprep.subr.bf16.mxu0 %v8034_v11 }
0x13b9   :  { %7151 = vmatpush3.bf16.msra.mxu0 %v8035_v41 }
0x13ba   :  { %7152 = vmatprep.subr.bf16.mxu0 %v8036_v42 }
0x13bd   :  { %7153 = vmatpush3.bf16.msra.mxu0 %v8037_v62 }
0x13be   :  { %7154 = vmatprep.subr.bf16.mxu0 %v8038_v47 }
0x13c1   :  { %7155 = vmatpush3.bf16.msra.mxu0 %v8039_v54 }
0x13c2   :  { %7156 = vmatprep.subr.bf16.mxu0 %v8040_v16 }
0x13c5   :  { %7157 = vmatpush3.bf16.msra.mxu0 %v8041_v48 }
0x13c6   :  { %7158 = vmatprep.subr.bf16.mxu0 %v8042_v20  ;;  %v8502_v20 = vld [vmem:[%s9813_s9 + $0x8] sm:$0xff] }
0x13c9   :  { %7159 = vmatpush3.bf16.msra.mxu0 %v8043_v63  ;;  %v8503_v63 = vld [vmem:[%s9813_s9 + $0x10] sm:$0xff] }
0x13ca   :  { %7160 = vmatprep.subr.bf16.mxu0 %v8044_v60 }
0x13cd   :  { %7161 = vmatpush3.bf16.msra.mxu0 %v8045_v17 }
0x13ce   :  { %7162 = vmatprep.subr.bf16.mxu0 %v8046_v25  ;;  %v8504_v25 = vld [vmem:[%s9813_s9 + $0x18] sm:$0xff] }
0x13d1   :  { %7163 = vmatpush3.bf16.msra.mxu0 %v8047_v27  ;;  %v8505_v27 = vld [vmem:[%s9813_s9 + $0x20] sm:$0xff] }
0x13d2   :  { %4946 = vmatprep.subr.bf16.mxu0 %v8058_v32 }
0x13d4   :  { %4716 = vmatmul.mubr.bf16.vlgmr.msra.gmra.mxu0 %v9365_v9  ;;  %v8054_v9 = vld [vmem:[#allocation13 + $0x88] sm:$0xff]  }
0x13d5   :  { %4978 = vmatprep.mubr.bf16.mxu0 %v8721_v22  ;;  %v8053_v22 = vld [vmem:[#allocation13 + $0x90] sm:$0xff]   ;;  %4947 = vmatpush1.bf16.msra.mxu0 %v8056_v26 }
0x13d6   :  { %7677 = vmatpush3.bf16.msra.mxu1 %v8053_v22  ;;  %4948 = vmatprep.subr.bf16.mxu0 %v8061_v34 }
0x13d7   :  { %7678 = vmatprep.subr.bf16.mxu1 %v8719_v0 }
0x13d9   :  { %4949 = vmatpush1.bf16.msra.mxu0 %v8059_v35 }
0x13da   :  { %7679 = vmatpush3.bf16.msra.mxu1 %v8054_v9  ;;  %4950 = vmatprep.subr.bf16.mxu0 %v8064_v13 }
0x13db   :  { %7680 = vmatprep.subr.bf16.mxu1 %v8719_v0 }
0x13dd   :  { %4951 = vmatpush1.bf16.msra.mxu0 %v8062_v7 }
0x13de   :  { %7681 = vmatpush3.bf16.msra.mxu1 %v8055_v4  ;;  %4952 = vmatprep.subr.bf16.mxu0 %v8067_v55  ;;  %v8510_v55 = vld [vmem:[%s9814_s5 + $0x8] sm:$0xff]  }
0x13df   :  { %7686 = vmatprep.subr.mxu1 %v8719_v0 }
0x13e1   :  { %4953 = vmatpush1.bf16.msra.mxu0 %v8065_v57  ;;  %v8511_v57 = vld [vmem:[%s9814_s5 + $0x10] sm:$0xff]  }
0x13e2   :  { %4954 = vmatprep.subr.bf16.mxu0 %v8070_v44 }
0x13e5   :  { %4955 = vmatpush1.bf16.msra.mxu0 %v8068_v58  ;;  %v8512_v58 = vld [vmem:[%s9814_s5 + $0x18] sm:$0xff]  }
0x13e6   :  { %4956 = vmatprep.subr.bf16.mxu0 %v8073_v19 }
0x13e9   :  { %4957 = vmatpush1.bf16.msra.mxu0 %v8071_v23 }
0x13ea   :  { %4958 = vmatprep.subr.bf16.mxu0 %v8076_v10 }
0x13ed   :  { %4959 = vmatpush1.bf16.msra.mxu0 %v8074_v5 }
0x13ee   :  { %4960 = vmatprep.subr.bf16.mxu0 %v8079_v8 }
0x13f1   :  { %4961 = vmatpush1.bf16.msra.mxu0 %v8077_v46 }
0x1474   :  { %v4499_v1 = vpop.f32.mrf.mxu0 }
0x1475   :  { %v4503_v56 = vmul.f32 %v4499_v1, %v9121_v59 }
0x1476   :  { %v7653_v38 = vpop.f32.mrf.mxu0 }
0x1477   :  { %v9529_v37 = vadd.f32 %v4503_v56, %v9330_v14  ;;  %v8501_v14 = vld [vmem:[%s9813_s9] sm:$0xff] }
0x1494   :  { %v7164_v33 = vpop.f32.mrf.mxu0 }
0x1496   :  { %v7165_v40 = vpop.f32.mrf.mxu0 }
0x1497   :  { %v7166_v36 = vadd.f32 %v7165_v40, %v7164_v33 }
0x1498   :  { %v7167_v15 = vpop.f32.mrf.mxu0 }
0x1499   :  { %v4718_v49 = vadd.f32 %v7166_v36, %v6771_v39 }
0x149a   :  { %v7168_v43 = vpop.f32.mrf.mxu0 }
0x149b   :  { %v6788_v53 = vmul.f32 -1.442695, %v4718_v49 }
0x149d   :  { %8380 = vpow2.f32 %v6788_v53 }
0x14aa   :  { %v8381_v29 = vpop.eup %8380 }
0x14ab   :  { %v4726_v45 = vadd.f32 1.0, %v8381_v29 }
0x14ad   :  { %8382 = vrcp.f32 %v4726_v45 }
0x14ba   :  { %v8383_v24 = vpop.eup %8382 }
0x14bb   :  { %v4729_v50 = vmul.f32 %v8383_v24, %v4718_v49 }
0x14bd   :  { %v4730_v28 = vpack.c.bf16 %v4729_v50, %v4729_v50 }
0x14bf   :  { %7683 = vmatmul.mubr.bf16.vlgmr.msra.gmra.mxu1 %v4730_v28 }
0x14c0   :  { %7687 = vmatpush3.msk.msra.mxu1 %vm221_vm1, %v6815_v18  ;;  %7688 = vmatprep.mubr.msk.f32.mxu1 %vm8720_vm0, %v8719_v0 }
0x14c1   :  { %7691 = vmatprep.subr.mxu1 %v8719_v0 }
0x14c7   :  { %7689 = vmatmul.mubr.msk.f32.vlgmr.msra.gmra.mxu1 %vm217_vm2, %v9529_v37 }
0x14c8   :  { %7692 = vmatpush3.msk.msra.mxu1 %vm221_vm1, %v6818_v52  ;;  %7693 = vmatprep.mubr.msk.f32.mxu1 %vm8720_vm0, %v8719_v0 }
0x14cb   :  { %7694 = vmatmul.mubr.msk.f32.vlgmr.msra.gmra.mxu1 %vm217_vm2, %v9529_v37 }
0x14cc   :  { %7700 = vmatprep.mubr.msk.f32.mxu1 %vm586_vm3, %v8501_v14 }
0x157f   :  { %v4838_v2 = vpop.f32.mrf.mxu1 }
0x1580   :  { %v4839_v3 = vadd.f32 %v6790_v21, %v4838_v2 }
0x1581   :  { %v7684_v11 = vpop.f32.mrf.mxu1 }
0x1582   :  { %v4844_v12 = vand.u32 2147483647, %v4839_v3 }
0x1583   :  { %v4841_v41 = vpop.f32.mrf.mxu1 }
0x1584   :  { %v4845_v42 = vadd.f32 1.0, %v4844_v12 }
0x1585   :  { %v7685_v62 = vpop.f32.mrf.mxu1 }
0x1586   :  { %8384 = vrcp.f32 %v4845_v42 }
0x1587   :  { %v5062_v47 = vpop.f32.mrf.mxu1 }
0x1589   :  { %v7690_v54 = vpop.f32.mrf.mxu1 }
0x158b   :  { %v5137_v16 = vpop.f32.mrf.mxu1 }
0x158c   :  { %7696 = vmatprep.subr.mxu1 %v5137_v16 }
0x158d   :  { %v7695_v48 = vpop.f32.mrf.mxu1  ;;  %7697 = vmatpush3.msra.mxu1 %v5137_v16 }
0x158e   :  { %7698 = vmatprep.subr.mxu1 %v5062_v47 }
0x158f   :  { %7699 = vmatpush3.msra.mxu1 %v5062_v47 }
0x1590   :  { %7701 = vmatmul.mubr.msk.f32.vlgmr.msra.gmra.mxu1 %vm586_vm3, %v8502_v20 }
0x1591   :  { %7703 = vmatprep.mubr.msk.f32.mxu1 %vm586_vm3, %v8503_v63 }
0x1593   :  { %v8385_v60 = vpop.eup %8384 }
0x1594   :  { %v4847_v17 = vmul.f32 %v8385_v60, %v4839_v3  ;;  %7704 = vmatmul.mubr.msk.f32.gmra.mxu1 %vm586_vm3, %v8504_v25 }
0x1595   :  { %7706 = vmatprep.mubr.msk.f32.mxu1 %vm586_vm3, %v8505_v27  ;;  %v8080_v27 = vld [vmem:[#allocation10 + $0xf8] sm:$0xff]  }
0x1596   :  { %v9564_v30 = vpack.c.bf16 %v4847_v17, %v4847_v17  ;;  %7722 = vmatprep.subr.bf16.mxu0 %v8080_v27 }
0x1598   :  { %4979 = vmatmul.mubr.bf16.vlgmr.msra.gmra.mxu0 %v9564_v30  ;;  %7707 = vmatmul.mubr.msk.f32.gmra.mxu1 %vm586_vm3, %v8506_v31 }
0x1599   :  { %7709 = vmatprep.mubr.msk.f32.mxu1 %vm586_vm3, %v8507_v61  ;;  %7723 = vmatpush3.bf16.msra.mxu0 %v8080_v27  ;;  %v8081_v61 = vld [vmem:[#allocation10 + $0xf0] sm:$0xff]  }
0x159a   :  { %7724 = vmatprep.subr.bf16.mxu0 %v8081_v61  ;;  %v5422_v27 = vld [vmem:[#allocation2 + $0xf0] sm:$0xff] }
0x159c   :  { %7710 = vmatmul.mubr.msk.f32.gmra.mxu1 %vm586_vm3, %v8508_v6  ;;  %v8082_v6 = vld [vmem:[#allocation10 + $0xe8] sm:$0xff]  }
0x159d   :  { %7714 = vmatprep.mubr.msk.bf16.mxu1 %vm586_vm3, %v8509_v51  ;;  %7725 = vmatpush3.bf16.msra.mxu0 %v8081_v61  ;;  %v8083_v51 = vld [vmem:[#allocation10 + $0xe0] sm:$0xff]  }
0x159e   :  { %7726 = vmatprep.subr.bf16.mxu0 %v8082_v6 }
0x15a1   :  { %7727 = vmatpush3.bf16.msra.mxu0 %v8082_v6 }
0x15a2   :  { %7728 = vmatprep.subr.bf16.mxu0 %v8083_v51 }
0x15a5   :  { %7729 = vmatpush3.bf16.msra.mxu0 %v8083_v51 }
0x1650   :  { %v9583_v22 = vpop.f32.mrf.mxu1 }
0x1651   :  { %v5247_v9 = vmul.f32 %v9583_v22, %v9583_v22 }
0x1652   :  { %v9587_v4 = vpop.f32.mrf.mxu1 }
0x1653   :  { %v5246_v26 = vmul.f32 %v9587_v4, %v9587_v4  ;;  %v5257_v32 = vsel %vm217_vm2, %v5247_v9, 0.0  ;;  %v5279_v19 = vmul.f32 2.0, %v5247_v9  ;;  %v8084_v9 = vld [vmem:[#allocation10 + $0xd8] sm:$0xff]  }
0x1654   :  { %5258 = vadd.xlane.f32.xlu1 %v5257_v32  ;;  %v9592_v34 = vpop.f32.mrf.mxu1  ;;  %7730 = vmatprep.subr.bf16.mxu0 %v8084_v9  ;;  %v8086_v32 = vld [vmem:[#allocation10 + $0xc8] sm:$0xff]  }
0x1655   :  { %v5249_v35 = vmul.f32 %v9592_v34, %v9592_v34  ;;  %v5254_v1 = vsel %vm217_vm2, %v5246_v26, 0.0  ;;  %v5278_v5 = vmul.f32 2.0, %v5246_v26  ;;  %7731 = vmatpush3.bf16.msra.mxu0 %v8084_v9  ;;  %v8085_v26 = vld [vmem:[#allocation10 + $0xd0] sm:$0xff]  }
0x1656   :  { %5255 = vadd.xlane.f32.xlu0 %v5254_v1  ;;  %v9597_v38 = vpop.f32.mrf.mxu1  ;;  %7732 = vmatprep.subr.bf16.mxu0 %v8085_v26 }
0x1657   :  { %v5263_v33 = vsel %vm217_vm2, %v5249_v35, 0.0  ;;  %v5248_v36 = vmul.f32 %v9597_v38, %v9597_v38  ;;  %v5281_v21 = vmul.f32 2.0, %v5249_v35  ;;  %v8087_v35 = vld [vmem:[#allocation10 + $0xc0] sm:$0xff]  }
0x1658   :  { %v4980_v39 = vpop.f32.mrf.mxu0  ;;  %v9600_v40 = vpop.f32.mrf.mxu1 }
0x1659   :  { %v5251_v24 = vmul.f32 %v9600_v40, %v9600_v40  ;;  %v5260_v50 = vsel %vm217_vm2, %v5248_v36, 0.0  ;;  %v5280_v11 = vmul.f32 2.0, %v5248_v36  ;;  %7733 = vmatpush3.bf16.msra.mxu0 %v8085_v26  ;;  %v6830_v36 = vld [vmem:[%s9776_s13 + $0x3] ss:$0 sm:$0xff] }
0x165a   :  { %v4982_v15 = vpop.f32.mrf.mxu0  ;;  %5264 = vadd.xlane.f32.xlu0 %v5263_v33  ;;  %v9604_v49 = vpop.f32.mrf.mxu1  ;;  %7734 = vmatprep.subr.bf16.mxu0 %v8086_v32 }
0x165b   :  { %v4987_v43 = vpack.c.bf16 %v4982_v15, %v4980_v39  ;;  %v5250_v53 = vmul.f32 %v9604_v49, %v9604_v49  ;;  %v5269_v13 = vsel %vm217_vm2, %v5251_v24, 0.0  ;;  %v5283_v54 = vmul.f32 2.0, %v5251_v24 }
0x165c   :  { %v4984_v29 = vpop.f32.mrf.mxu0  ;;  %v9608_v45 = vpop.f32.mrf.mxu1 }
0x165d   :  { %7712 = vmatprep.subr.bf16.mxu1 %v4987_v43  ;;  %v5266_v28 = vsel %vm217_vm2, %v5250_v53, 0.0  ;;  %v5253_v14 = vmul.f32 %v9608_v45, %v9608_v45  ;;  %v5282_v41 = vmul.f32 2.0, %v5250_v53  ;;  %7735 = vmatpush3.bf16.msra.mxu0 %v8086_v32  ;;  %v5417_v29 = vld [vmem:[#allocation2 + $0xc8] sm:$0xff] }
0x165e   :  { %v4985_v18 = vpop.f32.mrf.mxu0  ;;  %7713 = vmatpush3.bf16.msra.mxu1 %v4987_v43  ;;  %5261 = vadd.xlane.f32.xlu0 %v5260_v50  ;;  %v9614_v56 = vpop.f32.mrf.mxu1 }
0x165f   :  { %5267 = vadd.xlane.f32.xlu1 %v5266_v28  ;;  %v5252_v52 = vmul.f32 %v9614_v56, %v9614_v56  ;;  %v5275_v44 = vsel %vm217_vm2, %v5253_v14, 0.0  ;;  %v5285_v17 = vmul.f32 2.0, %v5253_v14  ;;  %7736 = vmatprep.subr.bf16.mxu0 %v8087_v35  ;;  %v5416_v18 = vld [vmem:[#allocation2 + $0xc0] sm:$0xff] }
0x1661   :  { %v5272_v7 = vsel %vm217_vm2, %v5252_v52, 0.0  ;;  %7715 = vmatmul.mubr.msk.bf16.vlgmr.msra.gmra.mxu1 %vm586_vm3, %v8510_v55  ;;  %v5284_v48 = vmul.f32 2.0, %v5252_v52  ;;  %7737 = vmatpush3.bf16.msra.mxu0 %v8087_v35  ;;  %v5423_v35 = vld [vmem:[#allocation2 + $0xf8] sm:$0xff] }
0x1662   :  { %5270 = vadd.xlane.f32.xlu0 %v5269_v13  ;;  %7718 = vmatprep.mubr.msk.bf16.mxu1 %vm586_vm3, %v8511_v57 }
0x1663   :  { %5273 = vadd.xlane.f32.xlu1 %v5272_v7  ;;  %7770 = vmatprep.subr.mxu0 %v8719_v0 }
0x1666   :  { %5276 = vadd.xlane.f32.xlu0 %v5275_v44 }
0x1669   :  { %7719 = vmatmul.mubr.msk.bf16.gmra.mxu1 %vm586_vm3, %v8512_v58  ;;  %v5419_v58 = vld [vmem:[#allocation2 + $0xd8] sm:$0xff] }
0x16dd   :  { %v5259_v23 = vpop.xlane.xlu1 %5258 }
0x16de   :  { %v5287_v10 = vsub.f32 %v5259_v23, %v5279_v19 }
0x16df   :  { %v5256_v8 = vpop.xlane.xlu0 %5255 }
0x16e0   :  { %v5286_v46 = vsub.f32 %v5256_v8, %v5278_v5  ;;  %5303 = vperm.xlu0 %7858, %v5287_v10  }
0x16e2   :  { %5298 = vperm.xlu1 %7859, %v5286_v46  }
0x16e3   :  { %v5265_v2 = vpop.xlane.xlu0 %5264 }
0x16e4   :  { %v5289_v3 = vsub.f32 %v5265_v2, %v5281_v21 }
0x16e6   :  { %5313 = vperm.xlu1 %7859, %v5289_v3   ;;  %v5418_v3 = vld [vmem:[#allocation2 + $0xd0] sm:$0xff] }
0x16e7   :  { %v5262_v12 = vpop.xlane.xlu0 %5261 }
0x16e8   :  { %v5288_v42 = vsub.f32 %v5262_v12, %v5280_v11  ;;  %v5268_v62 = vpop.xlane.xlu1 %5267 }
0x16e9   :  { %v5290_v47 = vsub.f32 %v5268_v62, %v5282_v41  ;;  %v5420_v41 = vld [vmem:[#allocation2 + $0xe0] sm:$0xff] }
0x16ea   :  { %5308 = vperm.xlu1 %7859, %v5288_v42  }
0x16eb   :  { %5318 = vperm.xlu0 %7858, %v5290_v47   ;;  %v5271_v16 = vpop.xlane.xlu0 %5270 }
0x16ec   :  { %v5291_v20 = vsub.f32 %v5271_v16, %v5283_v54  ;;  %v5274_v63 = vpop.xlane.xlu1 %5273 }
0x16ed   :  { %v5292_v60 = vsub.f32 %v5274_v63, %v5284_v48 }
0x16ee   :  { %5323 = vperm.xlu1 %7859, %v5291_v20  }
0x16ef   :  { %5328 = vperm.xlu0 %7858, %v5292_v60   ;;  %v5277_v25 = vpop.xlane.xlu0 %5276 }
0x16f0   :  { %v5293_v31 = vsub.f32 %v5277_v25, %v5285_v17  ;;  %v5421_v17 = vld [vmem:[#allocation2 + $0xe8] sm:$0xff] }
0x16f2   :  { %5333 = vperm.xlu1 %7859, %v5293_v31  }
0x1721   :  { %v7716_v1 = vpop.f32.mrf.mxu1 }
0x1723   :  { %v5384_v33 = vpop.f32.mrf.mxu1 }
0x1725   :  { %v7717_v39 = vpop.f32.mrf.mxu1 }
0x1727   :  { %v5387_v43 = vpop.f32.mrf.mxu1 }
0x1729   :  { %v7720_v52 = vpop.f32.mrf.mxu1 }
0x172b   :  { %v5400_v19 = vpop.f32.mrf.mxu1 }
0x172d   :  { %v7721_v11 = vpop.f32.mrf.mxu1 }
0x172f   :  { %v5403_v63 = vpop.f32.mrf.mxu1 }
0x175b   :  { %v5304_v15 = vpop.permute.xlu0 %5303 }
0x175c   :  { %v5343_v53 = vmul.f32 %v6830_v36, %v5304_v15 }
0x175d   :  { %v5299_v24 = vpop.permute.xlu1 %5298 }
0x175e   :  { %v5388_v50 = vadd.f32 %v5387_v43, %v5343_v53  ;;  %v5342_v28 = vmul.f32 %v6830_v36, %v5299_v24 }
0x1760   :  { %v9639_v14 = vadd.f32 %v5417_v29, %v5388_v50  ;;  %v5385_v13 = vadd.f32 %v5384_v33, %v5342_v28 }
0x1761   :  { %v5314_v7 = vpop.permute.xlu1 %5313 }
0x1762   :  { %v6836_v55 = vmul.f32 -1.442695, %v9639_v14  ;;  %v9642_v57 = vadd.f32 %v5416_v18, %v5385_v13  ;;  %v5345_v44 = vmul.f32 %v6830_v36, %v5314_v7 }
0x1764   :  { %8386 = vpow2.f32 %v6836_v55  ;;  %v6835_v23 = vmul.f32 -1.442695, %v9642_v57  ;;  %v5396_v10 = vadd.f32 %v7717_v39, %v5345_v44 }
0x1765   :  { %v5309_v5 = vpop.permute.xlu1 %5308 }
0x1766   :  { %8388 = vpow2.f32 %v6835_v23  ;;  %v9645_v8 = vadd.f32 %v5419_v58, %v5396_v10  ;;  %v5319_v46 = vpop.permute.xlu0 %5318  ;;  %v5344_v21 = vmul.f32 %v6830_v36, %v5309_v5 }
0x1767   :  { %v5346_v2 = vmul.f32 %v6830_v36, %v5319_v46 }
0x1768   :  { %v6838_v12 = vmul.f32 -1.442695, %v9645_v8  ;;  %v5393_v42 = vadd.f32 %v7716_v1, %v5344_v21 }
0x1769   :  { %v5401_v62 = vadd.f32 %v5400_v19, %v5346_v2  ;;  %v5324_v47 = vpop.permute.xlu1 %5323 }
0x176a   :  { %8390 = vpow2.f32 %v6838_v12  ;;  %v5426_v54 = vadd.f32 %v5418_v3, %v5393_v42  ;;  %v5329_v16 = vpop.permute.xlu0 %5328  ;;  %v5347_v48 = vmul.f32 %v6830_v36, %v5324_v47 }
0x176b   :  { %v5428_v20 = vadd.f32 %v5420_v41, %v5401_v62  ;;  %v5348_v60 = vmul.f32 %v6830_v36, %v5329_v16 }
0x176c   :  { %v6837_v25 = vmul.f32 -1.442695, %v5426_v54  ;;  %v5404_v31 = vadd.f32 %v5403_v63, %v5347_v48 }
0x176d   :  { %v6839_v61 = vmul.f32 -1.442695, %v5428_v20  ;;  %v5409_v6 = vadd.f32 %v7720_v52, %v5348_v60  ;;  %v5334_v51 = vpop.permute.xlu1 %5333 }
0x176e   :  { %8392 = vpow2.f32 %v6837_v25  ;;  %v5429_v9 = vadd.f32 %v5421_v17, %v5404_v31  ;;  %v5349_v26 = vmul.f32 %v6830_v36, %v5334_v51  ;;  %v8088_v31 = vld [vmem:[#allocation14 + $0xf8] sm:$0xff]   ;;  %v8094_v51 = vld [vmem:[#allocation14 + $0xc8] sm:$0xff]  }
0x176f   :  { %8394 = vpow2.f32 %v6839_v61  ;;  %v5430_v32 = vadd.f32 %v5422_v27, %v5409_v6  ;;  %7746 = vmatprep.subr.bf16.mxu1 %v8088_v31  ;;  %v8092_v61 = vld [vmem:[#allocation14 + $0xd8] sm:$0xff]   ;;  %v8093_v6 = vld [vmem:[#allocation14 + $0xd0] sm:$0xff]  }
0x1770   :  { %v6840_v1 = vmul.f32 -1.442695, %v5429_v9  ;;  %v5412_v33 = vadd.f32 %v7721_v11, %v5349_v26  ;;  %7747 = vmatpush3.bf16.msra.mxu1 %v8088_v31  ;;  %v6844_v26 = vld [vmem:[%s9778_s15 + $0x3] ss:$0 sm:$0xff] }
0x1771   :  { %v8387_v39 = vpop.eup %8386  ;;  %v6841_v15 = vmul.f32 -1.442695, %v5430_v32 }
0x1772   :  { %v5457_v43 = vadd.f32 1.0, %v8387_v39  ;;  %8396 = vpow2.f32 %v6840_v1  ;;  %v5431_v53 = vadd.f32 %v5423_v35, %v5412_v33 }
0x1773   :  { %v8389_v29 = vpop.eup %8388  ;;  %8398 = vpow2.f32 %v6841_v15 }
0x1774   :  { %8400 = vrcp.f32 %v5457_v43  ;;  %v5456_v24 = vadd.f32 1.0, %v8389_v29  ;;  %v6842_v50 = vmul.f32 -1.442695, %v5431_v53 }
0x1776   :  { %8402 = vrcp.f32 %v5456_v24 }
0x1777   :  { %v8391_v28 = vpop.eup %8390  ;;  %8404 = vpow2.f32 %v6842_v50 }
0x1778   :  { %v5459_v18 = vadd.f32 1.0, %v8391_v28 }
0x177a   :  { %8406 = vrcp.f32 %v5459_v18 }
0x177b   :  { %v8393_v36 = vpop.eup %8392 }
0x177c   :  { %v8395_v52 = vpop.eup %8394  ;;  %v5458_v13 = vadd.f32 1.0, %v8393_v36 }
0x177d   :  { %v5460_v7 = vadd.f32 1.0, %v8395_v52 }
0x177e   :  { %8408 = vrcp.f32 %v5458_v13 }
0x177f   :  { %v8397_v55 = vpop.eup %8396  ;;  %8410 = vrcp.f32 %v5460_v7 }
0x1780   :  { %v8399_v44 = vpop.eup %8398  ;;  %v5461_v58 = vadd.f32 1.0, %v8397_v55 }
0x1781   :  { %v8401_v19 = vpop.eup %8400  ;;  %v5462_v23 = vadd.f32 1.0, %v8399_v44 }
0x1782   :  { %8412 = vrcp.f32 %v5461_v58  ;;  %v5481_v46 = vmul.f32 %v8401_v19, %v9639_v14 }
0x1783   :  { %v8403_v10 = vpop.eup %8402  ;;  %8414 = vrcp.f32 %v5462_v23 }
0x1784   :  { %v8405_v5 = vpop.eup %8404  ;;  %v5480_v21 = vmul.f32 %v8403_v10, %v9642_v57 }
0x1785   :  { %v5463_v2 = vadd.f32 1.0, %v8405_v5 }
0x1786   :  { %v5488_v3 = vpack.c.bf16 %v5481_v46, %v5480_v21 }
0x1787   :  { %8416 = vrcp.f32 %v5463_v2  ;;  %v8407_v11 = vpop.eup %8406 }
0x1788   :  { %7738 = vmatprep.mubr.bf16.mxu0 %v5488_v3  ;;  %v5483_v41 = vmul.f32 %v8407_v11, %v9645_v8  ;;  %v8089_v8 = vld [vmem:[#allocation14 + $0xf0] sm:$0xff]  }
0x1789   :  { %7748 = vmatprep.subr.bf16.mxu1 %v8089_v8 }
0x178a   :  { %7749 = vmatpush3.bf16.msra.mxu1 %v8089_v8 }
0x178b   :  { %v8409_v12 = vpop.eup %8408 }
0x178c   :  { %v5482_v42 = vmul.f32 %v8409_v12, %v5426_v54  ;;  %v8411_v62 = vpop.eup %8410  ;;  %v8090_v54 = vld [vmem:[#allocation14 + $0xe8] sm:$0xff]  }
0x178d   :  { %v5484_v48 = vmul.f32 %v8411_v62, %v5428_v20  ;;  %7750 = vmatprep.subr.bf16.mxu1 %v8090_v54  ;;  %v8091_v20 = vld [vmem:[#allocation14 + $0xe0] sm:$0xff]  }
0x178e   :  { %v5489_v47 = vpack.c.bf16 %v5483_v41, %v5482_v42  ;;  %7751 = vmatpush3.bf16.msra.mxu1 %v8090_v54 }
0x178f   :  { %v8413_v16 = vpop.eup %8412  ;;  %7752 = vmatprep.subr.bf16.mxu1 %v8091_v20 }
0x1790   :  { %7739 = vmatmul.mubr.bf16.vlgmr.msra.gmra.mxu0 %v5489_v47  ;;  %v5485_v63 = vmul.f32 %v8413_v16, %v5429_v9  ;;  %v8415_v60 = vpop.eup %8414  ;;  %v8095_v9 = vld [vmem:[#allocation14 + $0xc0] sm:$0xff]  }
0x1791   :  { %v5486_v57 = vmul.f32 %v8415_v60, %v5430_v32 }
0x1792   :  { %v5490_v14 = vpack.c.bf16 %v5485_v63, %v5484_v48  ;;  %7753 = vmatpush3.bf16.msra.mxu1 %v8091_v20 }
0x1793   :  { %7754 = vmatprep.subr.bf16.mxu1 %v8092_v61 }
0x1794   :  { %v8417_v17 = vpop.eup %8416  ;;  %7742 = vmatprep.mubr.bf16.mxu0 %v5490_v14 }
0x1795   :  { %v5487_v25 = vmul.f32 %v8417_v17, %v5431_v53 }
0x1796   :  { %7755 = vmatpush3.bf16.msra.mxu1 %v8092_v61 }
0x1797   :  { %v5491_v27 = vpack.c.bf16 %v5487_v25, %v5486_v57  ;;  %7756 = vmatprep.subr.bf16.mxu1 %v8093_v6 }
0x1799   :  { %7743 = vmatmul.mubr.bf16.gmra.mxu0 %v5491_v27 }
0x179a   :  { %7786 = vmatprep.mubr.msk.f32.mxu0 %vm8720_vm0, %v8719_v0  ;;  %7757 = vmatpush3.bf16.msra.mxu1 %v8093_v6 }
0x179b   :  { %7758 = vmatprep.subr.bf16.mxu1 %v8094_v51 }
0x179e   :  { %7759 = vmatpush3.bf16.msra.mxu1 %v8094_v51 }
0x179f   :  { %7760 = vmatprep.subr.bf16.mxu1 %v8095_v9 }
0x17a2   :  { %7761 = vmatpush3.bf16.msra.mxu1 %v8095_v9 }
0x17a3   :  { %7789 = vmatprep.subr.bf16.mxu1 %v8719_v0 }
0x1850   :  { %v7740_v32 = vpop.f32.mrf.mxu0 }
0x1851   :  { %v5608_v35 = vadd.f32 %v7740_v32, %v6844_v26  ;;  %v8513_v32 = vld [vmem:[%s9815_s4] sm:$0xf] }
0x1852   :  { %v5599_v1 = vpop.f32.mrf.mxu0 }
0x1853   :  { %v5600_v33 = vadd.f32 %v6844_v26, %v5599_v1  ;;  %v5632_v39 = vand.u32 2147483647, %v5608_v35 }
0x1854   :  { %v7741_v15 = vpop.f32.mrf.mxu0 }
0x1855   :  { %v5630_v43 = vand.u32 2147483647, %v5600_v33  ;;  %v5611_v53 = vadd.f32 %v7741_v15, %v6844_v26  ;;  %v5640_v18 = vadd.f32 1.0, %v5632_v39 }
0x1856   :  { %v5602_v29 = vpop.f32.mrf.mxu0 }
0x1857   :  { %v5638_v24 = vadd.f32 1.0, %v5630_v43  ;;  %v5633_v50 = vand.u32 2147483647, %v5611_v53  ;;  %v5603_v28 = vadd.f32 %v6844_v26, %v5602_v29 }
0x1859   :  { %v5641_v36 = vadd.f32 1.0, %v5633_v50  ;;  %v5631_v52 = vand.u32 2147483647, %v5603_v28  ;;  %v7744_v13 = vpop.f32.mrf.mxu0  ;;  %8418 = vrcp.f32 %v5638_v24 }
0x185a   :  { %v5624_v7 = vadd.f32 %v7744_v13, %v6844_v26 }
0x185b   :  { %8420 = vrcp.f32 %v5641_v36  ;;  %v5639_v55 = vadd.f32 1.0, %v5631_v52  ;;  %v5615_v44 = vpop.f32.mrf.mxu0 }
0x185c   :  { %8422 = vrcp.f32 %v5640_v18  ;;  %v5636_v58 = vand.u32 2147483647, %v5624_v7  ;;  %v5616_v19 = vadd.f32 %v6844_v26, %v5615_v44 }
0x185d   :  { %8424 = vrcp.f32 %v5639_v55  ;;  %v7745_v23 = vpop.f32.mrf.mxu0 }
0x185e   :  { %v5644_v10 = vadd.f32 1.0, %v5636_v58  ;;  %v5634_v5 = vand.u32 2147483647, %v5616_v19  ;;  %v5627_v46 = vadd.f32 %v7745_v23, %v6844_v26 }
0x185f   :  { %v5618_v21 = vpop.f32.mrf.mxu0 }
0x1860   :  { %v5642_v2 = vadd.f32 1.0, %v5634_v5  ;;  %v5637_v3 = vand.u32 2147483647, %v5627_v46  ;;  %v5619_v11 = vadd.f32 %v6844_v26, %v5618_v21  ;;  %8426 = vrcp.f32 %v5644_v10 }
0x1862   :  { %v5645_v12 = vadd.f32 1.0, %v5637_v3  ;;  %v5635_v41 = vand.u32 2147483647, %v5619_v11  ;;  %8428 = vrcp.f32 %v5642_v2 }
0x1864   :  { %8430 = vrcp.f32 %v5645_v12  ;;  %v5643_v42 = vadd.f32 1.0, %v5635_v41 }
0x1866   :  { %8432 = vrcp.f32 %v5643_v42  ;;  %v8419_v62 = vpop.eup %8418 }
0x1867   :  { %v5647_v60 = vmul.f32 %v8419_v62, %v5600_v33  ;;  %v6854_v33 = vld [vmem:[%s9784_s21 + $0x3] ss:$0 sm:$0xff] }
0x1868   :  { %v8421_v47 = vpop.eup %8420 }
0x1869   :  { %v8423_v16 = vpop.eup %8422  ;;  %v5653_v63 = vmul.f32 %v8421_v47, %v5611_v53 }
0x186a   :  { %v8425_v48 = vpop.eup %8424  ;;  %v5651_v17 = vmul.f32 %v8423_v16, %v5608_v35 }
0x186b   :  { %v5649_v14 = vmul.f32 %v8425_v48, %v5603_v28 }
0x186c   :  { %v5663_v25 = vpack.c.bf16 %v5653_v63, %v5651_v17 }
0x186d   :  { %v5662_v57 = vpack.c.bf16 %v5649_v14, %v5647_v60  ;;  %v8427_v27 = vpop.eup %8426 }
0x186e   :  { %v5659_v54 = vmul.f32 %v8427_v27, %v5624_v7 }
0x186f   :  { %7762 = vmatprep.mubr.bf16.mxu1 %v5662_v57  ;;  %v8429_v31 = vpop.eup %8428 }
0x1870   :  { %7763 = vmatmul.mubr.bf16.vlgmr.msra.gmra.mxu1 %v5663_v25  ;;  %v5655_v6 = vmul.f32 %v8429_v31, %v5616_v19 }
0x1871   :  { %v8431_v8 = vpop.eup %8430 }
0x1872   :  { %v5661_v20 = vmul.f32 %v8431_v8, %v5627_v46 }
0x1873   :  { %v8433_v61 = vpop.eup %8432 }
0x1874   :  { %v5665_v51 = vpack.c.bf16 %v5661_v20, %v5659_v54  ;;  %v5657_v9 = vmul.f32 %v8433_v61, %v5619_v11  ;;  %v6872_v54 = vld [vmem:[%s9785_s22 + $0x3] ss:$0 sm:$0xff] }
0x1876   :  { %7790 = vmatpush3.bf16.msra.mxu1 %v5665_v51  ;;  %v5664_v26 = vpack.c.bf16 %v5657_v9, %v5655_v6 }
0x1877   :  { %7791 = vmatprep.subr.bf16.mxu1 %v8719_v0 }
0x1878   :  { %7766 = vmatprep.mubr.bf16.mxu1 %v5664_v26 }
0x1879   :  { %7767 = vmatmul.mubr.bf16.gmra.mxu1 %v5665_v51 }
0x187a   :  { %7792 = vmatpush3.bf16.msra.mxu1 %v5664_v26  ;;  %7797 = vmatprep.mubr.msk.bf16.mxu1 %vm8720_vm0, %v8719_v0 }
0x187b   :  { %7793 = vmatprep.subr.bf16.mxu1 %v8719_v0 }
0x187e   :  { %7794 = vmatpush3.bf16.msra.mxu1 %v5663_v25 }
0x187f   :  { %7795 = vmatprep.subr.bf16.mxu1 %v8719_v0 }
0x1882   :  { %7796 = vmatpush3.bf16.msra.mxu1 %v5662_v57 }
0x1883   :  { %7801 = vmatprep.subr.bf16.mxu1 %v8719_v0 }
0x1885   :  { %7798 = vmatmul.mubr.msk.bf16.vlgmr.msra.gmra.mxu1 %vm1427_vm4, %v8513_v32 }
0x1886   :  { %7817 = vmatprep.mubr.msk.bf16.mxu1 %vm8720_vm0, %v8719_v0 }
0x1930   :  { %v7764_v35 = vpop.f32.mrf.mxu1 }
0x1931   :  { %v9672_v7 = vadd.f32 %v7764_v35, %v6854_v33 }
0x1932   :  { %v5773_v1 = vpop.f32.mrf.mxu1 }
0x1933   :  { %v6865_v10 = vmul.f32 -1.442695, %v9672_v7  ;;  %v5774_v5 = vadd.f32 %v6854_v33, %v5773_v1 }
0x1934   :  { %v7765_v39 = vpop.f32.mrf.mxu1 }
0x1935   :  { %v5785_v15 = vadd.f32 %v7765_v39, %v6854_v33  ;;  %v6863_v2 = vmul.f32 -1.442695, %v5774_v5 }
0x1936   :  { %v5776_v43 = vpop.f32.mrf.mxu1 }
0x1937   :  { %v6866_v53 = vmul.f32 -1.442695, %v5785_v15  ;;  %v5777_v29 = vadd.f32 %v6854_v33, %v5776_v43 }
0x1939   :  { %8434 = vpow2.f32 %v6866_v53  ;;  %v6864_v24 = vmul.f32 -1.442695, %v5777_v29  ;;  %v7768_v50 = vpop.f32.mrf.mxu1 }
0x193a   :  { %v5798_v28 = vadd.f32 %v7768_v50, %v6854_v33 }
0x193b   :  { %v5789_v18 = vpop.f32.mrf.mxu1  ;;  %8436 = vpow2.f32 %v6864_v24 }
0x193c   :  { %v6869_v36 = vmul.f32 -1.442695, %v5798_v28  ;;  %v5790_v52 = vadd.f32 %v6854_v33, %v5789_v18 }
0x193d   :  { %v7769_v13 = vpop.f32.mrf.mxu1 }
0x193e   :  { %8438 = vpow2.f32 %v6869_v36  ;;  %v6867_v55 = vmul.f32 -1.442695, %v5790_v52  ;;  %v5801_v44 = vadd.f32 %v7769_v13, %v6854_v33 }
0x193f   :  { %v5792_v58 = vpop.f32.mrf.mxu1 }
0x1940   :  { %v6870_v19 = vmul.f32 -1.442695, %v5801_v44  ;;  %v5793_v23 = vadd.f32 %v6854_v33, %v5792_v58  ;;  %8440 = vpow2.f32 %v6867_v55 }
0x1942   :  { %8442 = vpow2.f32 %v6870_v19  ;;  %v6868_v46 = vmul.f32 -1.442695, %v5793_v23 }
0x1944   :  { %8444 = vpow2.f32 %v6868_v46 }
0x1945   :  { %8446 = vpow2.f32 %v6865_v10 }
0x1946   :  { %v8435_v21 = vpop.eup %8434  ;;  %8448 = vpow2.f32 %v6863_v2 }
0x1947   :  { %v5831_v3 = vadd.f32 1.0, %v8435_v21 }
0x1948   :  { %v8437_v11 = vpop.eup %8436 }
0x1949   :  { %8450 = vrcp.f32 %v5831_v3  ;;  %v5829_v42 = vadd.f32 1.0, %v8437_v11 }
0x194b   :  { %v8439_v12 = vpop.eup %8438 }
0x194c   :  { %v5834_v41 = vadd.f32 1.0, %v8439_v12 }
0x194d   :  { %v8441_v62 = vpop.eup %8440 }
0x194e   :  { %8452 = vrcp.f32 %v5834_v41  ;;  %v5832_v63 = vadd.f32 1.0, %v8441_v62 }
0x194f   :  { %v8443_v47 = vpop.eup %8442  ;;  %8454 = vrcp.f32 %v5829_v42 }
0x1950   :  { %v5835_v16 = vadd.f32 1.0, %v8443_v47 }
0x1951   :  { %v8445_v48 = vpop.eup %8444 }
0x1952   :  { %8456 = vrcp.f32 %v5835_v16  ;;  %v5833_v60 = vadd.f32 1.0, %v8445_v48  ;;  %v8447_v14 = vpop.eup %8446  ;;  %v8096_v16 = vld [vmem:[#allocation11 + $0x1f8] sm:$0xff]  }
0x1953   :  { %v5830_v17 = vadd.f32 1.0, %v8447_v14  ;;  %v8449_v57 = vpop.eup %8448  ;;  %v8097_v48 = vld [vmem:[#allocation11 + $0x1b8] sm:$0xff]   ;;  %v8098_v14 = vld [vmem:[#allocation11 + $0x1f0] sm:$0xff]  }
0x1954   :  { %8458 = vrcp.f32 %v5833_v60  ;;  %v5828_v27 = vadd.f32 1.0, %v8449_v57  ;;  %v8099_v57 = vld [vmem:[#allocation11 + $0x1b0] sm:$0xff]  }
0x1955   :  { %8460 = vrcp.f32 %v5832_v63 }
0x1956   :  { %v8451_v25 = vpop.eup %8450  ;;  %8462 = vrcp.f32 %v5830_v17  ;;  %v8514_v17 = vld [vmem:[%s9817_s30] sm:$0xff] }
0x1957   :  { %8464 = vrcp.f32 %v5828_v27  ;;  %v5855_v61 = vmul.f32 %v8451_v25, %v5785_v15  ;;  %v8100_v25 = vld [vmem:[#allocation11 + $0x1e8] sm:$0xff]  }
0x1958   :  { %v8101_v27 = vld [vmem:[#allocation11 + $0x1a8] sm:$0xff]  }
0x1959   :  { %v5871_v1 = vmul.f32 %v6872_v54, %v5855_v61  ;;  %v8106_v61 = vld [vmem:[#allocation11 + $0x1d0] sm:$0xff]  }
0x195b   :  { %v8453_v31 = vpop.eup %8452 }
0x195c   :  { %v5858_v8 = vmul.f32 %v8453_v31, %v5798_v28  ;;  %v8455_v20 = vpop.eup %8454  ;;  %v8102_v31 = vld [vmem:[#allocation11 + $0x1e0] sm:$0xff]  }
0x195d   :  { %v5853_v32 = vmul.f32 %v8455_v20, %v5777_v29  ;;  %v8105_v20 = vld [vmem:[#allocation11 + $0x198] sm:$0xff]  }
0x195e   :  { %v5874_v6 = vmul.f32 %v6872_v54, %v5858_v8  ;;  %v8103_v8 = vld [vmem:[#allocation11 + $0x1a0] sm:$0xff]  }
0x195f   :  { %v8457_v51 = vpop.eup %8456  ;;  %v5869_v53 = vmul.f32 %v6872_v54, %v5853_v32  ;;  %v8111_v32 = vld [vmem:[#allocation11 + $0x180] sm:$0xff]  }
0x1960   :  { %v5859_v9 = vmul.f32 %v8457_v51, %v5801_v44  ;;  %5888 = vadd.xlane.f32.xlu1 %v5874_v6  ;;  %v8107_v6 = vld [vmem:[#allocation11 + $0x190] sm:$0xff]   ;;  %v8108_v51 = vld [vmem:[#allocation11 + $0x1c8] sm:$0xff]  }
0x1961   :  { %v8459_v26 = vpop.eup %8458 }
0x1962   :  { %v5857_v35 = vmul.f32 %v8459_v26, %v5793_v23  ;;  %v5875_v33 = vmul.f32 %v6872_v54, %v5859_v9  ;;  %v8461_v39 = vpop.eup %8460  ;;  %v8109_v9 = vld [vmem:[#allocation11 + $0x188] sm:$0xff]   ;;  %v8110_v26 = vld [vmem:[#allocation11 + $0x1c0] sm:$0xff]  }
0x1963   :  { %v5856_v43 = vmul.f32 %v8461_v39, %v5790_v52  ;;  %v8463_v50 = vpop.eup %8462  ;;  %v8115_v39 = vld [vmem:[#allocation13 + $0xe0] sm:$0xff]  }
0x1964   :  { %5882 = vadd.xlane.f32.xlu1 %v5871_v1  ;;  %5890 = vadd.xlane.f32.xlu0 %v5875_v33  ;;  %v5873_v24 = vmul.f32 %v6872_v54, %v5857_v35  ;;  %v5854_v15 = vmul.f32 %v8463_v50, %v9672_v7  ;;  %v8465_v18 = vpop.eup %8464  ;;  %v8112_v35 = vld [vmem:[#allocation13 + $0xf8] sm:$0xff]   ;;  %v8113_v1 = vld [vmem:[#allocation13 + $0xf0] sm:$0xff]   ;;  %v8114_v33 = vld [vmem:[#allocation13 + $0xe8] sm:$0xff]  }
0x1965   :  { %v5872_v28 = vmul.f32 %v6872_v54, %v5856_v43  ;;  %v5852_v36 = vmul.f32 %v8465_v18, %v5774_v5  ;;  %7802 = vmatpush3.bf16.msra.mxu1 %v8112_v35  ;;  %v8117_v43 = vld [vmem:[#allocation13 + $0xd0] sm:$0xff]  }
0x1966   :  { %v5870_v13 = vmul.f32 %v6872_v54, %v5854_v15  ;;  %7803 = vmatprep.subr.bf16.mxu1 %v8719_v0  ;;  %v8120_v50 = vld [vmem:[%s9818_s18 + $0x38] sm:$0xff]   ;;  %v8121_v15 = vld [vmem:[%s9818_s18 + $0x30] sm:$0xff]  }
0x1967   :  { %v5868_v29 = vmul.f32 %v6872_v54, %v5852_v36  ;;  %v8104_v54 = vld [vmem:[#allocation11 + $0x1d8] sm:$0xff]  }
0x1968   :  { %5878 = vadd.xlane.f32.xlu1 %v5869_v53  ;;  %5886 = vadd.xlane.f32.xlu0 %v5873_v24  ;;  %v8118_v53 = vld [vmem:[#allocation13 + $0xc8] sm:$0xff]   ;;  %v8119_v24 = vld [vmem:[#allocation13 + $0xc0] sm:$0xff]  }
0x1969   :  { %7804 = vmatpush3.bf16.msra.mxu1 %v8113_v1 }
0x196a   :  { %7805 = vmatprep.subr.bf16.mxu1 %v8719_v0 }
0x196c   :  { %5884 = vadd.xlane.f32.xlu0 %v5872_v28 }
0x196d   :  { %7806 = vmatpush3.bf16.msra.mxu1 %v8114_v33 }
0x196e   :  { %7807 = vmatprep.subr.bf16.mxu1 %v8719_v0 }
0x1970   :  { %5880 = vadd.xlane.f32.xlu0 %v5870_v13 }
0x1971   :  { %7808 = vmatpush3.bf16.msra.mxu1 %v8115_v39 }
0x1972   :  { %7809 = vmatprep.subr.bf16.mxu1 %v8719_v0 }
0x1974   :  { %5876 = vadd.xlane.f32.xlu0 %v5868_v29 }
0x19e9   :  { %v5889_v55 = vpop.xlane.xlu1 %5888 }
0x19ea   :  { %v5898_v44 = vmul.f32 %v5889_v55, %v9614_v56 }
0x19ec   :  { %5920 = vrot.lane.b32.xlu0 %v5898_v44, %s8722_s29  ;;  %v6876_v44 = vld [vmem:[%s9780_s17 + $0x3] ss:$0 sm:$0xff] }
0x19ed   :  { %v5883_v52 = vpop.xlane.xlu1 %5882  ;;  %v5891_v58 = vpop.xlane.xlu0 %5890 }
0x19ee   :  { %v5895_v19 = vmul.f32 %v9592_v34, %v5883_v52  ;;  %v5899_v23 = vmul.f32 %v9608_v45, %v5891_v58 }
0x19f0   :  { %5922 = vrot.lane.b32.xlu1 %v5899_v23, %s8722_s29  ;;  %5914 = vrot.lane.b32.xlu0 %v5895_v19, %s8722_s29 }
0x19f1   :  { %v5879_v7 = vpop.xlane.xlu1 %5878  ;;  %v5887_v10 = vpop.xlane.xlu0 %5886 }
0x19f2   :  { %v5893_v5 = vmul.f32 %v9583_v22, %v5879_v7  ;;  %v5897_v46 = vmul.f32 %v9600_v40, %v5887_v10  ;;  %v6038_v22 = vpop.f32.mrf.mxu1 }
0x19f3   :  { %v6044_v63 = vpack.c.bf16 %v6038_v22, %v6038_v22  ;;  %v8127_v22 = vld [vmem:[%s9818_s18] sm:$0xff]  }
0x19f4   :  { %5918 = vrot.lane.b32.xlu1 %v5897_v46, %s8722_s29  ;;  %5910 = vrot.lane.b32.xlu0 %v5893_v5, %s8722_s29  ;;  %v7799_v40 = vpop.f32.mrf.mxu1 }
0x19f5   :  { %v5885_v56 = vpop.xlane.xlu0 %5884  ;;  %v6895_v40 = vld [vmem:[%s9782_s19 + $0x3] ss:$0 sm:$0xff]  ;;  %s8675_s19 = scalar_lea.vmem %s6469_s14, 128 }
0x19f6   :  { %v5896_v21 = vmul.f32 %v5885_v56, %v9604_v49  ;;  %v6041_v11 = vpop.f32.mrf.mxu1  ;;  %p8676_p12 = scmp.ne.s32.totalorder %s6469_s14, %s8675_s19  ;;  %p8681_p0 = scmp.lt.s32.totalorder %s8675_s19, %s8675_s19 }
0x19f8   :  { %5916 = vrot.lane.b32.xlu1 %v5896_v21, %s8722_s29  ;;  %v7800_v12 = vpop.f32.mrf.mxu1  ;;  %v8122_v21 = vld [vmem:[%s9818_s18 + $0x28] sm:$0xff]   ;;  %p8682_p1 = por %p8681_p0, %p8680_p13 }
0x19f9   :  { %v5881_v34 = vpop.xlane.xlu0 %5880 }
0x19fa   :  { %v5894_v45 = vmul.f32 %v5881_v34, %v9597_v38  ;;  %v8123_v34 = vld [vmem:[%s9818_s18 + $0x20] sm:$0xff]   ;;  %p8683_p2 = pnand %p8682_p1, %p8676_p12 }
0x19fc   :  { %5912 = vrot.lane.b32.xlu1 %v5894_v45, %s8722_s29  ;;  %v8124_v45 = vld [vmem:[%s9818_s18 + $0x18] sm:$0xff]  }
0x19fd   :  { %v5877_v2 = vpop.xlane.xlu0 %5876 }
0x19fe   :  { %v5892_v3 = vmul.f32 %v5877_v2, %v9587_v4  ;;  %v8125_v2 = vld [vmem:[%s9818_s18 + $0x10] sm:$0xff]  }
0x1a00   :  { %5908 = vrot.lane.b32.xlu1 %v5892_v3, %s8722_s29  ;;  %v8126_v3 = vld [vmem:[%s9818_s18 + $0x8] sm:$0xff]  }
0x1a5e   :  { %v5921_v42 = vpop.permute.xlu0 %5920 }
0x1a62   :  { %v5923_v41 = vpop.permute.xlu1 %5922  ;;  %v5915_v38 = vpop.permute.xlu0 %5914 }
0x1a63   :  { %7771 = vmatpush3.msra.mxu0 %v5923_v41 }
0x1a64   :  { %7772 = vmatprep.subr.mxu0 %v8719_v0 }
0x1a65   :  { %7773 = vmatpush3.msra.mxu0 %v5921_v42 }
0x1a66   :  { %v5919_v49 = vpop.permute.xlu1 %5918  ;;  %7774 = vmatprep.subr.mxu0 %v8719_v0  ;;  %v5911_v47 = vpop.permute.xlu0 %5910 }
0x1a67   :  { %7775 = vmatpush3.msra.mxu0 %v5919_v49 }
0x1a68   :  { %7776 = vmatprep.subr.mxu0 %v8719_v0 }
0x1a6a   :  { %v5917_v4 = vpop.permute.xlu1 %5916 }
0x1a6b   :  { %7777 = vmatpush3.msra.mxu0 %v5917_v4 }
0x1a6c   :  { %7778 = vmatprep.subr.mxu0 %v8719_v0 }
0x1a6d   :  { %7779 = vmatpush3.msra.mxu0 %v5915_v38 }
0x1a6e   :  { %v5913_v62 = vpop.permute.xlu1 %5912  ;;  %7780 = vmatprep.subr.mxu0 %v8719_v0 }
0x1a6f   :  { %7781 = vmatpush3.msra.mxu0 %v5913_v62 }
0x1a70   :  { %7782 = vmatprep.subr.mxu0 %v8719_v0 }
0x1a71   :  { %7783 = vmatpush3.msra.mxu0 %v5911_v47 }
0x1a72   :  { %v5909_v60 = vpop.permute.xlu1 %5908  ;;  %7784 = vmatprep.subr.mxu0 %v8719_v0 }
0x1a73   :  { %7785 = vmatpush3.msra.mxu0 %v5909_v60 }
0x1a74   :  { %7787 = vmatmul.mubr.msk.f32.vlgmr.msra.gmra.mxu0 %vm1427_vm4, %v8514_v17  ;;  %7236 = vmatprep.subr.bf16.mxu0 %v8096_v16  ;;  %v6904_v16 = vld [vmem:[#allocation7] ss:$0 sm:$0xff] }
0x1a75   :  { %7237 = vmatpush3.bf16.msra.mxu0 %v8097_v48  ;;  %6214 = vmatprep.mubr.bf16.mxu0 %v6044_v63 }
0x1a76   :  { %7238 = vmatprep.subr.bf16.mxu0 %v8098_v14 }
0x1a79   :  { %7239 = vmatpush3.bf16.msra.mxu0 %v8099_v57 }
0x1a7a   :  { %7240 = vmatprep.subr.bf16.mxu0 %v8100_v25 }
0x1a7d   :  { %7241 = vmatpush3.bf16.msra.mxu0 %v8101_v27 }
0x1a7e   :  { %7242 = vmatprep.subr.bf16.mxu0 %v8102_v31 }
0x1a81   :  { %7243 = vmatpush3.bf16.msra.mxu0 %v8103_v8 }
0x1a82   :  { %7244 = vmatprep.subr.bf16.mxu0 %v8104_v54 }
0x1a85   :  { %7245 = vmatpush3.bf16.msra.mxu0 %v8105_v20 }
0x1a86   :  { %7246 = vmatprep.subr.bf16.mxu0 %v8106_v61 }
0x1a89   :  { %7247 = vmatpush3.bf16.msra.mxu0 %v8107_v6 }
0x1a8a   :  { %7248 = vmatprep.subr.bf16.mxu0 %v8108_v51 }
0x1a8d   :  { %7249 = vmatpush3.bf16.msra.mxu0 %v8109_v9 }
0x1a8e   :  { %7250 = vmatprep.subr.bf16.mxu0 %v8110_v26 }
0x1a91   :  { %7251 = vmatpush3.bf16.msra.mxu0 %v8111_v32 }
0x1a92   :  { %7821 = vmatprep.subr.bf16.mxu0 %v8719_v0 }
0x1a94   :  { %6215 = vmatmul.mubr.bf16.vlgmr.msra.gmra.mxu0 %v9564_v30  ;;  %v8116_v30 = vld [vmem:[#allocation13 + $0xd8] sm:$0xff]  }
0x1a95   :  { %7837 = vmatprep.mubr.msk.bf16.mxu0 %vm8720_vm0, %v8719_v0  ;;  %7810 = vmatpush3.bf16.msra.mxu1 %v8116_v30 }
0x1a96   :  { %7811 = vmatprep.subr.bf16.mxu1 %v8719_v0  ;;  %7822 = vmatpush3.bf16.msra.mxu0 %v8120_v50 }
0x1a97   :  { %7823 = vmatprep.subr.bf16.mxu0 %v8719_v0 }
0x1a99   :  { %7812 = vmatpush3.bf16.msra.mxu1 %v8117_v43 }
0x1a9a   :  { %7813 = vmatprep.subr.bf16.mxu1 %v8719_v0  ;;  %7824 = vmatpush3.bf16.msra.mxu0 %v8121_v15 }
0x1a9b   :  { %7825 = vmatprep.subr.bf16.mxu0 %v8719_v0 }
0x1a9d   :  { %7814 = vmatpush3.bf16.msra.mxu1 %v8118_v53 }
0x1a9e   :  { %7815 = vmatprep.subr.bf16.mxu1 %v8719_v0  ;;  %7826 = vmatpush3.bf16.msra.mxu0 %v8122_v21 }
0x1a9f   :  { %7827 = vmatprep.subr.bf16.mxu0 %v8719_v0 }
0x1aa1   :  { %7816 = vmatpush3.bf16.msra.mxu1 %v8119_v24 }
0x1aa2   :  { %7828 = vmatpush3.bf16.msra.mxu0 %v8123_v34 }
0x1aa3   :  { %7829 = vmatprep.subr.bf16.mxu0 %v8719_v0 }
0x1aa6   :  { %7830 = vmatpush3.bf16.msra.mxu0 %v8124_v45 }
0x1aa7   :  { %7831 = vmatprep.subr.bf16.mxu0 %v8719_v0 }
0x1aaa   :  { %7832 = vmatpush3.bf16.msra.mxu0 %v8125_v2 }
0x1aab   :  { %7833 = vmatprep.subr.bf16.mxu0 %v8719_v0 }
0x1aae   :  { %7834 = vmatpush3.bf16.msra.mxu0 %v8126_v3 }
0x1aaf   :  { %7835 = vmatprep.subr.bf16.mxu0 %v8719_v0 }
0x1ab2   :  { %7836 = vmatpush3.bf16.msra.mxu0 %v8127_v22 }
0x1b34   :  { %v5998_v28 = vpop.f32.mrf.mxu0 }
0x1b35   :  { %v6002_v18 = vmul.f32 %v5998_v28, %v9121_v59 }
0x1b36   :  { %v7788_v36 = vpop.f32.mrf.mxu0 }
0x1b37   :  { %v6003_v13 = vadd.f32 %v6002_v18, %v9529_v37 }
0x1b39   :  { %v6460_v29 = vsel %vm217_vm2, %v6003_v13, 0.0 }
0x1b3a   :  { %6461 = vst [vmem:[%s9789_s26] sm:$0xff] %v6460_v29 }
0x1b54   :  { %v7252_v55 = vpop.f32.mrf.mxu0 }
0x1b56   :  { %v7253_v52 = vpop.f32.mrf.mxu0 }
0x1b57   :  { %v7254_v58 = vadd.f32 %v7253_v52, %v7252_v55 }
0x1b58   :  { %v7255_v19 = vpop.f32.mrf.mxu0 }
0x1b59   :  { %v6217_v23 = vadd.f32 %v7254_v58, %v6876_v44 }
0x1b5a   :  { %v7256_v7 = vpop.f32.mrf.mxu0 }
0x1b5b   :  { %v6893_v59 = vmul.f32 -1.442695, %v6217_v23 }
0x1b5d   :  { %8466 = vpow2.f32 %v6893_v59 }
0x1b6a   :  { %v8467_v10 = vpop.eup %8466 }
0x1b6b   :  { %v6225_v37 = vadd.f32 1.0, %v8467_v10 }
0x1b6d   :  { %8468 = vrcp.f32 %v6225_v37 }
0x1b7a   :  { %v8469_v5 = vpop.eup %8468 }
0x1b7b   :  { %v6228_v46 = vmul.f32 %v8469_v5, %v6217_v23 }
0x1b7d   :  { %v6229_v56 = vpack.c.bf16 %v6228_v46, %v6228_v46 }
0x1b7f   :  { %7818 = vmatmul.mubr.bf16.vlgmr.msra.gmra.mxu1 %v6229_v56 }
0x1c3f   :  { %v6337_v11 = vpop.f32.mrf.mxu1 }
0x1c40   :  { %v6338_v12 = vadd.f32 %v6895_v40, %v6337_v11 }
0x1c41   :  { %v7819_v41 = vpop.f32.mrf.mxu1 }
0x1c42   :  { %v6343_v42 = vand.u32 2147483647, %v6338_v12 }
0x1c43   :  { %v6340_v49 = vpop.f32.mrf.mxu1 }
0x1c44   :  { %v6344_v38 = vadd.f32 1.0, %v6343_v42 }
0x1c45   :  { %v7820_v4 = vpop.f32.mrf.mxu1 }
0x1c46   :  { %8470 = vrcp.f32 %v6344_v38 }
0x1c53   :  { %v8471_v62 = vpop.eup %8470 }
0x1c54   :  { %v6346_v47 = vmul.f32 %v8471_v62, %v6338_v12 }
0x1c56   :  { %v6347_v0 = vpack.c.bf16 %v6346_v47, %v6346_v47 }
0x1c58   :  { %7838 = vmatmul.mubr.bf16.vlgmr.msra.gmra.mxu0 %v6347_v0 }
0x1d18   :  { %v6453_v48 = vpop.f32.mrf.mxu0 }
0x1d19   :  { %v6454_v63 = vadd.f32 %v6904_v16, %v6453_v48 }
0x1d1a   :  { %v7839_v60 = vpop.f32.mrf.mxu0 }
0x1d1b   :  { %6459 = vst [vmem:[#allocation16] sm:$0xff] %v6454_v63 }
0x1d1c   :  { %v6456_v14 = vpop.f32.mrf.mxu0 }
0x1d1d   :  { %8686 = shalt.err (!%p8683_p2)
}
0x1d1e   :  { %s9819_s4 = sld [smem:[#allocation34_spill]]  ;;  %v7840_v17 = vpop.f32.mrf.mxu0 }
0x1d24   :  { %6471 = dma.vmem_to_hbm [thread:$0]  %s6469_s14, 128, %s9819_s4, [#allocation4]  }
0x1d25   :  { %8705 = dma.done.wait [#allocation4], 128  }
0x1d26   :  { %8706 = vsyncadd [#allocation4], 4294967168 }
0x1d27   :  { %6479 = vsyncpa [#allocation3], 1 }
0x1d28   :  { %6480 = vsyncpa [#allocation6], 1 }
0x1d29   :  { %6481 = vsyncpa [#allocation9], 1 }
0x1d2a   :  { %6482 = vsyncpa [#allocation12], 1 }
0x1d2b   :  { %6483 = vsyncpa [#allocation15], 1 }
0x1d2c   :  { %6484 = vsyncpa [#allocation4], 1 }

</bundles_post_ra>
